<compile_context>
chip_gen: v7x
topology: tpu7x:2x2x1
jax: 0.10.0
libtpu: 0.0.40
codegen_flags: <defaults>
</compile_context>

<pallas_src>
import math
import numpy as np
import jax
import jax.numpy as jnp
from jax import lax
from jax.experimental import pallas as pl
from jax.experimental.pallas import tpu as pltpu


def _round_up(x, m):
    return ((x + m - 1) // m) * m


def _pick_time_chunk(T, max_chunk=64):
    """Largest divisor of T that is <= max_chunk (bounds gi scratch size)."""
    for c in range(min(T, max_chunk), 0, -1):
        if T % c == 0:
            return c
    return T


# ---------------------------------------------------------------------------
# Fused Pallas kernel: all GRU layers + FC head, whole model in VMEM.
# ---------------------------------------------------------------------------
def make_fused_gru_kernel(num_layers, T, Bp, Hp, t_chunk, unroll, mxu_dtype):
    """Ref order: x, (wi, wh, bi3, bhn) per layer, fc_w, fc_b | out | gi, seq.

    x_ref        : (T*Bp, Ip)        time-major, batch/feature zero-padded, f32
    wi_ref[l]    : (in_pad, 3*Hp)    gate-stacked [r|z|n] input weights (mxu_dtype)
    wh_ref[l]    : (Hp, 3*Hp)        gate-stacked [r|z|n] hidden weights (mxu_dtype)
    bi3_ref[l]   : (1, 3*Hp)         [bi_r+bh_r | bi_z+bh_z | bi_n]            f32
    bhn_ref[l]   : (1, Hp)           bh_n (must stay inside r * (...))          f32
    fc_w_ref     : (Hp, Op)          f32
    fc_b_ref     : (1, Op)           f32
    out_ref      : (Bp, Op)          f32 (lane-dense: Op multiple of 128)
    gi_ref  (scratch): (t_chunk*Bp, 3*Hp) f32  per-chunk input-side pre-acts
    seq_ref (scratch): (T*Bp, Hp)         f32  per-layer hidden sequence
    """
    n_chunks = T // t_chunk

    def kernel(*refs):
        x_ref = refs[0]
        layer_refs = [tuple(refs[1 + 4 * l: 1 + 4 * (l + 1)])
                      for l in range(num_layers)]
        fc_w_ref = refs[1 + 4 * num_layers]
        fc_b_ref = refs[2 + 4 * num_layers]
        out_ref = refs[3 + 4 * num_layers]
        gi_ref = refs[4 + 4 * num_layers]
        seq_ref = refs[5 + 4 * num_layers]

        h_last = None
        cur_in_ref = x_ref  # layer 0 reads the padded input slab
        for l in range(num_layers):
            wi_ref, wh_ref, bi3_ref, bhn_ref = layer_refs[l]
            is_last_layer = (l == num_layers - 1)

            # Hoist the bh_n broadcast out of the chunk/time loops (no CSE
            # inside loops).
            bhn_b = jnp.broadcast_to(bhn_ref[...], (Bp, Hp))

            h = jnp.zeros((Bp, Hp), jnp.float32)
            for c in range(n_chunks):
                base = c * t_chunk * Bp  # static Python int

                # Input-side pre-activations for this chunk of timesteps in
                # one MXU matmul (bf16 operands, f32 accumulation), with the
                # r/z hidden biases folded in.  For layer l>0 this reads rows
                # of seq_ref that have NOT yet been overwritten by this layer.
                gi_ref[...] = (
                    jnp.dot(
                        cur_in_ref[pl.ds(base, t_chunk * Bp), :].astype(mxu_dtype),
                        wi_ref[...],
                        preferred_element_type=jnp.float32,
                    )
                    + bi3_ref[...]
                )

                def step(t, h, _wh_ref=wh_ref, _bhn_b=bhn_b,
                         _last=is_last_layer, _base=base):
                    row = pl.multiple_of(t * Bp, Bp)
                    gi = gi_ref[pl.ds(row, Bp), :]                       # (Bp, 3Hp)
                    gh = jnp.dot(h.astype(mxu_dtype), _wh_ref[...],
                                 preferred_element_type=jnp.float32)     # (Bp, 3Hp)
                    # Gate math stays f32 (v5e VPU/EUP have no bf16 path).
                    r = jax.nn.sigmoid(gi[:, :Hp] + gh[:, :Hp])
                    z = jax.nn.sigmoid(gi[:, Hp:2 * Hp] + gh[:, Hp:2 * Hp])
                    n = jnp.tanh(gi[:, 2 * Hp:] + r * (gh[:, 2 * Hp:] + _bhn_b))
                    h_new = (1.0 - z) * n + z * h
                    if not _last:  # last layer only needs h at final timestep
                        seq_row = pl.multiple_of(_base + t * Bp, Bp)
                        seq_ref[pl.ds(seq_row, Bp), :] = h_new
                    return h_new

                # Recurrence is inherently sequential; bounded unroll keeps
                # LLO scheduling visibility without exploding vreg pressure.
                h = lax.fori_loop(0, t_chunk, step, h, unroll=unroll)

            h_last = h
            cur_in_ref = seq_ref  # next layer reads this layer's sequence

        # FC head on the last timestep of the last layer (== out[:, -1, :]).
        out_ref[...] = (
            jnp.dot(h_last, fc_w_ref[...], preferred_element_type=jnp.float32)
            + fc_b_ref[...]
        ).astype(out_ref.dtype)

    return kernel


# ---------------------------------------------------------------------------
# Parameter packing: pad to lane-dense (128) / sublane-dense (8) layouts.
# ---------------------------------------------------------------------------
def prepare_fused_params(params, input_size, hidden_size, output_size,
                         mxu_dtype=jnp.bfloat16):
    Hp = _round_up(hidden_size, 128)
    Ip = _round_up(input_size, 128)
    Op = _round_up(output_size, 128)
    H = hidden_size
    fused = {"layers": [], "Hp": Hp, "Ip": Ip, "Op": Op, "mxu_dtype": mxu_dtype}
    for l, layer in enumerate(params["layers"]):
        wi, wh, bi, bh = layer["wi"], layer["wh"], layer["bi"], layer["bh"]
        in_dim = wi.shape[1]
        in_pad = Ip if l == 0 else Hp
        wi_p = jnp.zeros((in_pad, 3 * Hp), jnp.float32)
        wh_p = jnp.zeros((Hp, 3 * Hp), jnp.float32)
        bi3_p = jnp.zeros((1, 3 * Hp), jnp.float32)
        bhn_p = jnp.zeros((1, Hp), jnp.float32)
        for g in range(3):
            wi_p = wi_p.at[:in_dim, g * Hp:g * Hp + H].set(wi[g])
            wh_p = wh_p.at[:H, g * Hp:g * Hp + H].set(wh[g])
        bi3_p = bi3_p.at[:, 0 * Hp:0 * Hp + H].set(bi[0] + bh[0])  # r
        bi3_p = bi3_p.at[:, 1 * Hp:1 * Hp + H].set(bi[1] + bh[1])  # z
        bi3_p = bi3_p.at[:, 2 * Hp:2 * Hp + H].set(bi[2])          # n (bi only)
        bhn_p = bhn_p.at[:, :H].set(bh[2])
        fused["layers"].append(
            (wi_p.astype(mxu_dtype), wh_p.astype(mxu_dtype), bi3_p, bhn_p))
    fused["fc_w"] = (
        jnp.zeros((Hp, Op), jnp.float32).at[:H, :output_size].set(params["fc_w"])
    )
    fused["fc_b"] = (
        jnp.zeros((1, Op), jnp.float32).at[:, :output_size].set(params["fc_b"])
    )
    return fused


# ---------------------------------------------------------------------------
# Forward wrapper (single pallas_call for the whole model).
# ---------------------------------------------------------------------------
def gru_model_forward(x, fused, num_layers, output_size):
    """x: (B, T, input_size) batch_first, like the PyTorch module."""
    B, T, I = x.shape
    Hp, Ip, Op = fused["Hp"], fused["Ip"], fused["Op"]
    mxu_dtype = fused["mxu_dtype"]
    Bp = _round_up(max(B, 8), 8)
    t_chunk = _pick_time_chunk(T)
    unroll = int(min(t_chunk, 8))

    # One transpose+pad+reshape producing the time-major, padded input slab.
    x_t = jnp.transpose(x, (1, 0, 2))                               # (T, B, I)
    x_p = jnp.zeros((T, Bp, Ip), jnp.float32).at[:, :B, :I].set(x_t)
    x_2d = x_p.reshape(T * Bp, Ip)

    inputs = [x_2d]
    for lw in fused["layers"]:
        inputs.extend(lw)
    inputs.extend([fused["fc_w"], fused["fc_b"]])

    # ---- VMEM budget sized from the actual footprint (+headroom) ----------
    def nbytes(a):
        return int(a.size) * int(a.dtype.itemsize)

    io_bytes = sum(nbytes(a) for a in inputs) + Bp * Op * 4
    scratch_bytes = (t_chunk * Bp * 3 * Hp) * 4 + (T * Bp * Hp) * 4
    vmem_limit = int(min(max(2 * io_bytes + scratch_bytes + (2 << 20), 16 << 20),
                         64 << 20))

    # ---- Cost estimate (helps XLA schedule surrounding transpose/pad) -----
    flops = 0
    in_pad = Ip
    for _ in range(num_layers):
        flops += 2 * T * Bp * in_pad * 3 * Hp     # hoisted input-side matmul
        flops += 2 * T * Bp * Hp * 3 * Hp         # per-step recurrent matmul
        in_pad = Hp
    flops += 2 * Bp * Hp * Op                     # FC head
    transcendentals = num_layers * 3 * T * Bp * Hp
    cost = pl.CostEstimate(flops=int(flops),
                           transcendentals=int(transcendentals),
                           bytes_accessed=int(io_bytes))

    kernel = make_fused_gru_kernel(num_layers, T, Bp, Hp, t_chunk, unroll,
                                   mxu_dtype)
    out_p = pl.pallas_call(
        kernel,
        out_shape=jax.ShapeDtypeStruct((Bp, Op), jnp.float32),
        scratch_shapes=[
            pltpu.VMEM((t_chunk * Bp, 3 * Hp), jnp.float32),  # gi_ref (chunked)
            pltpu.VMEM((T * Bp, Hp), jnp.float32),            # seq_ref
        ],
        compiler_params=pltpu.CompilerParams(vmem_limit_bytes=vmem_limit),
        cost_estimate=cost,
    )(*inputs)
    return out_p[:B, :output_size]


# ---------------------------------------------------------------------------
# Deterministic parameter init (PyTorch-style uniform(-1/sqrt(H), 1/sqrt(H)))
# ---------------------------------------------------------------------------
def init_params(key, input_size, hidden_size, num_layers, output_size):
    k = 1.0 / math.sqrt(hidden_size)
    params = {"layers": []}
    for layer in range(num_layers):
        in_dim = input_size if layer == 0 else hidden_size
        key, k1, k2, k3, k4 = jax.random.split(key, 5)
        # gate-stacked, pre-transposed: (3, in, H) so forward does x @ w[g]
        wi = jax.random.uniform(k1, (3, in_dim, hidden_size), jnp.float32, -k, k)
        wh = jax.random.uniform(k2, (3, hidden_size, hidden_size), jnp.float32, -k, k)
        bi = jax.random.uniform(k3, (3, 1, hidden_size), jnp.float32, -k, k)
        bh = jax.random.uniform(k4, (3, 1, hidden_size), jnp.float32, -k, k)
        params["layers"].append({"wi": wi, "wh": wh, "bi": bi, "bh": bh})
    key, k5, k6 = jax.random.split(key, 3)
    kf = 1.0 / math.sqrt(hidden_size)
    params["fc_w"] = jax.random.uniform(
        k5, (hidden_size, output_size), jnp.float32, -kf, kf
    )
    params["fc_b"] = jax.random.uniform(k6, (1, output_size), jnp.float32, -kf, kf)
    return params


# ---------------------------------------------------------------------------
# Pure-JAX reference (correctness sanity check; PyTorch GRU gate order r,z,n)
# ---------------------------------------------------------------------------
def gru_reference(x, params):
    h_seq = jnp.transpose(x, (1, 0, 2))  # (T, B, in)
    for layer in params["layers"]:
        wi, wh, bi, bh = layer["wi"], layer["wh"], layer["bi"], layer["bh"]
        T, B, _ = h_seq.shape
        H = wh.shape[-1]
        h = jnp.zeros((B, H), jnp.float32)
        outs = []
        for t in range(T):
            xt = h_seq[t]
            r = jax.nn.sigmoid(xt @ wi[0] + bi[0] + h @ wh[0] + bh[0])
            z = jax.nn.sigmoid(xt @ wi[1] + bi[1] + h @ wh[1] + bh[1])
            n = jnp.tanh(xt @ wi[2] + bi[2] + r * (h @ wh[2] + bh[2]))
            h = (1.0 - z) * n + z * h
            outs.append(h)
        h_seq = jnp.stack(outs, axis=0)
    return h_seq[-1] @ params["fc_w"] + params["fc_b"]


# ---------------------------------------------------------------------------
if __name__ == "__main__":
    batch, seq_len = 2, 8
    input_size, hidden_size, num_layers, output_size = 16, 32, 2, 8

    key = jax.random.PRNGKey(0)
    key, xk = jax.random.split(key)
    x = jax.random.normal(xk, (batch, seq_len, input_size), jnp.float32)

    params = init_params(key, input_size, hidden_size, num_layers, output_size)
    ref = jax.block_until_ready(gru_reference(x, params))

    # 1) f32 MXU operands: exact-semantics check against the reference.
    fused_f32 = prepare_fused_params(params, input_size, hidden_size,
                                     output_size, mxu_dtype=jnp.float32)
    out_f32 = jax.block_until_ready(
        gru_model_forward(x, fused_f32, num_layers, output_size))
    np.testing.assert_allclose(np.asarray(out_f32), np.asarray(ref),
                               rtol=1e-4, atol=1e-4)

    # 2) bf16 MXU operands (fast default on v5e/v6e/v7x): looser tolerance.
    fused_bf16 = prepare_fused_params(params, input_size, hidden_size,
                                      output_size, mxu_dtype=jnp.bfloat16)
    out_bf16 = jax.block_until_ready(
        gru_model_forward(x, fused_bf16, num_layers, output_size))
    np.testing.assert_allclose(np.asarray(out_bf16), np.asarray(ref),
                               rtol=2e-2, atol=2e-2)

    assert out_f32.shape == (batch, output_size)
    assert out_bf16.shape == (batch, output_size)
    print("KERNEL_OK")
</pallas_src>

<mosaic_0001>
module attributes {stable_mosaic.version = 11 : i64} {
  func.func @kernel(%arg0: memref<64x128xf32, #tpu.memory_space<vmem>>, %arg1: memref<128x384xf32, #tpu.memory_space<vmem>>, %arg2: memref<128x384xf32, #tpu.memory_space<vmem>>, %arg3: memref<1x384xf32, #tpu.memory_space<vmem>>, %arg4: memref<1x128xf32, #tpu.memory_space<vmem>>, %arg5: memref<128x384xf32, #tpu.memory_space<vmem>>, %arg6: memref<128x384xf32, #tpu.memory_space<vmem>>, %arg7: memref<1x384xf32, #tpu.memory_space<vmem>>, %arg8: memref<1x128xf32, #tpu.memory_space<vmem>>, %arg9: memref<128x128xf32, #tpu.memory_space<vmem>>, %arg10: memref<1x128xf32, #tpu.memory_space<vmem>>, %arg11: memref<8x128xf32, #tpu.memory_space<vmem>>, %arg12: memref<64x384xf32, #tpu.memory_space<vmem>>, %arg13: memref<64x128xf32, #tpu.memory_space<vmem>>) attributes {dimension_semantics = [], scalar_prefetch = 0 : i64, scratch_operands = 2 : i64, tpu.core_type = #tpu.core_type<tc>} {
    %c0 = arith.constant 0 : index
    %c0_0 = arith.constant 0 : index
    %0 = vector.load %arg4[%c0, %c0_0] : memref<1x128xf32, #tpu.memory_space<vmem>>, vector<1x128xf32>
    %1 = vector.shape_cast %0 : vector<1x128xf32> to vector<1x128xf32>
    %2 = vector.broadcast %1 : vector<1x128xf32> to vector<8x128xf32>
    %cst = arith.constant 0.000000e+00 : f32
    %3 = vector.broadcast %cst : f32 to vector<8x128xf32>
    %c0_1 = arith.constant 0 : index
    %c0_2 = arith.constant 0 : index
    %4 = vector.load %arg0[%c0_1, %c0_2] : memref<64x128xf32, #tpu.memory_space<vmem>>, vector<64x128xf32>
    %c0_3 = arith.constant 0 : index
    %c0_4 = arith.constant 0 : index
    %5 = vector.load %arg1[%c0_3, %c0_4] : memref<128x384xf32, #tpu.memory_space<vmem>>, vector<128x384xf32>
    %cst_5 = arith.constant dense<0.000000e+00> : vector<64x384xf32>
    %6 = tpu.matmul %4, %5, %cst_5 {dimension_numbers = #tpu.dot_dimension_numbers<[1], [0], [0], [1], [0, 0, 1, 1], [], []>} : vector<64x128xf32>, vector<128x384xf32>, vector<64x384xf32> -> vector<64x384xf32>
    %c0_6 = arith.constant 0 : index
    %c0_7 = arith.constant 0 : index
    %7 = vector.load %arg3[%c0_6, %c0_7] : memref<1x384xf32, #tpu.memory_space<vmem>>, vector<1x384xf32>
    %8 = vector.broadcast %7 : vector<1x384xf32> to vector<64x384xf32>
    %9 = arith.addf %6, %8 : vector<64x384xf32>
    %c0_8 = arith.constant 0 : index
    %c0_9 = arith.constant 0 : index
    %10 = vector.load %arg12[%c0_8, %c0_9] : memref<64x384xf32, #tpu.memory_space<vmem>>, vector<64x384xf32>
    tpu.vector_store %arg12[%c0_8, %c0_9], %9 {strides = array<i32>} : memref<64x384xf32, #tpu.memory_space<vmem>>, vector<64x384xf32>,
    %c0_i32 = arith.constant 0 : i32
    %c8_i32 = arith.constant 8 : i32
    %11 = arith.muli %c0_i32, %c8_i32 : i32
    %12 = tpu.assume_multiple %11, 8 : i32
    %13 = arith.index_cast %12 : i32 to index
    %c0_10 = arith.constant 0 : index
    %14 = vector.load %arg12[%13, %c0_10] : memref<64x384xf32, #tpu.memory_space<vmem>>, vector<8x384xf32>
    %c0_11 = arith.constant 0 : index
    %c0_12 = arith.constant 0 : index
    %15 = vector.load %arg2[%c0_11, %c0_12] : memref<128x384xf32, #tpu.memory_space<vmem>>, vector<128x384xf32>
    %cst_13 = arith.constant dense<0.000000e+00> : vector<8x384xf32>
    %16 = tpu.matmul %3, %15, %cst_13 {dimension_numbers = #tpu.dot_dimension_numbers<[1], [0], [0], [1], [0, 0, 1, 1], [], []>} : vector<8x128xf32>, vector<128x384xf32>, vector<8x384xf32> -> vector<8x384xf32>
    %17 = vector.extract_strided_slice %14 {offsets = [0, 0], sizes = [8, 128], strides = [1, 1]} : vector<8x384xf32> to vector<8x128xf32>
    %18 = vector.extract_strided_slice %16 {offsets = [0, 0], sizes = [8, 128], strides = [1, 1]} : vector<8x384xf32> to vector<8x128xf32>
    %19 = arith.addf %17, %18 : vector<8x128xf32>
    %20 = arith.negf %19 : vector<8x128xf32>
    %21 = math.exp %20 : vector<8x128xf32>
    %cst_14 = arith.constant 1.000000e+00 : f32
    %22 = vector.broadcast %cst_14 : f32 to vector<8x128xf32>
    %23 = arith.addf %22, %21 : vector<8x128xf32>
    %24 = arith.divf %22, %23 : vector<8x128xf32>
    %25 = vector.extract_strided_slice %14 {offsets = [0, 128], sizes = [8, 128], strides = [1, 1]} : vector<8x384xf32> to vector<8x128xf32>
    %26 = vector.extract_strided_slice %16 {offsets = [0, 128], sizes = [8, 128], strides = [1, 1]} : vector<8x384xf32> to vector<8x128xf32>
    %27 = arith.addf %25, %26 : vector<8x128xf32>
    %28 = arith.negf %27 : vector<8x128xf32>
    %29 = math.exp %28 : vector<8x128xf32>
    %cst_15 = arith.constant 1.000000e+00 : f32
    %30 = vector.broadcast %cst_15 : f32 to vector<8x128xf32>
    %31 = arith.addf %30, %29 : vector<8x128xf32>
    %32 = arith.divf %30, %31 : vector<8x128xf32>
    %33 = vector.extract_strided_slice %14 {offsets = [0, 256], sizes = [8, 128], strides = [1, 1]} : vector<8x384xf32> to vector<8x128xf32>
    %34 = vector.extract_strided_slice %16 {offsets = [0, 256], sizes = [8, 128], strides = [1, 1]} : vector<8x384xf32> to vector<8x128xf32>
    %35 = arith.addf %34, %2 : vector<8x128xf32>
    %36 = arith.mulf %24, %35 : vector<8x128xf32>
    %37 = arith.addf %33, %36 : vector<8x128xf32>
    %38 = math.tanh %37 : vector<8x128xf32>
    %cst_16 = arith.constant 1.000000e+00 : f32
    %39 = vector.broadcast %cst_16 : f32 to vector<8x128xf32>
    %40 = arith.subf %39, %32 : vector<8x128xf32>
    %41 = arith.mulf %40, %38 : vector<8x128xf32>
    %42 = arith.mulf %32, %3 : vector<8x128xf32>
    %43 = arith.addf %41, %42 : vector<8x128xf32>
    %c8_i32_17 = arith.constant 8 : i32
    %44 = arith.muli %c0_i32, %c8_i32_17 : i32
    %c0_i32_18 = arith.constant 0 : i32
    %45 = arith.addi %c0_i32_18, %44 : i32
    %46 = tpu.assume_multiple %45, 8 : i32
    %47 = arith.index_cast %46 : i32 to index
    %c0_19 = arith.constant 0 : index
    %48 = vector.load %arg13[%47, %c0_19] : memref<64x128xf32, #tpu.memory_space<vmem>>, vector<8x128xf32>
    tpu.vector_store %arg13[%47, %c0_19], %43 {strides = array<i32>} : memref<64x128xf32, #tpu.memory_space<vmem>>, vector<8x128xf32>,
    %c1_i32 = arith.constant 1 : i32
    %c8_i32_20 = arith.constant 8 : i32
    %49 = arith.muli %c1_i32, %c8_i32_20 : i32
    %50 = tpu.assume_multiple %49, 8 : i32
    %51 = arith.index_cast %50 : i32 to index
    %c0_21 = arith.constant 0 : index
    %52 = vector.load %arg12[%51, %c0_21] : memref<64x384xf32, #tpu.memory_space<vmem>>, vector<8x384xf32>
    %c0_22 = arith.constant 0 : index
    %c0_23 = arith.constant 0 : index
    %53 = vector.load %arg2[%c0_22, %c0_23] : memref<128x384xf32, #tpu.memory_space<vmem>>, vector<128x384xf32>
    %cst_24 = arith.constant dense<0.000000e+00> : vector<8x384xf32>
    %54 = tpu.matmul %43, %53, %cst_24 {dimension_numbers = #tpu.dot_dimension_numbers<[1], [0], [0], [1], [0, 0, 1, 1], [], []>} : vector<8x128xf32>, vector<128x384xf32>, vector<8x384xf32> -> vector<8x384xf32>
    %55 = vector.extract_strided_slice %52 {offsets = [0, 0], sizes = [8, 128], strides = [1, 1]} : vector<8x384xf32> to vector<8x128xf32>
    %56 = vector.extract_strided_slice %54 {offsets = [0, 0], sizes = [8, 128], strides = [1, 1]} : vector<8x384xf32> to vector<8x128xf32>
    %57 = arith.addf %55, %56 : vector<8x128xf32>
    %58 = arith.negf %57 : vector<8x128xf32>
    %59 = math.exp %58 : vector<8x128xf32>
    %cst_25 = arith.constant 1.000000e+00 : f32
    %60 = vector.broadcast %cst_25 : f32 to vector<8x128xf32>
    %61 = arith.addf %60, %59 : vector<8x128xf32>
    %62 = arith.divf %60, %61 : vector<8x128xf32>
    %63 = vector.extract_strided_slice %52 {offsets = [0, 128], sizes = [8, 128], strides = [1, 1]} : vector<8x384xf32> to vector<8x128xf32>
    %64 = vector.extract_strided_slice %54 {offsets = [0, 128], sizes = [8, 128], strides = [1, 1]} : vector<8x384xf32> to vector<8x128xf32>
    %65 = arith.addf %63, %64 : vector<8x128xf32>
    %66 = arith.negf %65 : vector<8x128xf32>
    %67 = math.exp %66 : vector<8x128xf32>
    %cst_26 = arith.constant 1.000000e+00 : f32
    %68 = vector.broadcast %cst_26 : f32 to vector<8x128xf32>
    %69 = arith.addf %68, %67 : vector<8x128xf32>
    %70 = arith.divf %68, %69 : vector<8x128xf32>
    %71 = vector.extract_strided_slice %52 {offsets = [0, 256], sizes = [8, 128], strides = [1, 1]} : vector<8x384xf32> to vector<8x128xf32>
    %72 = vector.extract_strided_slice %54 {offsets = [0, 256], sizes = [8, 128], strides = [1, 1]} : vector<8x384xf32> to vector<8x128xf32>
    %73 = arith.addf %72, %2 : vector<8x128xf32>
    %74 = arith.mulf %62, %73 : vector<8x128xf32>
    %75 = arith.addf %71, %74 : vector<8x128xf32>
    %76 = math.tanh %75 : vector<8x128xf32>
    %cst_27 = arith.constant 1.000000e+00 : f32
    %77 = vector.broadcast %cst_27 : f32 to vector<8x128xf32>
    %78 = arith.subf %77, %70 : vector<8x128xf32>
    %79 = arith.mulf %78, %76 : vector<8x128xf32>
    %80 = arith.mulf %70, %43 : vector<8x128xf32>
    %81 = arith.addf %79, %80 : vector<8x128xf32>
    %c8_i32_28 = arith.constant 8 : i32
    %82 = arith.muli %c1_i32, %c8_i32_28 : i32
    %c0_i32_29 = arith.constant 0 : i32
    %83 = arith.addi %c0_i32_29, %82 : i32
    %84 = tpu.assume_multiple %83, 8 : i32
    %85 = arith.index_cast %84 : i32 to index
    %c0_30 = arith.constant 0 : index
    %86 = vector.load %arg13[%85, %c0_30] : memref<64x128xf32, #tpu.memory_space<vmem>>, vector<8x128xf32>
    tpu.vector_store %arg13[%85, %c0_30], %81 {strides = array<i32>} : memref<64x128xf32, #tpu.memory_space<vmem>>, vector<8x128xf32>,
    %c2_i32 = arith.constant 2 : i32
    %c8_i32_31 = arith.constant 8 : i32
    %87 = arith.muli %c2_i32, %c8_i32_31 : i32
    %88 = tpu.assume_multiple %87, 8 : i32
    %89 = arith.index_cast %88 : i32 to index
    %c0_32 = arith.constant 0 : index
    %90 = vector.load %arg12[%89, %c0_32] : memref<64x384xf32, #tpu.memory_space<vmem>>, vector<8x384xf32>
    %c0_33 = arith.constant 0 : index
    %c0_34 = arith.constant 0 : index
    %91 = vector.load %arg2[%c0_33, %c0_34] : memref<128x384xf32, #tpu.memory_space<vmem>>, vector<128x384xf32>
    %cst_35 = arith.constant dense<0.000000e+00> : vector<8x384xf32>
    %92 = tpu.matmul %81, %91, %cst_35 {dimension_numbers = #tpu.dot_dimension_numbers<[1], [0], [0], [1], [0, 0, 1, 1], [], []>} : vector<8x128xf32>, vector<128x384xf32>, vector<8x384xf32> -> vector<8x384xf32>
    %93 = vector.extract_strided_slice %90 {offsets = [0, 0], sizes = [8, 128], strides = [1, 1]} : vector<8x384xf32> to vector<8x128xf32>
    %94 = vector.extract_strided_slice %92 {offsets = [0, 0], sizes = [8, 128], strides = [1, 1]} : vector<8x384xf32> to vector<8x128xf32>
    %95 = arith.addf %93, %94 : vector<8x128xf32>
    %96 = arith.negf %95 : vector<8x128xf32>
    %97 = math.exp %96 : vector<8x128xf32>
    %cst_36 = arith.constant 1.000000e+00 : f32
    %98 = vector.broadcast %cst_36 : f32 to vector<8x128xf32>
    %99 = arith.addf %98, %97 : vector<8x128xf32>
    %100 = arith.divf %98, %99 : vector<8x128xf32>
    %101 = vector.extract_strided_slice %90 {offsets = [0, 128], sizes = [8, 128], strides = [1, 1]} : vector<8x384xf32> to vector<8x128xf32>
    %102 = vector.extract_strided_slice %92 {offsets = [0, 128], sizes = [8, 128], strides = [1, 1]} : vector<8x384xf32> to vector<8x128xf32>
    %103 = arith.addf %101, %102 : vector<8x128xf32>
    %104 = arith.negf %103 : vector<8x128xf32>
    %105 = math.exp %104 : vector<8x128xf32>
    %cst_37 = arith.constant 1.000000e+00 : f32
    %106 = vector.broadcast %cst_37 : f32 to vector<8x128xf32>
    %107 = arith.addf %106, %105 : vector<8x128xf32>
    %108 = arith.divf %106, %107 : vector<8x128xf32>
    %109 = vector.extract_strided_slice %90 {offsets = [0, 256], sizes = [8, 128], strides = [1, 1]} : vector<8x384xf32> to vector<8x128xf32>
    %110 = vector.extract_strided_slice %92 {offsets = [0, 256], sizes = [8, 128], strides = [1, 1]} : vector<8x384xf32> to vector<8x128xf32>
    %111 = arith.addf %110, %2 : vector<8x128xf32>
    %112 = arith.mulf %100, %111 : vector<8x128xf32>
    %113 = arith.addf %109, %112 : vector<8x128xf32>
    %114 = math.tanh %113 : vector<8x128xf32>
    %cst_38 = arith.constant 1.000000e+00 : f32
    %115 = vector.broadcast %cst_38 : f32 to vector<8x128xf32>
    %116 = arith.subf %115, %108 : vector<8x128xf32>
    %117 = arith.mulf %116, %114 : vector<8x128xf32>
    %118 = arith.mulf %108, %81 : vector<8x128xf32>
    %119 = arith.addf %117, %118 : vector<8x128xf32>
    %c8_i32_39 = arith.constant 8 : i32
    %120 = arith.muli %c2_i32, %c8_i32_39 : i32
    %c0_i32_40 = arith.constant 0 : i32
    %121 = arith.addi %c0_i32_40, %120 : i32
    %122 = tpu.assume_multiple %121, 8 : i32
    %123 = arith.index_cast %122 : i32 to index
    %c0_41 = arith.constant 0 : index
    %124 = vector.load %arg13[%123, %c0_41] : memref<64x128xf32, #tpu.memory_space<vmem>>, vector<8x128xf32>
    tpu.vector_store %arg13[%123, %c0_41], %119 {strides = array<i32>} : memref<64x128xf32, #tpu.memory_space<vmem>>, vector<8x128xf32>,
    %c3_i32 = arith.constant 3 : i32
    %c8_i32_42 = arith.constant 8 : i32
    %125 = arith.muli %c3_i32, %c8_i32_42 : i32
    %126 = tpu.assume_multiple %125, 8 : i32
    %127 = arith.index_cast %126 : i32 to index
    %c0_43 = arith.constant 0 : index
    %128 = vector.load %arg12[%127, %c0_43] : memref<64x384xf32, #tpu.memory_space<vmem>>, vector<8x384xf32>
    %c0_44 = arith.constant 0 : index
    %c0_45 = arith.constant 0 : index
    %129 = vector.load %arg2[%c0_44, %c0_45] : memref<128x384xf32, #tpu.memory_space<vmem>>, vector<128x384xf32>
    %cst_46 = arith.constant dense<0.000000e+00> : vector<8x384xf32>
    %130 = tpu.matmul %119, %129, %cst_46 {dimension_numbers = #tpu.dot_dimension_numbers<[1], [0], [0], [1], [0, 0, 1, 1], [], []>} : vector<8x128xf32>, vector<128x384xf32>, vector<8x384xf32> -> vector<8x384xf32>
    %131 = vector.extract_strided_slice %128 {offsets = [0, 0], sizes = [8, 128], strides = [1, 1]} : vector<8x384xf32> to vector<8x128xf32>
    %132 = vector.extract_strided_slice %130 {offsets = [0, 0], sizes = [8, 128], strides = [1, 1]} : vector<8x384xf32> to vector<8x128xf32>
    %133 = arith.addf %131, %132 : vector<8x128xf32>
    %134 = arith.negf %133 : vector<8x128xf32>
    %135 = math.exp %134 : vector<8x128xf32>
    %cst_47 = arith.constant 1.000000e+00 : f32
    %136 = vector.broadcast %cst_47 : f32 to vector<8x128xf32>
    %137 = arith.addf %136, %135 : vector<8x128xf32>
    %138 = arith.divf %136, %137 : vector<8x128xf32>
    %139 = vector.extract_strided_slice %128 {offsets = [0, 128], sizes = [8, 128], strides = [1, 1]} : vector<8x384xf32> to vector<8x128xf32>
    %140 = vector.extract_strided_slice %130 {offsets = [0, 128], sizes = [8, 128], strides = [1, 1]} : vector<8x384xf32> to vector<8x128xf32>
    %141 = arith.addf %139, %140 : vector<8x128xf32>
    %142 = arith.negf %141 : vector<8x128xf32>
    %143 = math.exp %142 : vector<8x128xf32>
    %cst_48 = arith.constant 1.000000e+00 : f32
    %144 = vector.broadcast %cst_48 : f32 to vector<8x128xf32>
    %145 = arith.addf %144, %143 : vector<8x128xf32>
    %146 = arith.divf %144, %145 : vector<8x128xf32>
    %147 = vector.extract_strided_slice %128 {offsets = [0, 256], sizes = [8, 128], strides = [1, 1]} : vector<8x384xf32> to vector<8x128xf32>
    %148 = vector.extract_strided_slice %130 {offsets = [0, 256], sizes = [8, 128], strides = [1, 1]} : vector<8x384xf32> to vector<8x128xf32>
    %149 = arith.addf %148, %2 : vector<8x128xf32>
    %150 = arith.mulf %138, %149 : vector<8x128xf32>
    %151 = arith.addf %147, %150 : vector<8x128xf32>
    %152 = math.tanh %151 : vector<8x128xf32>
    %cst_49 = arith.constant 1.000000e+00 : f32
    %153 = vector.broadcast %cst_49 : f32 to vector<8x128xf32>
    %154 = arith.subf %153, %146 : vector<8x128xf32>
    %155 = arith.mulf %154, %152 : vector<8x128xf32>
    %156 = arith.mulf %146, %119 : vector<8x128xf32>
    %157 = arith.addf %155, %156 : vector<8x128xf32>
    %c8_i32_50 = arith.constant 8 : i32
    %158 = arith.muli %c3_i32, %c8_i32_50 : i32
    %c0_i32_51 = arith.constant 0 : i32
    %159 = arith.addi %c0_i32_51, %158 : i32
    %160 = tpu.assume_multiple %159, 8 : i32
    %161 = arith.index_cast %160 : i32 to index
    %c0_52 = arith.constant 0 : index
    %162 = vector.load %arg13[%161, %c0_52] : memref<64x128xf32, #tpu.memory_space<vmem>>, vector<8x128xf32>
    tpu.vector_store %arg13[%161, %c0_52], %157 {strides = array<i32>} : memref<64x128xf32, #tpu.memory_space<vmem>>, vector<8x128xf32>,
    %c4_i32 = arith.constant 4 : i32
    %c8_i32_53 = arith.constant 8 : i32
    %163 = arith.muli %c4_i32, %c8_i32_53 : i32
    %164 = tpu.assume_multiple %163, 8 : i32
    %165 = arith.index_cast %164 : i32 to index
    %c0_54 = arith.constant 0 : index
    %166 = vector.load %arg12[%165, %c0_54] : memref<64x384xf32, #tpu.memory_space<vmem>>, vector<8x384xf32>
    %c0_55 = arith.constant 0 : index
    %c0_56 = arith.constant 0 : index
    %167 = vector.load %arg2[%c0_55, %c0_56] : memref<128x384xf32, #tpu.memory_space<vmem>>, vector<128x384xf32>
    %cst_57 = arith.constant dense<0.000000e+00> : vector<8x384xf32>
    %168 = tpu.matmul %157, %167, %cst_57 {dimension_numbers = #tpu.dot_dimension_numbers<[1], [0], [0], [1], [0, 0, 1, 1], [], []>} : vector<8x128xf32>, vector<128x384xf32>, vector<8x384xf32> -> vector<8x384xf32>
    %169 = vector.extract_strided_slice %166 {offsets = [0, 0], sizes = [8, 128], strides = [1, 1]} : vector<8x384xf32> to vector<8x128xf32>
    %170 = vector.extract_strided_slice %168 {offsets = [0, 0], sizes = [8, 128], strides = [1, 1]} : vector<8x384xf32> to vector<8x128xf32>
    %171 = arith.addf %169, %170 : vector<8x128xf32>
    %172 = arith.negf %171 : vector<8x128xf32>
    %173 = math.exp %172 : vector<8x128xf32>
    %cst_58 = arith.constant 1.000000e+00 : f32
    %174 = vector.broadcast %cst_58 : f32 to vector<8x128xf32>
    %175 = arith.addf %174, %173 : vector<8x128xf32>
    %176 = arith.divf %174, %175 : vector<8x128xf32>
    %177 = vector.extract_strided_slice %166 {offsets = [0, 128], sizes = [8, 128], strides = [1, 1]} : vector<8x384xf32> to vector<8x128xf32>
    %178 = vector.extract_strided_slice %168 {offsets = [0, 128], sizes = [8, 128], strides = [1, 1]} : vector<8x384xf32> to vector<8x128xf32>
    %179 = arith.addf %177, %178 : vector<8x128xf32>
    %180 = arith.negf %179 : vector<8x128xf32>
    %181 = math.exp %180 : vector<8x128xf32>
    %cst_59 = arith.constant 1.000000e+00 : f32
    %182 = vector.broadcast %cst_59 : f32 to vector<8x128xf32>
    %183 = arith.addf %182, %181 : vector<8x128xf32>
    %184 = arith.divf %182, %183 : vector<8x128xf32>
    %185 = vector.extract_strided_slice %166 {offsets = [0, 256], sizes = [8, 128], strides = [1, 1]} : vector<8x384xf32> to vector<8x128xf32>
    %186 = vector.extract_strided_slice %168 {offsets = [0, 256], sizes = [8, 128], strides = [1, 1]} : vector<8x384xf32> to vector<8x128xf32>
    %187 = arith.addf %186, %2 : vector<8x128xf32>
    %188 = arith.mulf %176, %187 : vector<8x128xf32>
    %189 = arith.addf %185, %188 : vector<8x128xf32>
    %190 = math.tanh %189 : vector<8x128xf32>
    %cst_60 = arith.constant 1.000000e+00 : f32
    %191 = vector.broadcast %cst_60 : f32 to vector<8x128xf32>
    %192 = arith.subf %191, %184 : vector<8x128xf32>
    %193 = arith.mulf %192, %190 : vector<8x128xf32>
    %194 = arith.mulf %184, %157 : vector<8x128xf32>
    %195 = arith.addf %193, %194 : vector<8x128xf32>
    %c8_i32_61 = arith.constant 8 : i32
    %196 = arith.muli %c4_i32, %c8_i32_61 : i32
    %c0_i32_62 = arith.constant 0 : i32
    %197 = arith.addi %c0_i32_62, %196 : i32
    %198 = tpu.assume_multiple %197, 8 : i32
    %199 = arith.index_cast %198 : i32 to index
    %c0_63 = arith.constant 0 : index
    %200 = vector.load %arg13[%199, %c0_63] : memref<64x128xf32, #tpu.memory_space<vmem>>, vector<8x128xf32>
    tpu.vector_store %arg13[%199, %c0_63], %195 {strides = array<i32>} : memref<64x128xf32, #tpu.memory_space<vmem>>, vector<8x128xf32>,
    %c5_i32 = arith.constant 5 : i32
    %c8_i32_64 = arith.constant 8 : i32
    %201 = arith.muli %c5_i32, %c8_i32_64 : i32
    %202 = tpu.assume_multiple %201, 8 : i32
    %203 = arith.index_cast %202 : i32 to index
    %c0_65 = arith.constant 0 : index
    %204 = vector.load %arg12[%203, %c0_65] : memref<64x384xf32, #tpu.memory_space<vmem>>, vector<8x384xf32>
    %c0_66 = arith.constant 0 : index
    %c0_67 = arith.constant 0 : index
    %205 = vector.load %arg2[%c0_66, %c0_67] : memref<128x384xf32, #tpu.memory_space<vmem>>, vector<128x384xf32>
    %cst_68 = arith.constant dense<0.000000e+00> : vector<8x384xf32>
    %206 = tpu.matmul %195, %205, %cst_68 {dimension_numbers = #tpu.dot_dimension_numbers<[1], [0], [0], [1], [0, 0, 1, 1], [], []>} : vector<8x128xf32>, vector<128x384xf32>, vector<8x384xf32> -> vector<8x384xf32>
    %207 = vector.extract_strided_slice %204 {offsets = [0, 0], sizes = [8, 128], strides = [1, 1]} : vector<8x384xf32> to vector<8x128xf32>
    %208 = vector.extract_strided_slice %206 {offsets = [0, 0], sizes = [8, 128], strides = [1, 1]} : vector<8x384xf32> to vector<8x128xf32>
    %209 = arith.addf %207, %208 : vector<8x128xf32>
    %210 = arith.negf %209 : vector<8x128xf32>
    %211 = math.exp %210 : vector<8x128xf32>
    %cst_69 = arith.constant 1.000000e+00 : f32
    %212 = vector.broadcast %cst_69 : f32 to vector<8x128xf32>
    %213 = arith.addf %212, %211 : vector<8x128xf32>
    %214 = arith.divf %212, %213 : vector<8x128xf32>
    %215 = vector.extract_strided_slice %204 {offsets = [0, 128], sizes = [8, 128], strides = [1, 1]} : vector<8x384xf32> to vector<8x128xf32>
    %216 = vector.extract_strided_slice %206 {offsets = [0, 128], sizes = [8, 128], strides = [1, 1]} : vector<8x384xf32> to vector<8x128xf32>
    %217 = arith.addf %215, %216 : vector<8x128xf32>
    %218 = arith.negf %217 : vector<8x128xf32>
    %219 = math.exp %218 : vector<8x128xf32>
    %cst_70 = arith.constant 1.000000e+00 : f32
    %220 = vector.broadcast %cst_70 : f32 to vector<8x128xf32>
    %221 = arith.addf %220, %219 : vector<8x128xf32>
    %222 = arith.divf %220, %221 : vector<8x128xf32>
    %223 = vector.extract_strided_slice %204 {offsets = [0, 256], sizes = [8, 128], strides = [1, 1]} : vector<8x384xf32> to vector<8x128xf32>
    %224 = vector.extract_strided_slice %206 {offsets = [0, 256], sizes = [8, 128], strides = [1, 1]} : vector<8x384xf32> to vector<8x128xf32>
    %225 = arith.addf %224, %2 : vector<8x128xf32>
    %226 = arith.mulf %214, %225 : vector<8x128xf32>
    %227 = arith.addf %223, %226 : vector<8x128xf32>
    %228 = math.tanh %227 : vector<8x128xf32>
    %cst_71 = arith.constant 1.000000e+00 : f32
    %229 = vector.broadcast %cst_71 : f32 to vector<8x128xf32>
    %230 = arith.subf %229, %222 : vector<8x128xf32>
    %231 = arith.mulf %230, %228 : vector<8x128xf32>
    %232 = arith.mulf %222, %195 : vector<8x128xf32>
    %233 = arith.addf %231, %232 : vector<8x128xf32>
    %c8_i32_72 = arith.constant 8 : i32
    %234 = arith.muli %c5_i32, %c8_i32_72 : i32
    %c0_i32_73 = arith.constant 0 : i32
    %235 = arith.addi %c0_i32_73, %234 : i32
    %236 = tpu.assume_multiple %235, 8 : i32
    %237 = arith.index_cast %236 : i32 to index
    %c0_74 = arith.constant 0 : index
    %238 = vector.load %arg13[%237, %c0_74] : memref<64x128xf32, #tpu.memory_space<vmem>>, vector<8x128xf32>
    tpu.vector_store %arg13[%237, %c0_74], %233 {strides = array<i32>} : memref<64x128xf32, #tpu.memory_space<vmem>>, vector<8x128xf32>,
    %c6_i32 = arith.constant 6 : i32
    %c8_i32_75 = arith.constant 8 : i32
    %239 = arith.muli %c6_i32, %c8_i32_75 : i32
    %240 = tpu.assume_multiple %239, 8 : i32
    %241 = arith.index_cast %240 : i32 to index
    %c0_76 = arith.constant 0 : index
    %242 = vector.load %arg12[%241, %c0_76] : memref<64x384xf32, #tpu.memory_space<vmem>>, vector<8x384xf32>
    %c0_77 = arith.constant 0 : index
    %c0_78 = arith.constant 0 : index
    %243 = vector.load %arg2[%c0_77, %c0_78] : memref<128x384xf32, #tpu.memory_space<vmem>>, vector<128x384xf32>
    %cst_79 = arith.constant dense<0.000000e+00> : vector<8x384xf32>
    %244 = tpu.matmul %233, %243, %cst_79 {dimension_numbers = #tpu.dot_dimension_numbers<[1], [0], [0], [1], [0, 0, 1, 1], [], []>} : vector<8x128xf32>, vector<128x384xf32>, vector<8x384xf32> -> vector<8x384xf32>
    %245 = vector.extract_strided_slice %242 {offsets = [0, 0], sizes = [8, 128], strides = [1, 1]} : vector<8x384xf32> to vector<8x128xf32>
    %246 = vector.extract_strided_slice %244 {offsets = [0, 0], sizes = [8, 128], strides = [1, 1]} : vector<8x384xf32> to vector<8x128xf32>
    %247 = arith.addf %245, %246 : vector<8x128xf32>
    %248 = arith.negf %247 : vector<8x128xf32>
    %249 = math.exp %248 : vector<8x128xf32>
    %cst_80 = arith.constant 1.000000e+00 : f32
    %250 = vector.broadcast %cst_80 : f32 to vector<8x128xf32>
    %251 = arith.addf %250, %249 : vector<8x128xf32>
    %252 = arith.divf %250, %251 : vector<8x128xf32>
    %253 = vector.extract_strided_slice %242 {offsets = [0, 128], sizes = [8, 128], strides = [1, 1]} : vector<8x384xf32> to vector<8x128xf32>
    %254 = vector.extract_strided_slice %244 {offsets = [0, 128], sizes = [8, 128], strides = [1, 1]} : vector<8x384xf32> to vector<8x128xf32>
    %255 = arith.addf %253, %254 : vector<8x128xf32>
    %256 = arith.negf %255 : vector<8x128xf32>
    %257 = math.exp %256 : vector<8x128xf32>
    %cst_81 = arith.constant 1.000000e+00 : f32
    %258 = vector.broadcast %cst_81 : f32 to vector<8x128xf32>
    %259 = arith.addf %258, %257 : vector<8x128xf32>
    %260 = arith.divf %258, %259 : vector<8x128xf32>
    %261 = vector.extract_strided_slice %242 {offsets = [0, 256], sizes = [8, 128], strides = [1, 1]} : vector<8x384xf32> to vector<8x128xf32>
    %262 = vector.extract_strided_slice %244 {offsets = [0, 256], sizes = [8, 128], strides = [1, 1]} : vector<8x384xf32> to vector<8x128xf32>
    %263 = arith.addf %262, %2 : vector<8x128xf32>
    %264 = arith.mulf %252, %263 : vector<8x128xf32>
    %265 = arith.addf %261, %264 : vector<8x128xf32>
    %266 = math.tanh %265 : vector<8x128xf32>
    %cst_82 = arith.constant 1.000000e+00 : f32
    %267 = vector.broadcast %cst_82 : f32 to vector<8x128xf32>
    %268 = arith.subf %267, %260 : vector<8x128xf32>
    %269 = arith.mulf %268, %266 : vector<8x128xf32>
    %270 = arith.mulf %260, %233 : vector<8x128xf32>
    %271 = arith.addf %269, %270 : vector<8x128xf32>
    %c8_i32_83 = arith.constant 8 : i32
    %272 = arith.muli %c6_i32, %c8_i32_83 : i32
    %c0_i32_84 = arith.constant 0 : i32
    %273 = arith.addi %c0_i32_84, %272 : i32
    %274 = tpu.assume_multiple %273, 8 : i32
    %275 = arith.index_cast %274 : i32 to index
    %c0_85 = arith.constant 0 : index
    %276 = vector.load %arg13[%275, %c0_85] : memref<64x128xf32, #tpu.memory_space<vmem>>, vector<8x128xf32>
    tpu.vector_store %arg13[%275, %c0_85], %271 {strides = array<i32>} : memref<64x128xf32, #tpu.memory_space<vmem>>, vector<8x128xf32>,
    %c7_i32 = arith.constant 7 : i32
    %c8_i32_86 = arith.constant 8 : i32
    %277 = arith.muli %c7_i32, %c8_i32_86 : i32
    %278 = tpu.assume_multiple %277, 8 : i32
    %279 = arith.index_cast %278 : i32 to index
    %c0_87 = arith.constant 0 : index
    %280 = vector.load %arg12[%279, %c0_87] : memref<64x384xf32, #tpu.memory_space<vmem>>, vector<8x384xf32>
    %c0_88 = arith.constant 0 : index
    %c0_89 = arith.constant 0 : index
    %281 = vector.load %arg2[%c0_88, %c0_89] : memref<128x384xf32, #tpu.memory_space<vmem>>, vector<128x384xf32>
    %cst_90 = arith.constant dense<0.000000e+00> : vector<8x384xf32>
    %282 = tpu.matmul %271, %281, %cst_90 {dimension_numbers = #tpu.dot_dimension_numbers<[1], [0], [0], [1], [0, 0, 1, 1], [], []>} : vector<8x128xf32>, vector<128x384xf32>, vector<8x384xf32> -> vector<8x384xf32>
    %283 = vector.extract_strided_slice %280 {offsets = [0, 0], sizes = [8, 128], strides = [1, 1]} : vector<8x384xf32> to vector<8x128xf32>
    %284 = vector.extract_strided_slice %282 {offsets = [0, 0], sizes = [8, 128], strides = [1, 1]} : vector<8x384xf32> to vector<8x128xf32>
    %285 = arith.addf %283, %284 : vector<8x128xf32>
    %286 = arith.negf %285 : vector<8x128xf32>
    %287 = math.exp %286 : vector<8x128xf32>
    %cst_91 = arith.constant 1.000000e+00 : f32
    %288 = vector.broadcast %cst_91 : f32 to vector<8x128xf32>
    %289 = arith.addf %288, %287 : vector<8x128xf32>
    %290 = arith.divf %288, %289 : vector<8x128xf32>
    %291 = vector.extract_strided_slice %280 {offsets = [0, 128], sizes = [8, 128], strides = [1, 1]} : vector<8x384xf32> to vector<8x128xf32>
    %292 = vector.extract_strided_slice %282 {offsets = [0, 128], sizes = [8, 128], strides = [1, 1]} : vector<8x384xf32> to vector<8x128xf32>
    %293 = arith.addf %291, %292 : vector<8x128xf32>
    %294 = arith.negf %293 : vector<8x128xf32>
    %295 = math.exp %294 : vector<8x128xf32>
    %cst_92 = arith.constant 1.000000e+00 : f32
    %296 = vector.broadcast %cst_92 : f32 to vector<8x128xf32>
    %297 = arith.addf %296, %295 : vector<8x128xf32>
    %298 = arith.divf %296, %297 : vector<8x128xf32>
    %299 = vector.extract_strided_slice %280 {offsets = [0, 256], sizes = [8, 128], strides = [1, 1]} : vector<8x384xf32> to vector<8x128xf32>
    %300 = vector.extract_strided_slice %282 {offsets = [0, 256], sizes = [8, 128], strides = [1, 1]} : vector<8x384xf32> to vector<8x128xf32>
    %301 = arith.addf %300, %2 : vector<8x128xf32>
    %302 = arith.mulf %290, %301 : vector<8x128xf32>
    %303 = arith.addf %299, %302 : vector<8x128xf32>
    %304 = math.tanh %303 : vector<8x128xf32>
    %cst_93 = arith.constant 1.000000e+00 : f32
    %305 = vector.broadcast %cst_93 : f32 to vector<8x128xf32>
    %306 = arith.subf %305, %298 : vector<8x128xf32>
    %307 = arith.mulf %306, %304 : vector<8x128xf32>
    %308 = arith.mulf %298, %271 : vector<8x128xf32>
    %309 = arith.addf %307, %308 : vector<8x128xf32>
    %c8_i32_94 = arith.constant 8 : i32
    %310 = arith.muli %c7_i32, %c8_i32_94 : i32
    %c0_i32_95 = arith.constant 0 : i32
    %311 = arith.addi %c0_i32_95, %310 : i32
    %312 = tpu.assume_multiple %311, 8 : i32
    %313 = arith.index_cast %312 : i32 to index
    %c0_96 = arith.constant 0 : index
    %314 = vector.load %arg13[%313, %c0_96] : memref<64x128xf32, #tpu.memory_space<vmem>>, vector<8x128xf32>
    tpu.vector_store %arg13[%313, %c0_96], %309 {strides = array<i32>} : memref<64x128xf32, #tpu.memory_space<vmem>>, vector<8x128xf32>,
    %c8_i32_97 = arith.constant 8 : i32
    %c0_98 = arith.constant 0 : index
    %c0_99 = arith.constant 0 : index
    %315 = vector.load %arg8[%c0_98, %c0_99] : memref<1x128xf32, #tpu.memory_space<vmem>>, vector<1x128xf32>
    %316 = vector.shape_cast %315 : vector<1x128xf32> to vector<1x128xf32>
    %317 = vector.broadcast %316 : vector<1x128xf32> to vector<8x128xf32>
    %cst_100 = arith.constant 0.000000e+00 : f32
    %318 = vector.broadcast %cst_100 : f32 to vector<8x128xf32>
    %c0_101 = arith.constant 0 : index
    %c0_102 = arith.constant 0 : index
    %319 = vector.load %arg13[%c0_101, %c0_102] : memref<64x128xf32, #tpu.memory_space<vmem>>, vector<64x128xf32>
    %c0_103 = arith.constant 0 : index
    %c0_104 = arith.constant 0 : index
    %320 = vector.load %arg5[%c0_103, %c0_104] : memref<128x384xf32, #tpu.memory_space<vmem>>, vector<128x384xf32>
    %cst_105 = arith.constant dense<0.000000e+00> : vector<64x384xf32>
    %321 = tpu.matmul %319, %320, %cst_105 {dimension_numbers = #tpu.dot_dimension_numbers<[1], [0], [0], [1], [0, 0, 1, 1], [], []>} : vector<64x128xf32>, vector<128x384xf32>, vector<64x384xf32> -> vector<64x384xf32>
    %c0_106 = arith.constant 0 : index
    %c0_107 = arith.constant 0 : index
    %322 = vector.load %arg7[%c0_106, %c0_107] : memref<1x384xf32, #tpu.memory_space<vmem>>, vector<1x384xf32>
    %323 = vector.broadcast %322 : vector<1x384xf32> to vector<64x384xf32>
    %324 = arith.addf %321, %323 : vector<64x384xf32>
    %c0_108 = arith.constant 0 : index
    %c0_109 = arith.constant 0 : index
    %325 = vector.load %arg12[%c0_108, %c0_109] : memref<64x384xf32, #tpu.memory_space<vmem>>, vector<64x384xf32>
    tpu.vector_store %arg12[%c0_108, %c0_109], %324 {strides = array<i32>} : memref<64x384xf32, #tpu.memory_space<vmem>>, vector<64x384xf32>,
    %c0_i32_110 = arith.constant 0 : i32
    %c8_i32_111 = arith.constant 8 : i32
    %326 = arith.muli %c0_i32_110, %c8_i32_111 : i32
    %327 = tpu.assume_multiple %326, 8 : i32
    %328 = arith.index_cast %327 : i32 to index
    %c0_112 = arith.constant 0 : index
    %329 = vector.load %arg12[%328, %c0_112] : memref<64x384xf32, #tpu.memory_space<vmem>>, vector<8x384xf32>
    %c0_113 = arith.constant 0 : index
    %c0_114 = arith.constant 0 : index
    %330 = vector.load %arg6[%c0_113, %c0_114] : memref<128x384xf32, #tpu.memory_space<vmem>>, vector<128x384xf32>
    %cst_115 = arith.constant dense<0.000000e+00> : vector<8x384xf32>
    %331 = tpu.matmul %318, %330, %cst_115 {dimension_numbers = #tpu.dot_dimension_numbers<[1], [0], [0], [1], [0, 0, 1, 1], [], []>} : vector<8x128xf32>, vector<128x384xf32>, vector<8x384xf32> -> vector<8x384xf32>
    %332 = vector.extract_strided_slice %329 {offsets = [0, 0], sizes = [8, 128], strides = [1, 1]} : vector<8x384xf32> to vector<8x128xf32>
    %333 = vector.extract_strided_slice %331 {offsets = [0, 0], sizes = [8, 128], strides = [1, 1]} : vector<8x384xf32> to vector<8x128xf32>
    %334 = arith.addf %332, %333 : vector<8x128xf32>
    %335 = arith.negf %334 : vector<8x128xf32>
    %336 = math.exp %335 : vector<8x128xf32>
    %cst_116 = arith.constant 1.000000e+00 : f32
    %337 = vector.broadcast %cst_116 : f32 to vector<8x128xf32>
    %338 = arith.addf %337, %336 : vector<8x128xf32>
    %339 = arith.divf %337, %338 : vector<8x128xf32>
    %340 = vector.extract_strided_slice %329 {offsets = [0, 128], sizes = [8, 128], strides = [1, 1]} : vector<8x384xf32> to vector<8x128xf32>
    %341 = vector.extract_strided_slice %331 {offsets = [0, 128], sizes = [8, 128], strides = [1, 1]} : vector<8x384xf32> to vector<8x128xf32>
    %342 = arith.addf %340, %341 : vector<8x128xf32>
    %343 = arith.negf %342 : vector<8x128xf32>
    %344 = math.exp %343 : vector<8x128xf32>
    %cst_117 = arith.constant 1.000000e+00 : f32
    %345 = vector.broadcast %cst_117 : f32 to vector<8x128xf32>
    %346 = arith.addf %345, %344 : vector<8x128xf32>
    %347 = arith.divf %345, %346 : vector<8x128xf32>
    %348 = vector.extract_strided_slice %329 {offsets = [0, 256], sizes = [8, 128], strides = [1, 1]} : vector<8x384xf32> to vector<8x128xf32>
    %349 = vector.extract_strided_slice %331 {offsets = [0, 256], sizes = [8, 128], strides = [1, 1]} : vector<8x384xf32> to vector<8x128xf32>
    %350 = arith.addf %349, %317 : vector<8x128xf32>
    %351 = arith.mulf %339, %350 : vector<8x128xf32>
    %352 = arith.addf %348, %351 : vector<8x128xf32>
    %353 = math.tanh %352 : vector<8x128xf32>
    %cst_118 = arith.constant 1.000000e+00 : f32
    %354 = vector.broadcast %cst_118 : f32 to vector<8x128xf32>
    %355 = arith.subf %354, %347 : vector<8x128xf32>
    %356 = arith.mulf %355, %353 : vector<8x128xf32>
    %357 = arith.mulf %347, %318 : vector<8x128xf32>
    %358 = arith.addf %356, %357 : vector<8x128xf32>
    %c1_i32_119 = arith.constant 1 : i32
    %c8_i32_120 = arith.constant 8 : i32
    %359 = arith.muli %c1_i32_119, %c8_i32_120 : i32
    %360 = tpu.assume_multiple %359, 8 : i32
    %361 = arith.index_cast %360 : i32 to index
    %c0_121 = arith.constant 0 : index
    %362 = vector.load %arg12[%361, %c0_121] : memref<64x384xf32, #tpu.memory_space<vmem>>, vector<8x384xf32>
    %c0_122 = arith.constant 0 : index
    %c0_123 = arith.constant 0 : index
    %363 = vector.load %arg6[%c0_122, %c0_123] : memref<128x384xf32, #tpu.memory_space<vmem>>, vector<128x384xf32>
    %cst_124 = arith.constant dense<0.000000e+00> : vector<8x384xf32>
    %364 = tpu.matmul %358, %363, %cst_124 {dimension_numbers = #tpu.dot_dimension_numbers<[1], [0], [0], [1], [0, 0, 1, 1], [], []>} : vector<8x128xf32>, vector<128x384xf32>, vector<8x384xf32> -> vector<8x384xf32>
    %365 = vector.extract_strided_slice %362 {offsets = [0, 0], sizes = [8, 128], strides = [1, 1]} : vector<8x384xf32> to vector<8x128xf32>
    %366 = vector.extract_strided_slice %364 {offsets = [0, 0], sizes = [8, 128], strides = [1, 1]} : vector<8x384xf32> to vector<8x128xf32>
    %367 = arith.addf %365, %366 : vector<8x128xf32>
    %368 = arith.negf %367 : vector<8x128xf32>
    %369 = math.exp %368 : vector<8x128xf32>
    %cst_125 = arith.constant 1.000000e+00 : f32
    %370 = vector.broadcast %cst_125 : f32 to vector<8x128xf32>
    %371 = arith.addf %370, %369 : vector<8x128xf32>
    %372 = arith.divf %370, %371 : vector<8x128xf32>
    %373 = vector.extract_strided_slice %362 {offsets = [0, 128], sizes = [8, 128], strides = [1, 1]} : vector<8x384xf32> to vector<8x128xf32>
    %374 = vector.extract_strided_slice %364 {offsets = [0, 128], sizes = [8, 128], strides = [1, 1]} : vector<8x384xf32> to vector<8x128xf32>
    %375 = arith.addf %373, %374 : vector<8x128xf32>
    %376 = arith.negf %375 : vector<8x128xf32>
    %377 = math.exp %376 : vector<8x128xf32>
    %cst_126 = arith.constant 1.000000e+00 : f32
    %378 = vector.broadcast %cst_126 : f32 to vector<8x128xf32>
    %379 = arith.addf %378, %377 : vector<8x128xf32>
    %380 = arith.divf %378, %379 : vector<8x128xf32>
    %381 = vector.extract_strided_slice %362 {offsets = [0, 256], sizes = [8, 128], strides = [1, 1]} : vector<8x384xf32> to vector<8x128xf32>
    %382 = vector.extract_strided_slice %364 {offsets = [0, 256], sizes = [8, 128], strides = [1, 1]} : vector<8x384xf32> to vector<8x128xf32>
    %383 = arith.addf %382, %317 : vector<8x128xf32>
    %384 = arith.mulf %372, %383 : vector<8x128xf32>
    %385 = arith.addf %381, %384 : vector<8x128xf32>
    %386 = math.tanh %385 : vector<8x128xf32>
    %cst_127 = arith.constant 1.000000e+00 : f32
    %387 = vector.broadcast %cst_127 : f32 to vector<8x128xf32>
    %388 = arith.subf %387, %380 : vector<8x128xf32>
    %389 = arith.mulf %388, %386 : vector<8x128xf32>
    %390 = arith.mulf %380, %358 : vector<8x128xf32>
    %391 = arith.addf %389, %390 : vector<8x128xf32>
    %c2_i32_128 = arith.constant 2 : i32
    %c8_i32_129 = arith.constant 8 : i32
    %392 = arith.muli %c2_i32_128, %c8_i32_129 : i32
    %393 = tpu.assume_multiple %392, 8 : i32
    %394 = arith.index_cast %393 : i32 to index
    %c0_130 = arith.constant 0 : index
    %395 = vector.load %arg12[%394, %c0_130] : memref<64x384xf32, #tpu.memory_space<vmem>>, vector<8x384xf32>
    %c0_131 = arith.constant 0 : index
    %c0_132 = arith.constant 0 : index
    %396 = vector.load %arg6[%c0_131, %c0_132] : memref<128x384xf32, #tpu.memory_space<vmem>>, vector<128x384xf32>
    %cst_133 = arith.constant dense<0.000000e+00> : vector<8x384xf32>
    %397 = tpu.matmul %391, %396, %cst_133 {dimension_numbers = #tpu.dot_dimension_numbers<[1], [0], [0], [1], [0, 0, 1, 1], [], []>} : vector<8x128xf32>, vector<128x384xf32>, vector<8x384xf32> -> vector<8x384xf32>
    %398 = vector.extract_strided_slice %395 {offsets = [0, 0], sizes = [8, 128], strides = [1, 1]} : vector<8x384xf32> to vector<8x128xf32>
    %399 = vector.extract_strided_slice %397 {offsets = [0, 0], sizes = [8, 128], strides = [1, 1]} : vector<8x384xf32> to vector<8x128xf32>
    %400 = arith.addf %398, %399 : vector<8x128xf32>
    %401 = arith.negf %400 : vector<8x128xf32>
    %402 = math.exp %401 : vector<8x128xf32>
    %cst_134 = arith.constant 1.000000e+00 : f32
    %403 = vector.broadcast %cst_134 : f32 to vector<8x128xf32>
    %404 = arith.addf %403, %402 : vector<8x128xf32>
    %405 = arith.divf %403, %404 : vector<8x128xf32>
    %406 = vector.extract_strided_slice %395 {offsets = [0, 128], sizes = [8, 128], strides = [1, 1]} : vector<8x384xf32> to vector<8x128xf32>
    %407 = vector.extract_strided_slice %397 {offsets = [0, 128], sizes = [8, 128], strides = [1, 1]} : vector<8x384xf32> to vector<8x128xf32>
    %408 = arith.addf %406, %407 : vector<8x128xf32>
    %409 = arith.negf %408 : vector<8x128xf32>
    %410 = math.exp %409 : vector<8x128xf32>
    %cst_135 = arith.constant 1.000000e+00 : f32
    %411 = vector.broadcast %cst_135 : f32 to vector<8x128xf32>
    %412 = arith.addf %411, %410 : vector<8x128xf32>
    %413 = arith.divf %411, %412 : vector<8x128xf32>
    %414 = vector.extract_strided_slice %395 {offsets = [0, 256], sizes = [8, 128], strides = [1, 1]} : vector<8x384xf32> to vector<8x128xf32>
    %415 = vector.extract_strided_slice %397 {offsets = [0, 256], sizes = [8, 128], strides = [1, 1]} : vector<8x384xf32> to vector<8x128xf32>
    %416 = arith.addf %415, %317 : vector<8x128xf32>
    %417 = arith.mulf %405, %416 : vector<8x128xf32>
    %418 = arith.addf %414, %417 : vector<8x128xf32>
    %419 = math.tanh %418 : vector<8x128xf32>
    %cst_136 = arith.constant 1.000000e+00 : f32
    %420 = vector.broadcast %cst_136 : f32 to vector<8x128xf32>
    %421 = arith.subf %420, %413 : vector<8x128xf32>
    %422 = arith.mulf %421, %419 : vector<8x128xf32>
    %423 = arith.mulf %413, %391 : vector<8x128xf32>
    %424 = arith.addf %422, %423 : vector<8x128xf32>
    %c3_i32_137 = arith.constant 3 : i32
    %c8_i32_138 = arith.constant 8 : i32
    %425 = arith.muli %c3_i32_137, %c8_i32_138 : i32
    %426 = tpu.assume_multiple %425, 8 : i32
    %427 = arith.index_cast %426 : i32 to index
    %c0_139 = arith.constant 0 : index
    %428 = vector.load %arg12[%427, %c0_139] : memref<64x384xf32, #tpu.memory_space<vmem>>, vector<8x384xf32>
    %c0_140 = arith.constant 0 : index
    %c0_141 = arith.constant 0 : index
    %429 = vector.load %arg6[%c0_140, %c0_141] : memref<128x384xf32, #tpu.memory_space<vmem>>, vector<128x384xf32>
    %cst_142 = arith.constant dense<0.000000e+00> : vector<8x384xf32>
    %430 = tpu.matmul %424, %429, %cst_142 {dimension_numbers = #tpu.dot_dimension_numbers<[1], [0], [0], [1], [0, 0, 1, 1], [], []>} : vector<8x128xf32>, vector<128x384xf32>, vector<8x384xf32> -> vector<8x384xf32>
    %431 = vector.extract_strided_slice %428 {offsets = [0, 0], sizes = [8, 128], strides = [1, 1]} : vector<8x384xf32> to vector<8x128xf32>
    %432 = vector.extract_strided_slice %430 {offsets = [0, 0], sizes = [8, 128], strides = [1, 1]} : vector<8x384xf32> to vector<8x128xf32>
    %433 = arith.addf %431, %432 : vector<8x128xf32>
    %434 = arith.negf %433 : vector<8x128xf32>
    %435 = math.exp %434 : vector<8x128xf32>
    %cst_143 = arith.constant 1.000000e+00 : f32
    %436 = vector.broadcast %cst_143 : f32 to vector<8x128xf32>
    %437 = arith.addf %436, %435 : vector<8x128xf32>
    %438 = arith.divf %436, %437 : vector<8x128xf32>
    %439 = vector.extract_strided_slice %428 {offsets = [0, 128], sizes = [8, 128], strides = [1, 1]} : vector<8x384xf32> to vector<8x128xf32>
    %440 = vector.extract_strided_slice %430 {offsets = [0, 128], sizes = [8, 128], strides = [1, 1]} : vector<8x384xf32> to vector<8x128xf32>
    %441 = arith.addf %439, %440 : vector<8x128xf32>
    %442 = arith.negf %441 : vector<8x128xf32>
    %443 = math.exp %442 : vector<8x128xf32>
    %cst_144 = arith.constant 1.000000e+00 : f32
    %444 = vector.broadcast %cst_144 : f32 to vector<8x128xf32>
    %445 = arith.addf %444, %443 : vector<8x128xf32>
    %446 = arith.divf %444, %445 : vector<8x128xf32>
    %447 = vector.extract_strided_slice %428 {offsets = [0, 256], sizes = [8, 128], strides = [1, 1]} : vector<8x384xf32> to vector<8x128xf32>
    %448 = vector.extract_strided_slice %430 {offsets = [0, 256], sizes = [8, 128], strides = [1, 1]} : vector<8x384xf32> to vector<8x128xf32>
    %449 = arith.addf %448, %317 : vector<8x128xf32>
    %450 = arith.mulf %438, %449 : vector<8x128xf32>
    %451 = arith.addf %447, %450 : vector<8x128xf32>
    %452 = math.tanh %451 : vector<8x128xf32>
    %cst_145 = arith.constant 1.000000e+00 : f32
    %453 = vector.broadcast %cst_145 : f32 to vector<8x128xf32>
    %454 = arith.subf %453, %446 : vector<8x128xf32>
    %455 = arith.mulf %454, %452 : vector<8x128xf32>
    %456 = arith.mulf %446, %424 : vector<8x128xf32>
    %457 = arith.addf %455, %456 : vector<8x128xf32>
    %c4_i32_146 = arith.constant 4 : i32
    %c8_i32_147 = arith.constant 8 : i32
    %458 = arith.muli %c4_i32_146, %c8_i32_147 : i32
    %459 = tpu.assume_multiple %458, 8 : i32
    %460 = arith.index_cast %459 : i32 to index
    %c0_148 = arith.constant 0 : index
    %461 = vector.load %arg12[%460, %c0_148] : memref<64x384xf32, #tpu.memory_space<vmem>>, vector<8x384xf32>
    %c0_149 = arith.constant 0 : index
    %c0_150 = arith.constant 0 : index
    %462 = vector.load %arg6[%c0_149, %c0_150] : memref<128x384xf32, #tpu.memory_space<vmem>>, vector<128x384xf32>
    %cst_151 = arith.constant dense<0.000000e+00> : vector<8x384xf32>
    %463 = tpu.matmul %457, %462, %cst_151 {dimension_numbers = #tpu.dot_dimension_numbers<[1], [0], [0], [1], [0, 0, 1, 1], [], []>} : vector<8x128xf32>, vector<128x384xf32>, vector<8x384xf32> -> vector<8x384xf32>
    %464 = vector.extract_strided_slice %461 {offsets = [0, 0], sizes = [8, 128], strides = [1, 1]} : vector<8x384xf32> to vector<8x128xf32>
    %465 = vector.extract_strided_slice %463 {offsets = [0, 0], sizes = [8, 128], strides = [1, 1]} : vector<8x384xf32> to vector<8x128xf32>
    %466 = arith.addf %464, %465 : vector<8x128xf32>
    %467 = arith.negf %466 : vector<8x128xf32>
    %468 = math.exp %467 : vector<8x128xf32>
    %cst_152 = arith.constant 1.000000e+00 : f32
    %469 = vector.broadcast %cst_152 : f32 to vector<8x128xf32>
    %470 = arith.addf %469, %468 : vector<8x128xf32>
    %471 = arith.divf %469, %470 : vector<8x128xf32>
    %472 = vector.extract_strided_slice %461 {offsets = [0, 128], sizes = [8, 128], strides = [1, 1]} : vector<8x384xf32> to vector<8x128xf32>
    %473 = vector.extract_strided_slice %463 {offsets = [0, 128], sizes = [8, 128], strides = [1, 1]} : vector<8x384xf32> to vector<8x128xf32>
    %474 = arith.addf %472, %473 : vector<8x128xf32>
    %475 = arith.negf %474 : vector<8x128xf32>
    %476 = math.exp %475 : vector<8x128xf32>
    %cst_153 = arith.constant 1.000000e+00 : f32
    %477 = vector.broadcast %cst_153 : f32 to vector<8x128xf32>
    %478 = arith.addf %477, %476 : vector<8x128xf32>
    %479 = arith.divf %477, %478 : vector<8x128xf32>
    %480 = vector.extract_strided_slice %461 {offsets = [0, 256], sizes = [8, 128], strides = [1, 1]} : vector<8x384xf32> to vector<8x128xf32>
    %481 = vector.extract_strided_slice %463 {offsets = [0, 256], sizes = [8, 128], strides = [1, 1]} : vector<8x384xf32> to vector<8x128xf32>
    %482 = arith.addf %481, %317 : vector<8x128xf32>
    %483 = arith.mulf %471, %482 : vector<8x128xf32>
    %484 = arith.addf %480, %483 : vector<8x128xf32>
    %485 = math.tanh %484 : vector<8x128xf32>
    %cst_154 = arith.constant 1.000000e+00 : f32
    %486 = vector.broadcast %cst_154 : f32 to vector<8x128xf32>
    %487 = arith.subf %486, %479 : vector<8x128xf32>
    %488 = arith.mulf %487, %485 : vector<8x128xf32>
    %489 = arith.mulf %479, %457 : vector<8x128xf32>
    %490 = arith.addf %488, %489 : vector<8x128xf32>
    %c5_i32_155 = arith.constant 5 : i32
    %c8_i32_156 = arith.constant 8 : i32
    %491 = arith.muli %c5_i32_155, %c8_i32_156 : i32
    %492 = tpu.assume_multiple %491, 8 : i32
    %493 = arith.index_cast %492 : i32 to index
    %c0_157 = arith.constant 0 : index
    %494 = vector.load %arg12[%493, %c0_157] : memref<64x384xf32, #tpu.memory_space<vmem>>, vector<8x384xf32>
    %c0_158 = arith.constant 0 : index
    %c0_159 = arith.constant 0 : index
    %495 = vector.load %arg6[%c0_158, %c0_159] : memref<128x384xf32, #tpu.memory_space<vmem>>, vector<128x384xf32>
    %cst_160 = arith.constant dense<0.000000e+00> : vector<8x384xf32>
    %496 = tpu.matmul %490, %495, %cst_160 {dimension_numbers = #tpu.dot_dimension_numbers<[1], [0], [0], [1], [0, 0, 1, 1], [], []>} : vector<8x128xf32>, vector<128x384xf32>, vector<8x384xf32> -> vector<8x384xf32>
    %497 = vector.extract_strided_slice %494 {offsets = [0, 0], sizes = [8, 128], strides = [1, 1]} : vector<8x384xf32> to vector<8x128xf32>
    %498 = vector.extract_strided_slice %496 {offsets = [0, 0], sizes = [8, 128], strides = [1, 1]} : vector<8x384xf32> to vector<8x128xf32>
    %499 = arith.addf %497, %498 : vector<8x128xf32>
    %500 = arith.negf %499 : vector<8x128xf32>
    %501 = math.exp %500 : vector<8x128xf32>
    %cst_161 = arith.constant 1.000000e+00 : f32
    %502 = vector.broadcast %cst_161 : f32 to vector<8x128xf32>
    %503 = arith.addf %502, %501 : vector<8x128xf32>
    %504 = arith.divf %502, %503 : vector<8x128xf32>
    %505 = vector.extract_strided_slice %494 {offsets = [0, 128], sizes = [8, 128], strides = [1, 1]} : vector<8x384xf32> to vector<8x128xf32>
    %506 = vector.extract_strided_slice %496 {offsets = [0, 128], sizes = [8, 128], strides = [1, 1]} : vector<8x384xf32> to vector<8x128xf32>
    %507 = arith.addf %505, %506 : vector<8x128xf32>
    %508 = arith.negf %507 : vector<8x128xf32>
    %509 = math.exp %508 : vector<8x128xf32>
    %cst_162 = arith.constant 1.000000e+00 : f32
    %510 = vector.broadcast %cst_162 : f32 to vector<8x128xf32>
    %511 = arith.addf %510, %509 : vector<8x128xf32>
    %512 = arith.divf %510, %511 : vector<8x128xf32>
    %513 = vector.extract_strided_slice %494 {offsets = [0, 256], sizes = [8, 128], strides = [1, 1]} : vector<8x384xf32> to vector<8x128xf32>
    %514 = vector.extract_strided_slice %496 {offsets = [0, 256], sizes = [8, 128], strides = [1, 1]} : vector<8x384xf32> to vector<8x128xf32>
    %515 = arith.addf %514, %317 : vector<8x128xf32>
    %516 = arith.mulf %504, %515 : vector<8x128xf32>
    %517 = arith.addf %513, %516 : vector<8x128xf32>
    %518 = math.tanh %517 : vector<8x128xf32>
    %cst_163 = arith.constant 1.000000e+00 : f32
    %519 = vector.broadcast %cst_163 : f32 to vector<8x128xf32>
    %520 = arith.subf %519, %512 : vector<8x128xf32>
    %521 = arith.mulf %520, %518 : vector<8x128xf32>
    %522 = arith.mulf %512, %490 : vector<8x128xf32>
    %523 = arith.addf %521, %522 : vector<8x128xf32>
    %c6_i32_164 = arith.constant 6 : i32
    %c8_i32_165 = arith.constant 8 : i32
    %524 = arith.muli %c6_i32_164, %c8_i32_165 : i32
    %525 = tpu.assume_multiple %524, 8 : i32
    %526 = arith.index_cast %525 : i32 to index
    %c0_166 = arith.constant 0 : index
    %527 = vector.load %arg12[%526, %c0_166] : memref<64x384xf32, #tpu.memory_space<vmem>>, vector<8x384xf32>
    %c0_167 = arith.constant 0 : index
    %c0_168 = arith.constant 0 : index
    %528 = vector.load %arg6[%c0_167, %c0_168] : memref<128x384xf32, #tpu.memory_space<vmem>>, vector<128x384xf32>
    %cst_169 = arith.constant dense<0.000000e+00> : vector<8x384xf32>
    %529 = tpu.matmul %523, %528, %cst_169 {dimension_numbers = #tpu.dot_dimension_numbers<[1], [0], [0], [1], [0, 0, 1, 1], [], []>} : vector<8x128xf32>, vector<128x384xf32>, vector<8x384xf32> -> vector<8x384xf32>
    %530 = vector.extract_strided_slice %527 {offsets = [0, 0], sizes = [8, 128], strides = [1, 1]} : vector<8x384xf32> to vector<8x128xf32>
    %531 = vector.extract_strided_slice %529 {offsets = [0, 0], sizes = [8, 128], strides = [1, 1]} : vector<8x384xf32> to vector<8x128xf32>
    %532 = arith.addf %530, %531 : vector<8x128xf32>
    %533 = arith.negf %532 : vector<8x128xf32>
    %534 = math.exp %533 : vector<8x128xf32>
    %cst_170 = arith.constant 1.000000e+00 : f32
    %535 = vector.broadcast %cst_170 : f32 to vector<8x128xf32>
    %536 = arith.addf %535, %534 : vector<8x128xf32>
    %537 = arith.divf %535, %536 : vector<8x128xf32>
    %538 = vector.extract_strided_slice %527 {offsets = [0, 128], sizes = [8, 128], strides = [1, 1]} : vector<8x384xf32> to vector<8x128xf32>
    %539 = vector.extract_strided_slice %529 {offsets = [0, 128], sizes = [8, 128], strides = [1, 1]} : vector<8x384xf32> to vector<8x128xf32>
    %540 = arith.addf %538, %539 : vector<8x128xf32>
    %541 = arith.negf %540 : vector<8x128xf32>
    %542 = math.exp %541 : vector<8x128xf32>
    %cst_171 = arith.constant 1.000000e+00 : f32
    %543 = vector.broadcast %cst_171 : f32 to vector<8x128xf32>
    %544 = arith.addf %543, %542 : vector<8x128xf32>
    %545 = arith.divf %543, %544 : vector<8x128xf32>
    %546 = vector.extract_strided_slice %527 {offsets = [0, 256], sizes = [8, 128], strides = [1, 1]} : vector<8x384xf32> to vector<8x128xf32>
    %547 = vector.extract_strided_slice %529 {offsets = [0, 256], sizes = [8, 128], strides = [1, 1]} : vector<8x384xf32> to vector<8x128xf32>
    %548 = arith.addf %547, %317 : vector<8x128xf32>
    %549 = arith.mulf %537, %548 : vector<8x128xf32>
    %550 = arith.addf %546, %549 : vector<8x128xf32>
    %551 = math.tanh %550 : vector<8x128xf32>
    %cst_172 = arith.constant 1.000000e+00 : f32
    %552 = vector.broadcast %cst_172 : f32 to vector<8x128xf32>
    %553 = arith.subf %552, %545 : vector<8x128xf32>
    %554 = arith.mulf %553, %551 : vector<8x128xf32>
    %555 = arith.mulf %545, %523 : vector<8x128xf32>
    %556 = arith.addf %554, %555 : vector<8x128xf32>
    %c7_i32_173 = arith.constant 7 : i32
    %c8_i32_174 = arith.constant 8 : i32
    %557 = arith.muli %c7_i32_173, %c8_i32_174 : i32
    %558 = tpu.assume_multiple %557, 8 : i32
    %559 = arith.index_cast %558 : i32 to index
    %c0_175 = arith.constant 0 : index
    %560 = vector.load %arg12[%559, %c0_175] : memref<64x384xf32, #tpu.memory_space<vmem>>, vector<8x384xf32>
    %c0_176 = arith.constant 0 : index
    %c0_177 = arith.constant 0 : index
    %561 = vector.load %arg6[%c0_176, %c0_177] : memref<128x384xf32, #tpu.memory_space<vmem>>, vector<128x384xf32>
    %cst_178 = arith.constant dense<0.000000e+00> : vector<8x384xf32>
    %562 = tpu.matmul %556, %561, %cst_178 {dimension_numbers = #tpu.dot_dimension_numbers<[1], [0], [0], [1], [0, 0, 1, 1], [], []>} : vector<8x128xf32>, vector<128x384xf32>, vector<8x384xf32> -> vector<8x384xf32>
    %563 = vector.extract_strided_slice %560 {offsets = [0, 0], sizes = [8, 128], strides = [1, 1]} : vector<8x384xf32> to vector<8x128xf32>
    %564 = vector.extract_strided_slice %562 {offsets = [0, 0], sizes = [8, 128], strides = [1, 1]} : vector<8x384xf32> to vector<8x128xf32>
    %565 = arith.addf %563, %564 : vector<8x128xf32>
    %566 = arith.negf %565 : vector<8x128xf32>
    %567 = math.exp %566 : vector<8x128xf32>
    %cst_179 = arith.constant 1.000000e+00 : f32
    %568 = vector.broadcast %cst_179 : f32 to vector<8x128xf32>
    %569 = arith.addf %568, %567 : vector<8x128xf32>
    %570 = arith.divf %568, %569 : vector<8x128xf32>
    %571 = vector.extract_strided_slice %560 {offsets = [0, 128], sizes = [8, 128], strides = [1, 1]} : vector<8x384xf32> to vector<8x128xf32>
    %572 = vector.extract_strided_slice %562 {offsets = [0, 128], sizes = [8, 128], strides = [1, 1]} : vector<8x384xf32> to vector<8x128xf32>
    %573 = arith.addf %571, %572 : vector<8x128xf32>
    %574 = arith.negf %573 : vector<8x128xf32>
    %575 = math.exp %574 : vector<8x128xf32>
    %cst_180 = arith.constant 1.000000e+00 : f32
    %576 = vector.broadcast %cst_180 : f32 to vector<8x128xf32>
    %577 = arith.addf %576, %575 : vector<8x128xf32>
    %578 = arith.divf %576, %577 : vector<8x128xf32>
    %579 = vector.extract_strided_slice %560 {offsets = [0, 256], sizes = [8, 128], strides = [1, 1]} : vector<8x384xf32> to vector<8x128xf32>
    %580 = vector.extract_strided_slice %562 {offsets = [0, 256], sizes = [8, 128], strides = [1, 1]} : vector<8x384xf32> to vector<8x128xf32>
    %581 = arith.addf %580, %317 : vector<8x128xf32>
    %582 = arith.mulf %570, %581 : vector<8x128xf32>
    %583 = arith.addf %579, %582 : vector<8x128xf32>
    %584 = math.tanh %583 : vector<8x128xf32>
    %cst_181 = arith.constant 1.000000e+00 : f32
    %585 = vector.broadcast %cst_181 : f32 to vector<8x128xf32>
    %586 = arith.subf %585, %578 : vector<8x128xf32>
    %587 = arith.mulf %586, %584 : vector<8x128xf32>
    %588 = arith.mulf %578, %556 : vector<8x128xf32>
    %589 = arith.addf %587, %588 : vector<8x128xf32>
    %c8_i32_182 = arith.constant 8 : i32
    %c0_183 = arith.constant 0 : index
    %c0_184 = arith.constant 0 : index
    %590 = vector.load %arg9[%c0_183, %c0_184] : memref<128x128xf32, #tpu.memory_space<vmem>>, vector<128x128xf32>
    %cst_185 = arith.constant dense<0.000000e+00> : vector<8x128xf32>
    %591 = tpu.matmul %589, %590, %cst_185 {dimension_numbers = #tpu.dot_dimension_numbers<[1], [0], [0], [1], [0, 0, 1, 1], [], []>} : vector<8x128xf32>, vector<128x128xf32>, vector<8x128xf32> -> vector<8x128xf32>
    %c0_186 = arith.constant 0 : index
    %c0_187 = arith.constant 0 : index
    %592 = vector.load %arg10[%c0_186, %c0_187] : memref<1x128xf32, #tpu.memory_space<vmem>>, vector<1x128xf32>
    %593 = vector.broadcast %592 : vector<1x128xf32> to vector<8x128xf32>
    %594 = arith.addf %591, %593 : vector<8x128xf32>
    %c0_188 = arith.constant 0 : index
    %c0_189 = arith.constant 0 : index
    %595 = vector.load %arg11[%c0_188, %c0_189] : memref<8x128xf32, #tpu.memory_space<vmem>>, vector<8x128xf32>
    tpu.vector_store %arg11[%c0_188, %c0_189], %594 {strides = array<i32>} : memref<8x128xf32, #tpu.memory_space<vmem>>, vector<8x128xf32>,
    return
  }
}

</mosaic_0001>

<bundles_post_ra>
// kernel: tpu_custom_call.1
= control target key start
LH: loop header
LB: loop body
LE: loop exit
PB: predicated region body
PF: predicated region fallthrough
CT: control target
= control target key end

     0   :  { %16 = vsyncpa [#allocation5], 0  ;;  %s7659_s0 = inlined_call_operand.hbm [shape: f32[64,128], index: 0, kind: input, shape index: {}]   ;;  %s7660_s1 = inlined_call_operand.hbm [shape: f32[128,384], index: 1, kind: input, shape index: {}]   ;;  %s7661_s2 = inlined_call_operand.hbm [shape: f32[128,384], index: 2, kind: input, shape index: {}]   ;;  %s7662_s3 = inlined_call_operand.vmem [shape: f32[1,384], index: 3, kind: input, shape index: {}]   ;;  %s7663_s4 = inlined_call_operand.vmem [shape: f32[1,128], index: 4, kind: input, shape index: {}]   ;;  %s7664_s5 = inlined_call_operand.hbm [shape: f32[128,384], index: 5, kind: input, shape index: {}]   ;;  %s7665_s6 = inlined_call_operand.hbm [shape: f32[128,384], index: 6, kind: input, shape index: {}]   ;;  %s7666_s7 = inlined_call_operand.vmem [shape: f32[1,384], index: 7, kind: input, shape index: {}]   ;;  %s7667_s8 = inlined_call_operand.vmem [shape: f32[1,128], index: 8, kind: input, shape index: {}]   ;;  %s7668_s9 = inlined_call_operand.hbm [shape: f32[128,128], index: 9, kind: input, shape index: {}]   ;;  %s7669_s10 = inlined_call_operand.vmem [shape: f32[1,128], index: 10, kind: input, shape index: {}]   ;;  %s7670_s11 = inlined_call_operand.hbm [shape: f32[8,128], index: 11, kind: output, shape index: {}]  }
   0x1   :  { %17 = vsyncpa [#allocation8], 0 }
   0x2   :  { %18 = vsyncpa [#allocation11], 0 }
   0x3   :  { %19 = vsyncpa [#allocation14], 0 }
   0x4   :  { %20 = vsyncpa [#allocation6], 0  ;;  %s6517_s17 = smov [#allocation7]   ;;  %s6353_s21 = scalar_lea.hbm %s7660_s1, 6144 }
   0x5   :  { %s38_s18 = sshll.u32 %s6517_s17, 4  ;;  %p6354_p0 = scmp.ne.s32.totalorder %s7660_s1, %s6353_s21  ;;  %s39_s18 = int_to_ptr.vmem [resolvable:$true] %s38_s18 }
   0x6   :  { %p6357_p1 = scmp.lt.u32.totalorder %s6353_s21, %s7660_s1 }
   0x8   :  { %p6359_p2 = pnand %p6357_p1, %p6354_p0 }
   0xa   :  { %6362 = shalt.err (!%p6359_p2)
}
   0xb   :  { %s6363_s26 = scalar_lea.vmem %s39_s18, 6144  ;;  %p6368_p4 = scmp.lt.s32.totalorder %s39_s18, %s39_s18 }
   0xc   :  { %p6364_p3 = scmp.ne.s32.totalorder %s39_s18, %s6363_s26  ;;  %p6369_p5 = scmp.lt.s32.totalorder %s6363_s26, %s6363_s26 }
   0xe   :  { %p6370_p6 = por %p6369_p5, %p6368_p4 }
  0x10   :  { %p6371_p7 = pnand %p6370_p6, %p6364_p3 }
  0x12   :  { %6374 = shalt.err (!%p6371_p7)
}
  0x13   :  { %s6518_s27 = smov 384   ;;  %s6519_s28 = smov 24  }
  0x14   :  { %44 = dma.hbm_to_vmem [thread:$0]  %s7660_s1, 6144, %s39_s18, [#allocation8], %s6518_s27, %s6518_s27, %s6519_s28  }
  0x15   :  { %s6520_s12 = smov [#allocation10]   ;;  %s6521_s14 = smov [#allocation4]  }
  0x16   :  { %s66_s13 = sshll.u32 %s6520_s12, 4  ;;  %s26_s15 = sshll.u32 %s6521_s14, 4  ;;  %s67_s13 = int_to_ptr.vmem [resolvable:$true] %s66_s13  ;;  %s27_s15 = int_to_ptr.vmem [resolvable:$true] %s26_s15 }
  0x17   :  { %s6375_s19 = scalar_lea.hbm %s7664_s5, 6144 }
  0x18   :  { %p6376_p8 = scmp.ne.s32.totalorder %s7664_s5, %s6375_s19  ;;  %p6379_p9 = scmp.lt.u32.totalorder %s6375_s19, %s7664_s5 }
  0x1a   :  { %p6381_p10 = pnand %p6379_p9, %p6376_p8 }
  0x1c   :  { %6384 = shalt.err (!%p6381_p10)
}
  0x1d   :  { %s6385_s1 = scalar_lea.vmem %s67_s13, 6144  ;;  %p6390_p12 = scmp.lt.s32.totalorder %s67_s13, %s67_s13 }
  0x1e   :  { %p6386_p11 = scmp.ne.s32.totalorder %s67_s13, %s6385_s1  ;;  %p6391_p13 = scmp.lt.s32.totalorder %s6385_s1, %s6385_s1 }
  0x20   :  { %p6392_p0 = por %p6391_p13, %p6390_p12 }
  0x22   :  { %p6393_p1 = pnand %p6392_p0, %p6386_p11 }
  0x24   :  { %6396 = shalt.err (!%p6393_p1)
}
  0x25   :  { %72 = dma.hbm_to_vmem [thread:$0]  %s7664_s5, 6144, %s67_s13, [#allocation11], %s6518_s27, %s6518_s27, %s6519_s28  }
  0x26   :  { %s6397_s29 = scalar_lea.hbm %s7659_s0, 1024 }
  0x27   :  { %p6398_p2 = scmp.ne.s32.totalorder %s7659_s0, %s6397_s29  ;;  %p6401_p3 = scmp.lt.u32.totalorder %s6397_s29, %s7659_s0 }
  0x29   :  { %p6403_p4 = pnand %p6401_p3, %p6398_p2 }
  0x2b   :  { %6406 = shalt.err (!%p6403_p4)
}
  0x2c   :  { %s6407_s17 = scalar_lea.vmem %s27_s15, 1024  ;;  %p6412_p6 = scmp.lt.s32.totalorder %s27_s15, %s27_s15 }
  0x2d   :  { %p6408_p5 = scmp.ne.s32.totalorder %s27_s15, %s6407_s17  ;;  %p6413_p7 = scmp.lt.s32.totalorder %s6407_s17, %s6407_s17 }
  0x2f   :  { %p6414_p8 = por %p6413_p7, %p6412_p6 }
  0x31   :  { %p6415_p9 = pnand %p6414_p8, %p6408_p5 }
  0x33   :  { %6418 = shalt.err (!%p6415_p9)
}
  0x34   :  { %s6522_s5 = smov 128   ;;  %s6523_s13 = smov 8  }
  0x35   :  { %32 = dma.hbm_to_vmem [thread:$0]  %s7659_s0, 1024, %s27_s15, [#allocation5], %s6522_s5, %s6522_s5, %s6523_s13  }
  0x36   :  { %s6524_s21 = smov [#allocation9]   ;;  %s6525_s23 = smov [#allocation12]  }
  0x37   :  { %s50_s22 = sshll.u32 %s6524_s21, 4  ;;  %s78_s1 = sshll.u32 %s6525_s23, 4  ;;  %s51_s22 = int_to_ptr.vmem [resolvable:$true] %s50_s22  ;;  %s79_s1 = int_to_ptr.vmem [resolvable:$true] %s78_s1 }
  0x38   :  { %s6419_s25 = scalar_lea.hbm %s7661_s2, 6144 }
  0x39   :  { %p6420_p10 = scmp.ne.s32.totalorder %s7661_s2, %s6419_s25  ;;  %p6423_p11 = scmp.lt.u32.totalorder %s6419_s25, %s7661_s2 }
  0x3b   :  { %p6425_p12 = pnand %p6423_p11, %p6420_p10 }
  0x3d   :  { %6428 = shalt.err (!%p6425_p12)
}
  0x3e   :  { %s6429_s0 = scalar_lea.vmem %s51_s22, 6144  ;;  %p6434_p0 = scmp.lt.s32.totalorder %s51_s22, %s51_s22 }
  0x3f   :  { %p6430_p13 = scmp.ne.s32.totalorder %s51_s22, %s6429_s0  ;;  %p6435_p1 = scmp.lt.s32.totalorder %s6429_s0, %s6429_s0 }
  0x41   :  { %p6436_p2 = por %p6435_p1, %p6434_p0 }
  0x43   :  { %p6437_p3 = pnand %p6436_p2, %p6430_p13 }
  0x45   :  { %6440 = shalt.err (!%p6437_p3)
}
  0x46   :  { %56 = dma.hbm_to_vmem [thread:$0]  %s7661_s2, 6144, %s51_s22, [#allocation8], %s6518_s27, %s6518_s27, %s6519_s28  }
  0x47   :  { %s6441_s19 = scalar_lea.hbm %s7665_s6, 6144 }
  0x48   :  { %p6442_p4 = scmp.ne.s32.totalorder %s7665_s6, %s6441_s19  ;;  %p6445_p5 = scmp.lt.u32.totalorder %s6441_s19, %s7665_s6 }
  0x4a   :  { %p6447_p6 = pnand %p6445_p5, %p6442_p4 }
  0x4c   :  { %6450 = shalt.err (!%p6447_p6)
}
  0x4d   :  { %s6451_s24 = scalar_lea.vmem %s79_s1, 6144  ;;  %p6456_p8 = scmp.lt.s32.totalorder %s79_s1, %s79_s1 }
  0x4e   :  { %p6452_p7 = scmp.ne.s32.totalorder %s79_s1, %s6451_s24  ;;  %p6457_p9 = scmp.lt.s32.totalorder %s6451_s24, %s6451_s24 }
  0x50   :  { %p6458_p10 = por %p6457_p9, %p6456_p8 }
  0x52   :  { %p6459_p11 = pnand %p6458_p10, %p6452_p7 }
  0x54   :  { %6462 = shalt.err (!%p6459_p11)
}
  0x55   :  { %84 = dma.hbm_to_vmem [thread:$0]  %s7665_s6, 6144, %s79_s1, [#allocation11], %s6518_s27, %s6518_s27, %s6519_s28  }
  0x56   :  { %s6526_s25 = smov [#allocation13]   ;;  %s6463_s12 = scalar_lea.hbm %s7668_s9, 2048 }
  0x57   :  { %s94_s26 = sshll.u32 %s6526_s25, 4  ;;  %p6464_p12 = scmp.ne.s32.totalorder %s7668_s9, %s6463_s12  ;;  %s95_s26 = int_to_ptr.vmem [resolvable:$true] %s94_s26 }
  0x58   :  { %p6467_p13 = scmp.lt.u32.totalorder %s6463_s12, %s7668_s9 }
  0x5a   :  { %p6469_p0 = pnand %p6467_p13, %p6464_p12 }
  0x5c   :  { %6472 = shalt.err (!%p6469_p0)
}
  0x5d   :  { %s6473_s17 = scalar_lea.vmem %s95_s26, 2048  ;;  %p6478_p2 = scmp.lt.s32.totalorder %s95_s26, %s95_s26 }
  0x5e   :  { %p6474_p1 = scmp.ne.s32.totalorder %s95_s26, %s6473_s17  ;;  %p6479_p3 = scmp.lt.s32.totalorder %s6473_s17, %s6473_s17 }
  0x60   :  { %p6480_p4 = por %p6479_p3, %p6478_p2 }
  0x62   :  { %p6481_p5 = pnand %p6480_p4, %p6474_p1 }
  0x64   :  { %6484 = shalt.err (!%p6481_p5)
}
  0x65   :  { %100 = dma.hbm_to_vmem [thread:$0]  %s7668_s9, 2048, %s95_s26, [#allocation14], %s6522_s5, %s6522_s5, %s6523_s13  }
  0x66   :  { %6507 = dma.done.wait [#allocation5], 1024  }
  0x67   :  { %6508 = vsyncadd [#allocation5], 4294966272 }
  0x68   :  { %6509 = dma.done.wait [#allocation8], 12288  }
  0x69   :  { %6510 = vsyncadd [#allocation8], 4294955008 }
  0x6a   :  { %6511 = dma.done.wait [#allocation11], 12288  }
  0x6b   :  { %6512 = vsyncadd [#allocation11], 4294955008 }
  0x6c   :  { %6513 = dma.done.wait [#allocation14], 2048  }
  0x6d   :  { %6514 = vsyncadd [#allocation14], 4294965248  ;;  %v6527_v0 = vmov 0.0   ;;  %v137_v1 = vld [vmem:[#allocation7 + $0x8] sm:$0xff]  ;;  %v140_v2 = vld [vmem:[#allocation7 + $0x20] sm:$0xff]  ;;  %vm6529_vm0 = vmmov 0  }
  0x6e   :  { %265 = vmatprep.mubr.f32.mxu0 %v6527_v0  ;;  %v136_v3 = vld [vmem:[#allocation7] sm:$0xff]  ;;  %v5066_v4 = vpack.c.bf16 %v140_v2, %v137_v1  ;;  %v139_v5 = vld [vmem:[#allocation7 + $0x18] sm:$0xff]  ;;  %v146_v7 = vld [vmem:[#allocation7 + $0x50] sm:$0xff]  ;;  %s6530_s23 = smov [#allocation15]  }
  0x6f   :  { %v143_v6 = vld [vmem:[#allocation7 + $0x38] sm:$0xff]  ;;  %v5068_v8 = vpack.c.bf16 %v139_v5, %v136_v3  ;;  %v142_v10 = vld [vmem:[#allocation7 + $0x30] sm:$0xff]  ;;  %v145_v11 = vld [vmem:[#allocation7 + $0x48] sm:$0xff]  ;;  %s3992_s18 = sshll.u32 %s6530_s23, 4  ;;  %s3993_s18 = int_to_ptr.vmem [resolvable:$true] %s3992_s18 }
  0x70   :  { %v5070_v9 = vpack.c.bf16 %v146_v7, %v143_v6  ;;  %v149_v12 = vld [vmem:[#allocation7 + $0x68] sm:$0xff]  ;;  %5067 = vmatprep.subr.bf16.mxu0 %v5066_v4  ;;  %v152_v13 = vld [vmem:[#allocation7 + $0x80] sm:$0xff]  ;;  %v5072_v14 = vpack.c.bf16 %v145_v11, %v142_v10  ;;  %v151_v17 = vld [vmem:[#allocation7 + $0x78] sm:$0xff]  ;;  %s6485_s24 = scalar_lea.vmem %s3993_s18, 128  ;;  %p6490_p7 = scmp.lt.s32.totalorder %s3993_s18, %s3993_s18 }
  0x71   :  { %5069 = vmatpush1.bf16.msra.mxu0 %v5068_v8  ;;  %v5074_v15 = vpack.c.bf16 %v152_v13, %v149_v12  ;;  %v148_v16 = vld [vmem:[#allocation7 + $0x60] sm:$0xff]  ;;  %v155_v18 = vld [vmem:[#allocation7 + $0x98] sm:$0xff]  ;;  %v158_v19 = vld [vmem:[#allocation7 + $0xb0] sm:$0xff]  ;;  %p6486_p6 = scmp.ne.s32.totalorder %s3993_s18, %s6485_s24  ;;  %p6491_p8 = scmp.lt.s32.totalorder %s6485_s24, %s6485_s24 }
  0x72   :  { %5071 = vmatprep.subr.bf16.mxu0 %v5070_v9  ;;  %v5076_v20 = vpack.c.bf16 %v151_v17, %v148_v16  ;;  %v154_v21 = vld [vmem:[#allocation7 + $0x90] sm:$0xff]  ;;  %v5078_v22 = vpack.c.bf16 %v158_v19, %v155_v18  ;;  %v157_v23 = vld [vmem:[#allocation7 + $0xa8] sm:$0xff]  ;;  %v164_v27 = vld [vmem:[#allocation7 + $0xe0] sm:$0xff] }
  0x73   :  { %v138_v24 = vld [vmem:[#allocation7 + $0x10] sm:$0xff]  ;;  %v141_v25 = vld [vmem:[#allocation7 + $0x28] sm:$0xff]  ;;  %v144_v29 = vld [vmem:[#allocation7 + $0x40] sm:$0xff]  ;;  %v5080_v31 = vpack.c.bf16 %v157_v23, %v154_v21  ;;  %p6492_p9 = por %p6491_p8, %p6490_p7 }
  0x74   :  { %v161_v26 = vld [vmem:[#allocation7 + $0xc8] sm:$0xff]  ;;  %v5098_v28 = vpack.c.bf16 %v141_v25, %v138_v24  ;;  %v147_v30 = vld [vmem:[#allocation7 + $0x58] sm:$0xff]  ;;  %v160_v32 = vld [vmem:[#allocation7 + $0xc0] sm:$0xff] }
  0x75   :  { %5073 = vmatpush1.bf16.msra.mxu0 %v5072_v14  ;;  %v5102_v33 = vpack.c.bf16 %v147_v30, %v144_v29  ;;  %v5082_v34 = vpack.c.bf16 %v164_v27, %v161_v26  ;;  %v163_v35 = vld [vmem:[#allocation7 + $0xd8] sm:$0xff]  ;;  %v6682_v36 = vld [vmem:[#allocation4] sm:$0xff]  ;;  %v150_v37 = vld [vmem:[#allocation7 + $0x70] sm:$0xff]  ;;  %p6493_p10 = pnand %p6492_p9, %p6486_p6 }
  0x76   :  { %5075 = vmatprep.subr.bf16.mxu0 %v5074_v15  ;;  %5099 = vmatprep.subr.bf16.mxu1 %v5098_v28  ;;  %v167_v38 = vld [vmem:[#allocation7 + $0xf8] sm:$0xff]  ;;  %v170_v39 = vld [vmem:[#allocation7 + $0x110] sm:$0xff]  ;;  %v153_v40 = vld [vmem:[#allocation7 + $0x88] sm:$0xff]  ;;  %v5084_v42 = vpack.c.bf16 %v163_v35, %v160_v32 }
  0x77   :  { %5101 = vmatpush3.bf16.msra.mxu1 %v5098_v28  ;;  %4415 = vmatprep.mubr.f32.mxu1 %v6682_v36  ;;  %v5106_v41 = vpack.c.bf16 %v153_v40, %v150_v37  ;;  %v156_v43 = vld [vmem:[#allocation7 + $0xa0] sm:$0xff]  ;;  %v159_v44 = vld [vmem:[#allocation7 + $0xb8] sm:$0xff]  ;;  %v5086_v45 = vpack.c.bf16 %v170_v39, %v167_v38  ;;  %v166_v46 = vld [vmem:[#allocation7 + $0xf0] sm:$0xff]  ;;  %v6528_v40 = vmov 0.0|0.0  }
  0x78   :  { %5103 = vmatprep.subr.bf16.mxu1 %v5102_v33  ;;  %v169_v47 = vld [vmem:[#allocation7 + $0x108] sm:$0xff]  ;;  %v176_v49 = vld [vmem:[#allocation7 + $0x140] sm:$0xff]  ;;  %v5110_v50 = vpack.c.bf16 %v159_v44, %v156_v43  ;;  %v162_v51 = vld [vmem:[#allocation7 + $0xd0] sm:$0xff] }
  0x79   :  { %5077 = vmatpush1.bf16.msra.mxu0 %v5076_v20  ;;  %v173_v48 = vld [vmem:[#allocation7 + $0x128] sm:$0xff]  ;;  %v5088_v53 = vpack.c.bf16 %v169_v47, %v166_v46  ;;  %v172_v55 = vld [vmem:[#allocation7 + $0x120] sm:$0xff]  ;;  %v175_v56 = vld [vmem:[#allocation7 + $0x138] sm:$0xff] }
  0x7a   :  { %5079 = vmatprep.subr.bf16.mxu0 %v5078_v22  ;;  %v165_v52 = vld [vmem:[#allocation7 + $0xe8] sm:$0xff]  ;;  %v5090_v54 = vpack.c.bf16 %v176_v49, %v173_v48  ;;  %v179_v57 = vld [vmem:[#allocation7 + $0x158] sm:$0xff]  ;;  %v182_v58 = vld [vmem:[#allocation7 + $0x170] sm:$0xff]  ;;  %v5092_v62 = vpack.c.bf16 %v175_v56, %v172_v55 }
  0x7b   :  { %5105 = vmatpush3.bf16.msra.mxu1 %v5102_v33  ;;  %v5114_v59 = vpack.c.bf16 %v165_v52, %v162_v51  ;;  %v168_v60 = vld [vmem:[#allocation7 + $0x100] sm:$0xff]  ;;  %v171_v61 = vld [vmem:[#allocation7 + $0x118] sm:$0xff]  ;;  %v5094_v63 = vpack.c.bf16 %v182_v58, %v179_v57  ;;  %v178_v1 = vld [vmem:[#allocation7 + $0x150] sm:$0xff] }
  0x7c   :  { %5107 = vmatprep.subr.bf16.mxu1 %v5106_v41  ;;  %v181_v2 = vld [vmem:[#allocation7 + $0x168] sm:$0xff]  ;;  %v453_v4 = vld [vmem:[#allocation9 + $0x20] sm:$0xff]  ;;  %v5118_v5 = vpack.c.bf16 %v171_v61, %v168_v60  ;;  %v174_v6 = vld [vmem:[#allocation7 + $0x130] sm:$0xff] }
  0x7d   :  { %5081 = vmatpush1.bf16.msra.mxu0 %v5080_v31  ;;  %v450_v3 = vld [vmem:[#allocation9 + $0x8] sm:$0xff]  ;;  %v5096_v8 = vpack.c.bf16 %v181_v2, %v178_v1  ;;  %v449_v10 = vld [vmem:[#allocation9] sm:$0xff]  ;;  %v452_v11 = vld [vmem:[#allocation9 + $0x18] sm:$0xff] }
  0x7e   :  { %5083 = vmatprep.subr.bf16.mxu0 %v5082_v34  ;;  %v177_v7 = vld [vmem:[#allocation7 + $0x148] sm:$0xff]  ;;  %v6685_v9 = vpack.c.bf16 %v453_v4, %v450_v3  ;;  %v456_v12 = vld [vmem:[#allocation9 + $0x38] sm:$0xff]  ;;  %v459_v13 = vld [vmem:[#allocation9 + $0x50] sm:$0xff]  ;;  %v6687_v17 = vpack.c.bf16 %v452_v11, %v449_v10 }
  0x7f   :  { %5109 = vmatpush3.bf16.msra.mxu1 %v5106_v41  ;;  %v5122_v14 = vpack.c.bf16 %v177_v7, %v174_v6  ;;  %v180_v15 = vld [vmem:[#allocation7 + $0x160] sm:$0xff]  ;;  %v183_v16 = vld [vmem:[#allocation7 + $0x178] sm:$0xff]  ;;  %v6690_v18 = vpack.c.bf16 %v459_v13, %v456_v12  ;;  %v455_v19 = vld [vmem:[#allocation9 + $0x30] sm:$0xff] }
  0x80   :  { %5111 = vmatprep.subr.bf16.mxu1 %v5110_v50  ;;  %v458_v20 = vld [vmem:[#allocation9 + $0x48] sm:$0xff]  ;;  %v465_v22 = vld [vmem:[#allocation9 + $0x80] sm:$0xff]  ;;  %v5126_v23 = vpack.c.bf16 %v183_v16, %v180_v15  ;;  %v464_v28 = vld [vmem:[#allocation9 + $0x78] sm:$0xff] }
  0x81   :  { %5085 = vmatpush1.bf16.msra.mxu0 %v5084_v42  ;;  %v462_v21 = vld [vmem:[#allocation9 + $0x68] sm:$0xff]  ;;  %v6695_v25 = vpack.c.bf16 %v458_v20, %v455_v19  ;;  %v461_v27 = vld [vmem:[#allocation9 + $0x60] sm:$0xff]  ;;  %v468_v29 = vld [vmem:[#allocation9 + $0x98] sm:$0xff] }
  0x82   :  { %5087 = vmatprep.subr.bf16.mxu0 %v5086_v45  ;;  %v129_v24 = vld [vmem:[#allocation4 + $0x8] sm:$0xff]  ;;  %v6698_v26 = vpack.c.bf16 %v465_v22, %v462_v21  ;;  %v471_v30 = vld [vmem:[#allocation9 + $0xb0] sm:$0xff]  ;;  %v6702_v34 = vpack.c.bf16 %v464_v28, %v461_v27  ;;  %v477_v39 = vld [vmem:[#allocation9 + $0xe0] sm:$0xff] }
  0x83   :  { %5113 = vmatpush3.bf16.msra.mxu1 %v5110_v50  ;;  %v451_v31 = vld [vmem:[#allocation9 + $0x10] sm:$0xff]  ;;  %v454_v32 = vld [vmem:[#allocation9 + $0x28] sm:$0xff]  ;;  %v6705_v35 = vpack.c.bf16 %v471_v30, %v468_v29  ;;  %v457_v42 = vld [vmem:[#allocation9 + $0x40] sm:$0xff] }
  0x84   :  { %5115 = vmatprep.subr.bf16.mxu1 %v5114_v59  ;;  %v130_v33 = vld [vmem:[#allocation4 + $0x10] sm:$0xff]  ;;  %v470_v37 = vld [vmem:[#allocation9 + $0xa8] sm:$0xff]  ;;  %v6708_v41 = vpack.c.bf16 %v454_v32, %v451_v31  ;;  %v460_v43 = vld [vmem:[#allocation9 + $0x58] sm:$0xff] }
  0x85   :  { %5089 = vmatpush1.bf16.msra.mxu0 %v5088_v53  ;;  %v474_v38 = vld [vmem:[#allocation9 + $0xc8] sm:$0xff]  ;;  %v131_v44 = vld [vmem:[#allocation4 + $0x18] sm:$0xff]  ;;  %v473_v47 = vld [vmem:[#allocation9 + $0xc0] sm:$0xff]  ;;  %v6718_v51 = vpack.c.bf16 %v460_v43, %v457_v42 }
  0x86   :  { %5091 = vmatprep.subr.bf16.mxu0 %v5090_v54  ;;  %v6715_v46 = vpack.c.bf16 %v477_v39, %v474_v38  ;;  %v476_v48 = vld [vmem:[#allocation9 + $0xd8] sm:$0xff]  ;;  %v483_v50 = vld [vmem:[#allocation9 + $0x110] sm:$0xff]  ;;  %v466_v53 = vld [vmem:[#allocation9 + $0x88] sm:$0xff] }
  0x87   :  { %5117 = vmatpush3.bf16.msra.mxu1 %v5114_v59  ;;  %v480_v49 = vld [vmem:[#allocation9 + $0xf8] sm:$0xff]  ;;  %v463_v52 = vld [vmem:[#allocation9 + $0x70] sm:$0xff]  ;;  %v132_v54 = vld [vmem:[#allocation4 + $0x20] sm:$0xff]  ;;  %v6723_v55 = vpack.c.bf16 %v476_v48, %v473_v47 }
  0x88   :  { %5119 = vmatprep.subr.bf16.mxu1 %v5118_v5  ;;  %v6726_v56 = vpack.c.bf16 %v483_v50, %v480_v49  ;;  %v479_v57 = vld [vmem:[#allocation9 + $0xf0] sm:$0xff]  ;;  %v482_v58 = vld [vmem:[#allocation9 + $0x108] sm:$0xff]  ;;  %v489_v60 = vld [vmem:[#allocation9 + $0x140] sm:$0xff]  ;;  %v6729_v61 = vpack.c.bf16 %v466_v53, %v463_v52 }
  0x89   :  { %5093 = vmatpush1.bf16.msra.mxu0 %v5092_v62  ;;  %v486_v59 = vld [vmem:[#allocation9 + $0x128] sm:$0xff]  ;;  %v469_v62 = vld [vmem:[#allocation9 + $0xa0] sm:$0xff]  ;;  %v6734_v2 = vpack.c.bf16 %v482_v58, %v479_v57  ;;  %v134_v3 = vld [vmem:[#allocation4 + $0x30] sm:$0xff] }
  0x8a   :  { %5095 = vmatprep.subr.bf16.mxu0 %v5094_v63  ;;  %v472_v63 = vld [vmem:[#allocation9 + $0xb8] sm:$0xff]  ;;  %v133_v1 = vld [vmem:[#allocation4 + $0x28] sm:$0xff]  ;;  %v6737_v4 = vpack.c.bf16 %v489_v60, %v486_v59  ;;  %v475_v11 = vld [vmem:[#allocation9 + $0xd0] sm:$0xff] }
  0x8b   :  { %5121 = vmatpush3.bf16.msra.mxu1 %v5118_v5  ;;  %v485_v5 = vld [vmem:[#allocation9 + $0x120] sm:$0xff]  ;;  %v488_v6 = vld [vmem:[#allocation9 + $0x138] sm:$0xff]  ;;  %v6740_v10 = vpack.c.bf16 %v472_v63, %v469_v62  ;;  %v478_v12 = vld [vmem:[#allocation9 + $0xe8] sm:$0xff] }
  0x8c   :  { %5123 = vmatprep.subr.bf16.mxu1 %v5122_v14  ;;  %v492_v7 = vld [vmem:[#allocation9 + $0x158] sm:$0xff]  ;;  %v6745_v13 = vpack.c.bf16 %v488_v6, %v485_v5  ;;  %v491_v16 = vld [vmem:[#allocation9 + $0x150] sm:$0xff]  ;;  %v494_v19 = vld [vmem:[#allocation9 + $0x168] sm:$0xff]  ;;  %v6751_v20 = vpack.c.bf16 %v478_v12, %v475_v11 }
  0x8d   :  { %5097 = vmatpush1.bf16.msra.mxu0 %v5096_v8  ;;  %v495_v8 = vld [vmem:[#allocation9 + $0x170] sm:$0xff]  ;;  %v481_v21 = vld [vmem:[#allocation9 + $0x100] sm:$0xff]  ;;  %v484_v22 = vld [vmem:[#allocation9 + $0x118] sm:$0xff] }
  0x8e   :  { %5131 = vmatprep.subr.bf16.mxu0 %v6685_v9  ;;  %v6748_v15 = vpack.c.bf16 %v495_v8, %v492_v7  ;;  %v487_v27 = vld [vmem:[#allocation9 + $0x130] sm:$0xff]  ;;  %v490_v28 = vld [vmem:[#allocation9 + $0x148] sm:$0xff]  ;;  %v493_v30 = vld [vmem:[#allocation9 + $0x160] sm:$0xff] }
  0x8f   :  { %5125 = vmatpush3.bf16.msra.mxu1 %v5122_v14  ;;  %v135_v14 = vld [vmem:[#allocation4 + $0x38] sm:$0xff]  ;;  %v6769_v29 = vpack.c.bf16 %v490_v28, %v487_v27  ;;  %v184_v38 = vld [vmem:[%s7662_s3] sm:$0x7] }
  0x90   :  { %266 = vmatmul.mubr.f32.vlgmr.msra.gmra.mrb[0].mxu0 %v6682_v36  ;;  %5127 = vmatprep.subr.bf16.mxu1 %v5126_v23  ;;  %v467_v36 = vld [vmem:[#allocation9 + $0x90] sm:$0xff]  ;;  %v496_v31 = vld [vmem:[#allocation9 + $0x178] sm:$0xff]  ;;  %v6852_v28 = vld [vmem:[%s7663_s4] ss:$0 sm:$0xff] }
  0x91   :  { %5133 = vmatpush1.bf16.msra.mxu0 %v6687_v17  ;;  %271 = vmatprep.mubr.f32.mxu0 %v6527_v0  ;;  %v6712_v45 = vpack.c.bf16 %v470_v37, %v467_v36  ;;  %v6777_v32 = vpack.c.bf16 %v496_v31, %v493_v30 }
  0x92   :  { %5135 = vmatprep.subr.bf16.mxu0 %v6690_v18 }
  0x93   :  { %5129 = vmatpush3.bf16.msra.mxu1 %v5126_v23  ;;  %v6758_v23 = vpack.c.bf16 %v494_v19, %v491_v16 }
  0x94   :  { %272 = vmatmul.mubr.f32.gmra.mrb[2].mxu0 %v129_v24  ;;  %5162 = vmatprep.subr.bf16.mxu1 %v6528_v40 }
  0x95   :  { %5137 = vmatpush1.bf16.msra.mxu0 %v6695_v25  ;;  %277 = vmatprep.mubr.f32.mxu0 %v6527_v0 }
  0x96   :  { %5139 = vmatprep.subr.bf16.mxu0 %v6698_v26  ;;  %4416 = vmatmul.mubr.f32.vlgmr.msra.gmra.mrb[0].mxu1 %v129_v24  ;;  %v6762_v24 = vpack.c.bf16 %v484_v22, %v481_v21 }
  0x97   :  { %5164 = vmatpush3.bf16.msra.mxu1 %v6708_v41  ;;  %4418 = vmatprep.mubr.f32.mxu1 %v130_v33 }
  0x98   :  { %278 = vmatmul.mubr.f32.gmra.mrb[4].mxu0 %v130_v33  ;;  %5165 = vmatprep.subr.bf16.mxu1 %v6528_v40  ;;  %v186_v33 = vlaneseq }
  0x99   :  { %5141 = vmatpush1.bf16.msra.mxu0 %v6702_v34  ;;  %283 = vmatprep.mubr.f32.mxu0 %v6527_v0 }
  0x9a   :  { %5143 = vmatprep.subr.bf16.mxu0 %v6705_v35  ;;  %4419 = vmatmul.mubr.f32.gmra.mrb[2].mxu1 %v131_v44  ;;  %v6815_v36 = vshrl.u32 %v186_v33, 7 }
  0x9b   :  { %5167 = vmatpush3.bf16.msra.mxu1 %v6718_v51  ;;  %4421 = vmatprep.mubr.f32.mxu1 %v132_v54 }
  0x9c   :  { %284 = vmatmul.mubr.f32.gmra.mrb[6].mxu0 %v131_v44  ;;  %5168 = vmatprep.subr.bf16.mxu1 %v6528_v40  ;;  %v196_v37 = vsub.s32 2, %v6815_v36  ;;  %v188_v63 = vsub.s32 0, %v6815_v36 }
  0x9d   :  { %5145 = vmatpush1.bf16.msra.mxu0 %v6712_v45  ;;  %289 = vmatprep.mubr.f32.mxu0 %v6527_v0 }
  0x9e   :  { %5147 = vmatprep.subr.bf16.mxu0 %v6715_v46  ;;  %4422 = vmatmul.mubr.f32.gmra.mrb[4].mxu1 %v133_v1  ;;  %v197_v39 = vrot.slane %v184_v38, %v196_v37 }
  0x9f   :  { %5170 = vmatpush3.bf16.msra.mxu1 %v6729_v61  ;;  %4424 = vmatprep.mubr.f32.mxu1 %v134_v3 }
  0xa0   :  { %290 = vmatmul.mubr.f32.gmra.mrb[8].mxu0 %v132_v54  ;;  %5171 = vmatprep.subr.bf16.mxu1 %v6528_v40 }
  0xa1   :  { %5149 = vmatpush1.bf16.msra.mxu0 %v6723_v55  ;;  %295 = vmatprep.mubr.f32.mxu0 %v6527_v0 }
  0xa2   :  { %5151 = vmatprep.subr.bf16.mxu0 %v6726_v56  ;;  %4425 = vmatmul.mubr.f32.gmra.mrb[6].mxu1 %v135_v14 }
  0xa3   :  { %5173 = vmatpush3.bf16.msra.mxu1 %v6740_v10  ;;  %4459 = vmatprep.mubr.msk.f32.mxu1 %vm6529_vm0, %v6527_v0 }
  0xa4   :  { %296 = vmatmul.mubr.f32.gmra.mrb[10].mxu0 %v133_v1  ;;  %5174 = vmatprep.subr.bf16.mxu1 %v6528_v40  ;;  %v192_v1 = vsub.s32 1, %v6815_v36 }
  0xa5   :  { %5153 = vmatpush1.bf16.msra.mxu0 %v6734_v2  ;;  %301 = vmatprep.mubr.f32.mxu0 %v6527_v0 }
  0xa6   :  { %5155 = vmatprep.subr.bf16.mxu0 %v6737_v4  ;;  %v6845_v6 = vrot.slane %v184_v38, %v192_v1 }
  0xa7   :  { %5176 = vmatpush3.bf16.msra.mxu1 %v6751_v20 }
  0xa8   :  { %302 = vmatmul.mubr.f32.gmra.mrb[12].mxu0 %v134_v3  ;;  %5177 = vmatprep.subr.bf16.mxu1 %v6528_v40  ;;  %v6841_v3 = vrot.slane %v184_v38, %v188_v63 }
  0xa9   :  { %5157 = vmatpush1.bf16.msra.mxu0 %v6745_v13  ;;  %307 = vmatprep.mubr.f32.mxu0 %v6527_v0 }
  0xaa   :  { %5159 = vmatprep.subr.bf16.mxu0 %v6748_v15 }
  0xab   :  { %5179 = vmatpush3.bf16.msra.mxu1 %v6762_v24 }
  0xac   :  { %308 = vmatmul.mubr.f32.gmra.mrb[14].mxu0 %v135_v14  ;;  %5180 = vmatprep.subr.bf16.mxu1 %v6528_v40 }
  0xad   :  { %5161 = vmatpush1.bf16.msra.mxu0 %v6758_v23  ;;  %561 = vmatprep.mubr.f32.mxu0 %v6527_v0 }
  0xae   :  { %5187 = vmatprep.subr.bf16.mxu0 %v6685_v9 }
  0xaf   :  { %5182 = vmatpush3.bf16.msra.mxu1 %v6769_v29 }
  0xb0   :  { %562 = vmatmul.mubr.f32.vlgmr.msra.gmra.mrb[0].mxu0 %v6527_v0  ;;  %5183 = vmatprep.subr.bf16.mxu1 %v6528_v40 }
  0xb1   :  { %5189 = vmatpush1.bf16.msra.mxu0 %v6687_v17  ;;  %779 = vmatprep.mubr.f32.mxu0 %v6527_v0 }
  0xb2   :  { %5191 = vmatprep.subr.bf16.mxu0 %v6690_v18 }
  0xb3   :  { %5185 = vmatpush3.bf16.msra.mxu1 %v6777_v32 }
  0xb4   :  { %5218 = vmatprep.subr.bf16.mxu1 %v6528_v40 }
  0xb5   :  { %5193 = vmatpush1.bf16.msra.mxu0 %v6695_v25 }
  0xb6   :  { %5195 = vmatprep.subr.bf16.mxu0 %v6698_v26  ;;  %4460 = vmatmul.mubr.f32.vlgmr.msra.gmra.mrb[8].mxu1 %v6527_v0 }
  0xb7   :  { %5220 = vmatpush3.bf16.msra.mxu1 %v6708_v41  ;;  %4494 = vmatprep.mubr.msk.f32.mxu1 %vm6529_vm0, %v6527_v0 }
  0xb8   :  { %5221 = vmatprep.subr.bf16.mxu1 %v6528_v40 }
  0xb9   :  { %5197 = vmatpush1.bf16.msra.mxu0 %v6702_v34 }
  0xba   :  { %5199 = vmatprep.subr.bf16.mxu0 %v6705_v35 }
  0xbb   :  { %5223 = vmatpush3.bf16.msra.mxu1 %v6718_v51 }
  0xbc   :  { %5224 = vmatprep.subr.bf16.mxu1 %v6528_v40 }
  0xbd   :  { %5201 = vmatpush1.bf16.msra.mxu0 %v6712_v45 }
  0xbe   :  { %5203 = vmatprep.subr.bf16.mxu0 %v6715_v46 }
  0xbf   :  { %5226 = vmatpush3.bf16.msra.mxu1 %v6729_v61 }
  0xc0   :  { %5227 = vmatprep.subr.bf16.mxu1 %v6528_v40 }
  0xc1   :  { %5205 = vmatpush1.bf16.msra.mxu0 %v6723_v55 }
  0xc2   :  { %5207 = vmatprep.subr.bf16.mxu0 %v6726_v56 }
  0xc3   :  { %5229 = vmatpush3.bf16.msra.mxu1 %v6740_v10 }
  0xc4   :  { %5230 = vmatprep.subr.bf16.mxu1 %v6528_v40 }
  0xc5   :  { %5209 = vmatpush1.bf16.msra.mxu0 %v6734_v2 }
  0xc6   :  { %5211 = vmatprep.subr.bf16.mxu0 %v6737_v4 }
  0xc7   :  { %5232 = vmatpush3.bf16.msra.mxu1 %v6751_v20 }
  0xc8   :  { %5233 = vmatprep.subr.bf16.mxu1 %v6528_v40 }
  0xc9   :  { %5213 = vmatpush1.bf16.msra.mxu0 %v6745_v13 }
  0xca   :  { %5215 = vmatprep.subr.bf16.mxu0 %v6748_v15 }
  0xcb   :  { %5235 = vmatpush3.bf16.msra.mxu1 %v6762_v24 }
  0xcc   :  { %5236 = vmatprep.subr.bf16.mxu1 %v6528_v40 }
  0xcd   :  { %5217 = vmatpush1.bf16.msra.mxu0 %v6758_v23 }
  0xce   :  { %5243 = vmatprep.subr.bf16.mxu0 %v6685_v9 }
  0xcf   :  { %5238 = vmatpush3.bf16.msra.mxu1 %v6769_v29 }
  0xd0   :  { %5239 = vmatprep.subr.bf16.mxu1 %v6528_v40 }
  0xd3   :  { %5241 = vmatpush3.bf16.msra.mxu1 %v6777_v32 }
  0xd4   :  { %5274 = vmatprep.subr.bf16.mxu1 %v6528_v40 }
 0x169   :  { %v4417_v42 = vpop.f32.mrb[0].mxu1 }
 0x16a   :  { %v6823_v43 = vadd.f32 %v4417_v42, %v197_v39  ;;  %v380_v44 = vpop.f32.mrb[1].mxu1 }
 0x16b   :  { %v381_v38 = vadd.f32 %v380_v44, %v197_v39 }
 0x16d   :  { %v4420_v47 = vpop.f32.mrb[2].mxu1 }
 0x16e   :  { %v6825_v48 = vadd.f32 %v4420_v47, %v197_v39  ;;  %v390_v49 = vpop.f32.mrb[3].mxu1 }
 0x16f   :  { %v6827_v50 = vadd.f32 %v390_v49, %v197_v39 }
 0x171   :  { %v4423_v52 = vpop.f32.mrb[4].mxu1 }
 0x172   :  { %v6829_v53 = vadd.f32 %v4423_v52, %v197_v39  ;;  %v400_v54 = vpop.f32.mrb[5].mxu1 }
 0x173   :  { %v6831_v57 = vadd.f32 %v400_v54, %v197_v39 }
 0x175   :  { %v4426_v58 = vpop.f32.mrb[6].mxu1 }
 0x176   :  { %v6833_v59 = vadd.f32 %v4426_v58, %v197_v39  ;;  %v410_v60 = vpop.f32.mrb[7].mxu1 }
 0x177   :  { %v6835_v62 = vadd.f32 %v410_v60, %v197_v39 }
 0x183   :  { %v563_v5 = vpop.f32.mrb[0].mxu0 }
 0x184   :  { %v6114_v7 = vadd.f32 %v563_v5, %v6841_v3  ;;  %v565_v8 = vpop.f32.mrb[1].mxu0 }
 0x185   :  { %v6115_v12 = vadd.f32 %v565_v8, %v6845_v6 }
 0x186   :  { %v4012_v11 = vmul.f32 -1.442695, %v6114_v7 }
 0x187   :  { %v4013_v14 = vmul.f32 -1.442695, %v6115_v12 }
 0x188   :  { %6192 = vpow2.f32 %v4012_v11 }
 0x189   :  { %v634_v16 = vpop.f32.mrb[8].mxu1  ;;  %6194 = vpow2.f32 %v4013_v14 }
 0x18a   :  { %v4461_v19 = vpop.f32.mrb[9].mxu1  ;;  %v652_v31 = vadd.f32 %v6852_v28, %v634_v16 }
 0x192   :  { %v6193_v21 = vpop.eup %6192 }
 0x193   :  { %v642_v22 = vadd.f32 1.0, %v6193_v21  ;;  %v6195_v27 = vpop.eup %6194 }
 0x194   :  { %v649_v30 = vadd.f32 1.0, %v6195_v27 }
 0x195   :  { %6196 = vrcp.f32 %v642_v22 }
 0x196   :  { %6198 = vrcp.f32 %v649_v30 }
 0x19f   :  { %v6197_v33 = vpop.eup %6196 }
 0x1a0   :  { %v653_v42 = vmul.f32 %v6197_v33, %v652_v31  ;;  %v6199_v49 = vpop.eup %6198 }
 0x1a1   :  { %v656_v52 = vsub.f32 1.0, %v6199_v49  ;;  %v658_v60 = vmul.f32 0.0, %v6199_v49 }
 0x1a2   :  { %v654_v47 = vadd.f32 %v653_v42, %v381_v38 }
 0x1a4   :  { %6200 = vtanh.f32 %v654_v47 }
 0x1ae   :  { %v6201_v54 = vpop.eup %6200 }
 0x1af   :  { %v657_v58 = vmul.f32 %v6201_v54, %v656_v52 }
 0x1b1   :  { %v6855_v5 = vadd.f32 %v658_v60, %v657_v58  ;;  %v1328_v60 = vld [vmem:[#allocation9 + $0x20] sm:$0xff] }
 0x1b3   :  { %780 = vmatmul.mubr.f32.vlgmr.msra.gmra.mrb[2].mxu0 %v6855_v5  ;;  %4495 = vmatmul.mubr.f32.vlgmr.msra.gmra.mrb[10].mxu1 %v6855_v5 }
 0x1b4   :  { %5245 = vmatpush1.bf16.msra.mxu0 %v6687_v17  ;;  %5276 = vmatpush3.bf16.msra.mxu1 %v6708_v41 }
 0x1b5   :  { %5247 = vmatprep.subr.bf16.mxu0 %v6690_v18  ;;  %5277 = vmatprep.subr.bf16.mxu1 %v6528_v40 }
 0x1b6   :  { %998 = vmatprep.mubr.f32.mxu0 %v6527_v0  ;;  %4529 = vmatprep.mubr.msk.f32.mxu1 %vm6529_vm0, %v6527_v0 }
 0x1b8   :  { %5249 = vmatpush1.bf16.msra.mxu0 %v6695_v25  ;;  %5279 = vmatpush3.bf16.msra.mxu1 %v6718_v51 }
 0x1b9   :  { %5251 = vmatprep.subr.bf16.mxu0 %v6698_v26  ;;  %5280 = vmatprep.subr.bf16.mxu1 %v6528_v40 }
 0x1bc   :  { %5253 = vmatpush1.bf16.msra.mxu0 %v6702_v34  ;;  %5282 = vmatpush3.bf16.msra.mxu1 %v6729_v61 }
 0x1bd   :  { %5255 = vmatprep.subr.bf16.mxu0 %v6705_v35  ;;  %5283 = vmatprep.subr.bf16.mxu1 %v6528_v40 }
 0x1c0   :  { %5257 = vmatpush1.bf16.msra.mxu0 %v6712_v45  ;;  %5285 = vmatpush3.bf16.msra.mxu1 %v6740_v10 }
 0x1c1   :  { %5259 = vmatprep.subr.bf16.mxu0 %v6715_v46  ;;  %5286 = vmatprep.subr.bf16.mxu1 %v6528_v40 }
 0x1c4   :  { %5261 = vmatpush1.bf16.msra.mxu0 %v6723_v55  ;;  %5288 = vmatpush3.bf16.msra.mxu1 %v6751_v20 }
 0x1c5   :  { %5263 = vmatprep.subr.bf16.mxu0 %v6726_v56  ;;  %5289 = vmatprep.subr.bf16.mxu1 %v6528_v40 }
 0x1c8   :  { %5265 = vmatpush1.bf16.msra.mxu0 %v6734_v2  ;;  %5291 = vmatpush3.bf16.msra.mxu1 %v6762_v24 }
 0x1c9   :  { %5267 = vmatprep.subr.bf16.mxu0 %v6737_v4  ;;  %5292 = vmatprep.subr.bf16.mxu1 %v6528_v40 }
 0x1cc   :  { %5269 = vmatpush1.bf16.msra.mxu0 %v6745_v13  ;;  %5294 = vmatpush3.bf16.msra.mxu1 %v6769_v29 }
 0x1cd   :  { %5271 = vmatprep.subr.bf16.mxu0 %v6748_v15  ;;  %5295 = vmatprep.subr.bf16.mxu1 %v6528_v40 }
 0x1d0   :  { %5273 = vmatpush1.bf16.msra.mxu0 %v6758_v23  ;;  %5297 = vmatpush3.bf16.msra.mxu1 %v6777_v32 }
 0x1d1   :  { %5299 = vmatprep.subr.bf16.mxu0 %v6685_v9  ;;  %5330 = vmatprep.subr.bf16.mxu1 %v6528_v40 }
 0x286   :  { %v781_v39 = vpop.f32.mrb[2].mxu0  ;;  %v852_v44 = vpop.f32.mrb[10].mxu1 }
 0x287   :  { %v6116_v7 = vadd.f32 %v781_v39, %v6841_v3  ;;  %v783_v8 = vpop.f32.mrb[3].mxu0  ;;  %v4496_v11 = vpop.f32.mrb[11].mxu1  ;;  %v870_v9 = vadd.f32 %v6852_v28, %v852_v44  ;;  %v1327_v44 = vld [vmem:[#allocation9 + $0x18] sm:$0xff] }
 0x288   :  { %v6117_v14 = vadd.f32 %v783_v8, %v6845_v6  ;;  %v1331_v8 = vld [vmem:[#allocation9 + $0x38] sm:$0xff] }
 0x289   :  { %v4014_v12 = vmul.f32 -1.442695, %v6116_v7 }
 0x28a   :  { %v4015_v16 = vmul.f32 -1.442695, %v6117_v14 }
 0x28b   :  { %6202 = vpow2.f32 %v4014_v12  ;;  %v1330_v12 = vld [vmem:[#allocation9 + $0x30] sm:$0xff] }
 0x28c   :  { %6204 = vpow2.f32 %v4015_v16  ;;  %v1337_v16 = vld [vmem:[#allocation9 + $0x68] sm:$0xff] }
 0x295   :  { %v6203_v19 = vpop.eup %6202 }
 0x296   :  { %v860_v21 = vadd.f32 1.0, %v6203_v19  ;;  %v6205_v22 = vpop.eup %6204  ;;  %v1340_v19 = vld [vmem:[#allocation9 + $0x80] sm:$0xff] }
 0x297   :  { %v867_v27 = vadd.f32 1.0, %v6205_v22  ;;  %v1336_v22 = vld [vmem:[#allocation9 + $0x60] sm:$0xff] }
 0x298   :  { %6206 = vrcp.f32 %v860_v21  ;;  %v6967_v21 = vpack.c.bf16 %v1340_v19, %v1337_v16 }
 0x299   :  { %6208 = vrcp.f32 %v867_v27  ;;  %v1339_v27 = vld [vmem:[#allocation9 + $0x78] sm:$0xff] }
 0x2a2   :  { %v6207_v30 = vpop.eup %6206 }
 0x2a3   :  { %v871_v31 = vmul.f32 %v6207_v30, %v870_v9  ;;  %v6209_v38 = vpop.eup %6208  ;;  %v6969_v9 = vpack.c.bf16 %v1339_v27, %v1336_v22  ;;  %v1343_v30 = vld [vmem:[#allocation9 + $0x98] sm:$0xff]  ;;  %v1366_v22 = vld [vmem:[#allocation9 + $0x150] sm:$0xff]  ;;  %v1369_v27 = vld [vmem:[#allocation9 + $0x168] sm:$0xff] }
 0x2a4   :  { %v874_v42 = vsub.f32 1.0, %v6209_v38  ;;  %v876_v52 = vmul.f32 %v6209_v38, %v6855_v5  ;;  %v1342_v38 = vld [vmem:[#allocation9 + $0x90] sm:$0xff] }
 0x2a5   :  { %v872_v33 = vadd.f32 %v871_v31, %v6823_v43  ;;  %v1346_v31 = vld [vmem:[#allocation9 + $0xb0] sm:$0xff] }
 0x2a7   :  { %6210 = vtanh.f32 %v872_v33  ;;  %v6973_v33 = vpack.c.bf16 %v1346_v31, %v1343_v30  ;;  %v1368_v30 = vld [vmem:[#allocation9 + $0x160] sm:$0xff]  ;;  %v1371_v31 = vld [vmem:[#allocation9 + $0x178] sm:$0xff] }
 0x2b1   :  { %v6211_v47 = vpop.eup %6210 }
 0x2b2   :  { %v875_v49 = vmul.f32 %v6211_v47, %v874_v42  ;;  %v1345_v42 = vld [vmem:[#allocation9 + $0xa8] sm:$0xff]  ;;  %v1344_v47 = vld [vmem:[#allocation9 + $0xa0] sm:$0xff] }
 0x2b4   :  { %v6899_v54 = vadd.f32 %v876_v52, %v875_v49  ;;  %v6975_v49 = vpack.c.bf16 %v1345_v42, %v1342_v38  ;;  %v1347_v52 = vld [vmem:[#allocation9 + $0xb8] sm:$0xff]  ;;  %v7013_v38 = vpack.c.bf16 %v1369_v27, %v1366_v22  ;;  %v7017_v42 = vpack.c.bf16 %v1371_v31, %v1368_v30  ;;  %v1548_v22 = vld [vmem:[#allocation9 + $0x28] sm:$0xff]  ;;  %v1551_v30 = vld [vmem:[#allocation9 + $0x40] sm:$0xff] }
 0x2b5   :  { %v1554_v31 = vld [vmem:[#allocation9 + $0x58] sm:$0xff] }
 0x2b6   :  { %999 = vmatmul.mubr.f32.vlgmr.msra.gmra.mrb[4].mxu0 %v6899_v54  ;;  %4530 = vmatmul.mubr.f32.vlgmr.msra.gmra.mrb[12].mxu1 %v6899_v54 }
 0x2b7   :  { %5301 = vmatpush1.bf16.msra.mxu0 %v6687_v17  ;;  %5332 = vmatpush3.bf16.msra.mxu1 %v6708_v41 }
 0x2b8   :  { %5303 = vmatprep.subr.bf16.mxu0 %v6690_v18  ;;  %5333 = vmatprep.subr.bf16.mxu1 %v6528_v40 }
 0x2b9   :  { %1217 = vmatprep.mubr.f32.mxu0 %v6527_v0  ;;  %4564 = vmatprep.mubr.msk.f32.mxu1 %vm6529_vm0, %v6527_v0 }
 0x2bb   :  { %5305 = vmatpush1.bf16.msra.mxu0 %v6695_v25  ;;  %5335 = vmatpush3.bf16.msra.mxu1 %v6718_v51 }
 0x2bc   :  { %5307 = vmatprep.subr.bf16.mxu0 %v6698_v26  ;;  %5336 = vmatprep.subr.bf16.mxu1 %v6528_v40 }
 0x2bf   :  { %5309 = vmatpush1.bf16.msra.mxu0 %v6702_v34  ;;  %5338 = vmatpush3.bf16.msra.mxu1 %v6729_v61 }
 0x2c0   :  { %5311 = vmatprep.subr.bf16.mxu0 %v6705_v35  ;;  %5339 = vmatprep.subr.bf16.mxu1 %v6528_v40 }
 0x2c3   :  { %5313 = vmatpush1.bf16.msra.mxu0 %v6712_v45  ;;  %5341 = vmatpush3.bf16.msra.mxu1 %v6740_v10 }
 0x2c4   :  { %5315 = vmatprep.subr.bf16.mxu0 %v6715_v46  ;;  %5342 = vmatprep.subr.bf16.mxu1 %v6528_v40 }
 0x2c7   :  { %5317 = vmatpush1.bf16.msra.mxu0 %v6723_v55  ;;  %5344 = vmatpush3.bf16.msra.mxu1 %v6751_v20 }
 0x2c8   :  { %5319 = vmatprep.subr.bf16.mxu0 %v6726_v56  ;;  %5345 = vmatprep.subr.bf16.mxu1 %v6528_v40 }
 0x2cb   :  { %5321 = vmatpush1.bf16.msra.mxu0 %v6734_v2  ;;  %5347 = vmatpush3.bf16.msra.mxu1 %v6762_v24 }
 0x2cc   :  { %5323 = vmatprep.subr.bf16.mxu0 %v6737_v4  ;;  %5348 = vmatprep.subr.bf16.mxu1 %v6528_v40 }
 0x2cf   :  { %5325 = vmatpush1.bf16.msra.mxu0 %v6745_v13  ;;  %5350 = vmatpush3.bf16.msra.mxu1 %v6769_v29 }
 0x2d0   :  { %5327 = vmatprep.subr.bf16.mxu0 %v6748_v15  ;;  %5351 = vmatprep.subr.bf16.mxu1 %v6528_v40 }
 0x2d3   :  { %5329 = vmatpush1.bf16.msra.mxu0 %v6758_v23  ;;  %5353 = vmatpush3.bf16.msra.mxu1 %v6777_v32 }
 0x2d4   :  { %5386 = vmatprep.subr.bf16.mxu1 %v6528_v40 }
 0x389   :  { %v1000_v17 = vpop.f32.mrb[4].mxu0  ;;  %v1071_v18 = vpop.f32.mrb[12].mxu1 }
 0x38a   :  { %v6118_v25 = vadd.f32 %v1000_v17, %v6841_v3  ;;  %v1002_v26 = vpop.f32.mrb[5].mxu0  ;;  %v4531_v34 = vpop.f32.mrb[13].mxu1  ;;  %v1089_v10 = vadd.f32 %v6852_v28, %v1071_v18  ;;  %v6978_v17 = vpack.c.bf16 %v1347_v52, %v1344_v47  ;;  %v1349_v18 = vld [vmem:[#allocation9 + $0xc8] sm:$0xff] }
 0x38b   :  { %v6119_v45 = vadd.f32 %v1002_v26, %v6845_v6  ;;  %v1348_v34 = vld [vmem:[#allocation9 + $0xc0] sm:$0xff] }
 0x38c   :  { %v4016_v35 = vmul.f32 -1.442695, %v6118_v25  ;;  %v1352_v25 = vld [vmem:[#allocation9 + $0xe0] sm:$0xff] }
 0x38d   :  { %v4017_v46 = vmul.f32 -1.442695, %v6119_v45  ;;  %v6982_v26 = vpack.c.bf16 %v1352_v25, %v1349_v18  ;;  %v1350_v45 = vld [vmem:[#allocation9 + $0xd0] sm:$0xff] }
 0x38e   :  { %6212 = vpow2.f32 %v4016_v35  ;;  %v1351_v35 = vld [vmem:[#allocation9 + $0xd8] sm:$0xff] }
 0x38f   :  { %6214 = vpow2.f32 %v4017_v46  ;;  %v6985_v46 = vpack.c.bf16 %v1351_v35, %v1348_v34 }
 0x398   :  { %v6213_v55 = vpop.eup %6212 }
 0x399   :  { %v1079_v56 = vadd.f32 1.0, %v6213_v55  ;;  %v6215_v2 = vpop.eup %6214  ;;  %v1353_v55 = vld [vmem:[#allocation9 + $0xe8] sm:$0xff] }
 0x39a   :  { %v1086_v4 = vadd.f32 1.0, %v6215_v2  ;;  %v1355_v2 = vld [vmem:[#allocation9 + $0xf8] sm:$0xff] }
 0x39b   :  { %6216 = vrcp.f32 %v1079_v56  ;;  %v6988_v56 = vpack.c.bf16 %v1353_v55, %v1350_v45 }
 0x39c   :  { %6218 = vrcp.f32 %v1086_v4  ;;  %v1358_v4 = vld [vmem:[#allocation9 + $0x110] sm:$0xff] }
 0x3a5   :  { %v6217_v13 = vpop.eup %6216 }
 0x3a6   :  { %v1090_v15 = vmul.f32 %v6217_v13, %v1089_v10  ;;  %v6219_v23 = vpop.eup %6218  ;;  %v1354_v10 = vld [vmem:[#allocation9 + $0xf0] sm:$0xff]  ;;  %v6992_v13 = vpack.c.bf16 %v1358_v4, %v1355_v2 }
 0x3a7   :  { %v1093_v24 = vsub.f32 1.0, %v6219_v23  ;;  %v1095_v43 = vmul.f32 %v6219_v23, %v6899_v54  ;;  %v1359_v23 = vld [vmem:[#allocation9 + $0x118] sm:$0xff] }
 0x3a8   :  { %v1091_v20 = vadd.f32 %v1090_v15, %v6827_v50  ;;  %v1325_v50 = vld [vmem:[#allocation9 + $0x8] sm:$0xff] }
 0x3a9   :  { %v6955_v39 = vpack.c.bf16 %v1328_v60, %v1325_v50  ;;  %v1357_v15 = vld [vmem:[#allocation9 + $0x108] sm:$0xff]  ;;  %v1360_v50 = vld [vmem:[#allocation9 + $0x120] sm:$0xff] }
 0x3aa   :  { %6220 = vtanh.f32 %v1091_v20  ;;  %v1356_v20 = vld [vmem:[#allocation9 + $0x100] sm:$0xff] }
 0x3ab   :  { %5355 = vmatprep.subr.bf16.mxu0 %v6955_v39 }
 0x3b4   :  { %v6221_v29 = vpop.eup %6220 }
 0x3b5   :  { %v1094_v32 = vmul.f32 %v6221_v29, %v1093_v24  ;;  %v6995_v24 = vpack.c.bf16 %v1357_v15, %v1354_v10  ;;  %v6997_v29 = vpack.c.bf16 %v1359_v23, %v1356_v20 }
 0x3b7   :  { %v6942_v58 = vadd.f32 %v1095_v43, %v1094_v32  ;;  %v1361_v32 = vld [vmem:[#allocation9 + $0x128] sm:$0xff]  ;;  %v1364_v43 = vld [vmem:[#allocation9 + $0x140] sm:$0xff] }
 0x3b8   :  { %v7000_v60 = vpack.c.bf16 %v1364_v43, %v1361_v32 }
 0x3b9   :  { %1218 = vmatmul.mubr.f32.vlgmr.msra.gmra.mrb[6].mxu0 %v6942_v58  ;;  %4565 = vmatmul.mubr.f32.vlgmr.msra.gmra.mrb[14].mxu1 %v6942_v58 }
 0x3ba   :  { %5388 = vmatpush3.bf16.msra.mxu1 %v6708_v41  ;;  %1436 = vmatprep.mubr.f32.mxu0 %v6527_v0  ;;  %v1324_v41 = vld [vmem:[#allocation9] sm:$0xff] }
 0x3bb   :  { %5389 = vmatprep.subr.bf16.mxu1 %v6528_v40  ;;  %4599 = vmatprep.mubr.msk.f32.mxu1 %vm6529_vm0, %v6527_v0  ;;  %v6957_v7 = vpack.c.bf16 %v1327_v44, %v1324_v41  ;;  %v1363_v41 = vld [vmem:[#allocation9 + $0x138] sm:$0xff]  ;;  %v1362_v44 = vld [vmem:[#allocation9 + $0x130] sm:$0xff] }
 0x3bd   :  { %5357 = vmatpush1.bf16.msra.mxu0 %v6957_v7 }
 0x3be   :  { %5391 = vmatpush3.bf16.msra.mxu1 %v6718_v51  ;;  %v1334_v51 = vld [vmem:[#allocation9 + $0x50] sm:$0xff] }
 0x3bf   :  { %5392 = vmatprep.subr.bf16.mxu1 %v6528_v40  ;;  %v6961_v11 = vpack.c.bf16 %v1334_v51, %v1331_v8  ;;  %v1365_v8 = vld [vmem:[#allocation9 + $0x148] sm:$0xff]  ;;  %v7003_v51 = vpack.c.bf16 %v1363_v41, %v1360_v50 }
 0x3c0   :  { %v7007_v16 = vpack.c.bf16 %v1365_v8, %v1362_v44 }
 0x3c1   :  { %5359 = vmatprep.subr.bf16.mxu0 %v6961_v11 }
 0x3c2   :  { %5394 = vmatpush3.bf16.msra.mxu1 %v6729_v61  ;;  %v1333_v61 = vld [vmem:[#allocation9 + $0x48] sm:$0xff] }
 0x3c3   :  { %5395 = vmatprep.subr.bf16.mxu1 %v6528_v40  ;;  %v6963_v14 = vpack.c.bf16 %v1333_v61, %v1330_v12  ;;  %v1367_v12 = vld [vmem:[#allocation9 + $0x158] sm:$0xff]  ;;  %v1370_v61 = vld [vmem:[#allocation9 + $0x170] sm:$0xff] }
 0x3c4   :  { %v7009_v19 = vpack.c.bf16 %v1370_v61, %v1367_v12 }
 0x3c5   :  { %5361 = vmatpush1.bf16.msra.mxu0 %v6963_v14 }
 0x3c6   :  { %5363 = vmatprep.subr.bf16.mxu0 %v6967_v21  ;;  %5397 = vmatpush3.bf16.msra.mxu1 %v6978_v17 }
 0x3c7   :  { %5398 = vmatprep.subr.bf16.mxu1 %v6528_v40 }
 0x3c9   :  { %5365 = vmatpush1.bf16.msra.mxu0 %v6969_v9 }
 0x3ca   :  { %5367 = vmatprep.subr.bf16.mxu0 %v6973_v33  ;;  %5400 = vmatpush3.bf16.msra.mxu1 %v6988_v56 }
 0x3cb   :  { %5401 = vmatprep.subr.bf16.mxu1 %v6528_v40 }
 0x3cd   :  { %5369 = vmatpush1.bf16.msra.mxu0 %v6975_v49 }
 0x3ce   :  { %5371 = vmatprep.subr.bf16.mxu0 %v6982_v26  ;;  %5403 = vmatpush3.bf16.msra.mxu1 %v6997_v29 }
 0x3cf   :  { %5404 = vmatprep.subr.bf16.mxu1 %v6528_v40 }
 0x3d1   :  { %5373 = vmatpush1.bf16.msra.mxu0 %v6985_v46 }
 0x3d2   :  { %5375 = vmatprep.subr.bf16.mxu0 %v6992_v13  ;;  %5406 = vmatpush3.bf16.msra.mxu1 %v7007_v16 }
 0x3d3   :  { %5407 = vmatprep.subr.bf16.mxu1 %v6528_v40 }
 0x3d5   :  { %5377 = vmatpush1.bf16.msra.mxu0 %v6995_v24 }
 0x3d6   :  { %5379 = vmatprep.subr.bf16.mxu0 %v7000_v60  ;;  %5409 = vmatpush3.bf16.msra.mxu1 %v7017_v42 }
 0x3d7   :  { %5442 = vmatprep.subr.bf16.mxu1 %v6528_v40 }
 0x3d9   :  { %5381 = vmatpush1.bf16.msra.mxu0 %v7003_v51 }
 0x3da   :  { %5383 = vmatprep.subr.bf16.mxu0 %v7009_v19 }
 0x3dd   :  { %5385 = vmatpush1.bf16.msra.mxu0 %v7013_v38 }
 0x3de   :  { %5411 = vmatprep.subr.bf16.mxu0 %v6955_v39 }
 0x48c   :  { %v1219_v47 = vpop.f32.mrb[6].mxu0  ;;  %v1290_v52 = vpop.f32.mrb[14].mxu1 }
 0x48d   :  { %v6120_v18 = vadd.f32 %v1219_v47, %v6841_v3  ;;  %v1221_v25 = vpop.f32.mrb[7].mxu0  ;;  %v4566_v34 = vpop.f32.mrb[15].mxu1  ;;  %v1308_v20 = vadd.f32 %v6852_v28, %v1290_v52  ;;  %v7056_v47 = vpack.c.bf16 %v1554_v31, %v1551_v30  ;;  %v1557_v52 = vld [vmem:[#allocation9 + $0x70] sm:$0xff] }
 0x48e   :  { %v6121_v45 = vadd.f32 %v1221_v25, %v6845_v6 }
 0x48f   :  { %v4018_v35 = vmul.f32 -1.442695, %v6120_v18  ;;  %v1560_v18 = vld [vmem:[#allocation9 + $0x88] sm:$0xff] }
 0x490   :  { %v4019_v55 = vmul.f32 -1.442695, %v6121_v45  ;;  %v7060_v25 = vpack.c.bf16 %v1560_v18, %v1557_v52 }
 0x491   :  { %6222 = vpow2.f32 %v4018_v35 }
 0x492   :  { %6224 = vpow2.f32 %v4019_v55 }
 0x49b   :  { %v6223_v2 = vpop.eup %6222 }
 0x49c   :  { %v1298_v4 = vadd.f32 1.0, %v6223_v2  ;;  %v6225_v10 = vpop.eup %6224 }
 0x49d   :  { %v1305_v15 = vadd.f32 1.0, %v6225_v10 }
 0x49e   :  { %6226 = vrcp.f32 %v1298_v4 }
 0x49f   :  { %6228 = vrcp.f32 %v1305_v15 }
 0x4a8   :  { %v6227_v23 = vpop.eup %6226 }
 0x4a9   :  { %v1309_v32 = vmul.f32 %v6227_v23, %v1308_v20  ;;  %v6229_v50 = vpop.eup %6228 }
 0x4aa   :  { %v1312_v41 = vsub.f32 1.0, %v6229_v50  ;;  %v1314_v12 = vmul.f32 %v6229_v50, %v6942_v58 }
 0x4ab   :  { %v1310_v43 = vadd.f32 %v1309_v32, %v6825_v48  ;;  %v1545_v48 = vld [vmem:[#allocation9 + $0x10] sm:$0xff] }
 0x4ac   :  { %v7052_v27 = vpack.c.bf16 %v1548_v22, %v1545_v48 }
 0x4ad   :  { %6230 = vtanh.f32 %v1310_v43 }
 0x4b7   :  { %v6231_v44 = vpop.eup %6230 }
 0x4b8   :  { %v1313_v8 = vmul.f32 %v6231_v44, %v1312_v41 }
 0x4ba   :  { %v7029_v61 = vadd.f32 %v1314_v12, %v1313_v8 }
 0x4bc   :  { %1437 = vmatmul.mubr.f32.vlgmr.msra.gmra.mrb[8].mxu0 %v7029_v61  ;;  %4600 = vmatmul.mubr.f32.vlgmr.msra.gmra.mrb[16].mxu1 %v7029_v61 }
 0x4bd   :  { %5413 = vmatpush1.bf16.msra.mxu0 %v6957_v7  ;;  %1655 = vmatprep.mubr.f32.mxu0 %v6527_v0 }
 0x4be   :  { %5415 = vmatprep.subr.bf16.mxu0 %v6961_v11  ;;  %4634 = vmatprep.mubr.msk.f32.mxu1 %vm6529_vm0, %v6527_v0 }
 0x4bf   :  { %5444 = vmatpush3.bf16.msra.mxu1 %v7052_v27 }
 0x4c0   :  { %5445 = vmatprep.subr.bf16.mxu1 %v6528_v40 }
 0x4c1   :  { %5417 = vmatpush1.bf16.msra.mxu0 %v6963_v14 }
 0x4c2   :  { %5419 = vmatprep.subr.bf16.mxu0 %v6967_v21 }
 0x4c3   :  { %5447 = vmatpush3.bf16.msra.mxu1 %v7056_v47 }
 0x4c4   :  { %5448 = vmatprep.subr.bf16.mxu1 %v6528_v40 }
 0x4c5   :  { %5421 = vmatpush1.bf16.msra.mxu0 %v6969_v9 }
 0x4c6   :  { %5423 = vmatprep.subr.bf16.mxu0 %v6973_v33 }
 0x4c7   :  { %5450 = vmatpush3.bf16.msra.mxu1 %v7060_v25 }
 0x4c8   :  { %5451 = vmatprep.subr.bf16.mxu1 %v6528_v40 }
 0x4c9   :  { %5425 = vmatpush1.bf16.msra.mxu0 %v6975_v49 }
 0x4ca   :  { %5427 = vmatprep.subr.bf16.mxu0 %v6982_v26 }
 0x4cb   :  { %5453 = vmatpush3.bf16.msra.mxu1 %v6978_v17 }
 0x4cc   :  { %5454 = vmatprep.subr.bf16.mxu1 %v6528_v40 }
 0x4cd   :  { %5429 = vmatpush1.bf16.msra.mxu0 %v6985_v46 }
 0x4ce   :  { %5431 = vmatprep.subr.bf16.mxu0 %v6992_v13 }
 0x4cf   :  { %5456 = vmatpush3.bf16.msra.mxu1 %v6988_v56 }
 0x4d0   :  { %5457 = vmatprep.subr.bf16.mxu1 %v6528_v40 }
 0x4d1   :  { %5433 = vmatpush1.bf16.msra.mxu0 %v6995_v24 }
 0x4d2   :  { %5435 = vmatprep.subr.bf16.mxu0 %v7000_v60 }
 0x4d3   :  { %5459 = vmatpush3.bf16.msra.mxu1 %v6997_v29 }
 0x4d4   :  { %5460 = vmatprep.subr.bf16.mxu1 %v6528_v40 }
 0x4d5   :  { %5437 = vmatpush1.bf16.msra.mxu0 %v7003_v51 }
 0x4d6   :  { %5439 = vmatprep.subr.bf16.mxu0 %v7009_v19 }
 0x4d7   :  { %5462 = vmatpush3.bf16.msra.mxu1 %v7007_v16 }
 0x4d8   :  { %5463 = vmatprep.subr.bf16.mxu1 %v6528_v40 }
 0x4d9   :  { %5441 = vmatpush1.bf16.msra.mxu0 %v7013_v38 }
 0x4da   :  { %5467 = vmatprep.subr.bf16.mxu0 %v6955_v39 }
 0x4db   :  { %5465 = vmatpush3.bf16.msra.mxu1 %v7017_v42 }
 0x4dc   :  { %5498 = vmatprep.subr.bf16.mxu1 %v6528_v40 }
 0x58f   :  { %v1438_v34 = vpop.f32.mrb[8].mxu0  ;;  %v1509_v35 = vpop.f32.mrb[16].mxu1 }
 0x590   :  { %v6122_v45 = vadd.f32 %v1438_v34, %v6841_v3  ;;  %v1440_v55 = vpop.f32.mrb[9].mxu0  ;;  %v4601_v2 = vpop.f32.mrb[17].mxu1  ;;  %v1527_v50 = vadd.f32 %v6852_v28, %v1509_v35 }
 0x591   :  { %v6123_v10 = vadd.f32 %v1440_v55, %v6845_v6 }
 0x592   :  { %v4020_v4 = vmul.f32 -1.442695, %v6122_v45 }
 0x593   :  { %v4021_v15 = vmul.f32 -1.442695, %v6123_v10 }
 0x594   :  { %6232 = vpow2.f32 %v4020_v4 }
 0x595   :  { %6234 = vpow2.f32 %v4021_v15 }
 0x59e   :  { %v6233_v20 = vpop.eup %6232 }
 0x59f   :  { %v1517_v23 = vadd.f32 1.0, %v6233_v20  ;;  %v6235_v32 = vpop.eup %6234 }
 0x5a0   :  { %v1524_v43 = vadd.f32 1.0, %v6235_v32 }
 0x5a1   :  { %6236 = vrcp.f32 %v1517_v23 }
 0x5a2   :  { %6238 = vrcp.f32 %v1524_v43 }
 0x5ab   :  { %v6237_v41 = vpop.eup %6236 }
 0x5ac   :  { %v1528_v44 = vmul.f32 %v6237_v41, %v1527_v50  ;;  %v6239_v12 = vpop.eup %6238 }
 0x5ad   :  { %v1531_v48 = vsub.f32 1.0, %v6239_v12  ;;  %v1533_v31 = vmul.f32 %v6239_v12, %v7029_v61 }
 0x5ae   :  { %v1529_v8 = vadd.f32 %v1528_v44, %v6831_v57 }
 0x5b0   :  { %6240 = vtanh.f32 %v1529_v8 }
 0x5ba   :  { %v6241_v22 = vpop.eup %6240 }
 0x5bb   :  { %v1532_v30 = vmul.f32 %v6241_v22, %v1531_v48 }
 0x5bd   :  { %v7079_v52 = vadd.f32 %v1533_v31, %v1532_v30  ;;  %v2209_v30 = vld [vmem:[#allocation10] sm:$0xff]  ;;  %v2212_v31 = vld [vmem:[#allocation10 + $0x18] sm:$0xff] }
 0x5bf   :  { %1656 = vmatmul.mubr.f32.vlgmr.msra.gmra.mrb[10].mxu0 %v7079_v52  ;;  %4635 = vmatmul.mubr.f32.vlgmr.msra.gmra.mrb[18].mxu1 %v7079_v52 }
 0x5c0   :  { %5469 = vmatpush1.bf16.msra.mxu0 %v6957_v7  ;;  %5500 = vmatpush3.bf16.msra.mxu1 %v7052_v27 }
 0x5c1   :  { %5471 = vmatprep.subr.bf16.mxu0 %v6961_v11  ;;  %5501 = vmatprep.subr.bf16.mxu1 %v6528_v40 }
 0x5c2   :  { %1874 = vmatprep.mubr.f32.mxu0 %v6527_v0  ;;  %4669 = vmatprep.mubr.msk.f32.mxu1 %vm6529_vm0, %v6527_v0 }
 0x5c4   :  { %5473 = vmatpush1.bf16.msra.mxu0 %v6963_v14  ;;  %5503 = vmatpush3.bf16.msra.mxu1 %v7056_v47 }
 0x5c5   :  { %5475 = vmatprep.subr.bf16.mxu0 %v6967_v21  ;;  %5504 = vmatprep.subr.bf16.mxu1 %v6528_v40 }
 0x5c8   :  { %5477 = vmatpush1.bf16.msra.mxu0 %v6969_v9  ;;  %5506 = vmatpush3.bf16.msra.mxu1 %v7060_v25 }
 0x5c9   :  { %5479 = vmatprep.subr.bf16.mxu0 %v6973_v33  ;;  %5507 = vmatprep.subr.bf16.mxu1 %v6528_v40 }
 0x5cc   :  { %5481 = vmatpush1.bf16.msra.mxu0 %v6975_v49  ;;  %5509 = vmatpush3.bf16.msra.mxu1 %v6978_v17 }
 0x5cd   :  { %5483 = vmatprep.subr.bf16.mxu0 %v6982_v26  ;;  %5510 = vmatprep.subr.bf16.mxu1 %v6528_v40 }
 0x5d0   :  { %5485 = vmatpush1.bf16.msra.mxu0 %v6985_v46  ;;  %5512 = vmatpush3.bf16.msra.mxu1 %v6988_v56 }
 0x5d1   :  { %5487 = vmatprep.subr.bf16.mxu0 %v6992_v13  ;;  %5513 = vmatprep.subr.bf16.mxu1 %v6528_v40 }
 0x5d4   :  { %5489 = vmatpush1.bf16.msra.mxu0 %v6995_v24  ;;  %5515 = vmatpush3.bf16.msra.mxu1 %v6997_v29 }
 0x5d5   :  { %5491 = vmatprep.subr.bf16.mxu0 %v7000_v60  ;;  %5516 = vmatprep.subr.bf16.mxu1 %v6528_v40 }
 0x5d8   :  { %5493 = vmatpush1.bf16.msra.mxu0 %v7003_v51  ;;  %5518 = vmatpush3.bf16.msra.mxu1 %v7007_v16 }
 0x5d9   :  { %5495 = vmatprep.subr.bf16.mxu0 %v7009_v19  ;;  %5519 = vmatprep.subr.bf16.mxu1 %v6528_v40 }
 0x5dc   :  { %5497 = vmatpush1.bf16.msra.mxu0 %v7013_v38  ;;  %5521 = vmatpush3.bf16.msra.mxu1 %v7017_v42 }
 0x5dd   :  { %5523 = vmatprep.subr.bf16.mxu0 %v6955_v39  ;;  %5554 = vmatprep.subr.bf16.mxu1 %v6528_v40 }
 0x692   :  { %v1657_v57 = vpop.f32.mrb[10].mxu0  ;;  %v1728_v18 = vpop.f32.mrb[18].mxu1 }
 0x693   :  { %v6124_v34 = vadd.f32 %v1657_v57, %v6841_v3  ;;  %v1659_v35 = vpop.f32.mrb[11].mxu0  ;;  %v4636_v45 = vpop.f32.mrb[19].mxu1  ;;  %v1746_v39 = vadd.f32 %v6852_v28, %v1728_v18  ;;  %v2216_v18 = vld [vmem:[#allocation10 + $0x38] sm:$0xff] }
 0x694   :  { %v6125_v2 = vadd.f32 %v1659_v35, %v6845_v6 }
 0x695   :  { %v4022_v55 = vmul.f32 -1.442695, %v6124_v34  ;;  %v2219_v34 = vld [vmem:[#allocation10 + $0x50] sm:$0xff] }
 0x696   :  { %v4023_v4 = vmul.f32 -1.442695, %v6125_v2  ;;  %v2220_v2 = vld [vmem:[#allocation10 + $0x58] sm:$0xff] }
 0x697   :  { %6242 = vpow2.f32 %v4022_v55  ;;  %v2217_v55 = vld [vmem:[#allocation10 + $0x40] sm:$0xff] }
 0x698   :  { %6244 = vpow2.f32 %v4023_v4  ;;  %v5580_v4 = vpack.c.bf16 %v2212_v31, %v2209_v30  ;;  %v2239_v30 = vld [vmem:[#allocation10 + $0xf0] sm:$0xff]  ;;  %v2242_v31 = vld [vmem:[#allocation10 + $0x108] sm:$0xff] }
 0x6a1   :  { %v6243_v10 = vpop.eup %6242 }
 0x6a2   :  { %v1736_v15 = vadd.f32 1.0, %v6243_v10  ;;  %v6245_v20 = vpop.eup %6244  ;;  %v5582_v10 = vpack.c.bf16 %v2219_v34, %v2216_v18  ;;  %v2249_v18 = vld [vmem:[#allocation10 + $0x140] sm:$0xff]  ;;  %v2247_v34 = vld [vmem:[#allocation10 + $0x130] sm:$0xff] }
 0x6a3   :  { %v1743_v23 = vadd.f32 1.0, %v6245_v20  ;;  %v2218_v20 = vld [vmem:[#allocation10 + $0x48] sm:$0xff] }
 0x6a4   :  { %6246 = vrcp.f32 %v1736_v15  ;;  %v2215_v15 = vld [vmem:[#allocation10 + $0x30] sm:$0xff] }
 0x6a5   :  { %6248 = vrcp.f32 %v1743_v23  ;;  %v5614_v23 = vpack.c.bf16 %v2220_v2, %v2217_v55 }
 0x6ae   :  { %v6247_v32 = vpop.eup %6246 }
 0x6af   :  { %v1747_v43 = vmul.f32 %v6247_v32, %v1746_v39  ;;  %v6249_v41 = vpop.eup %6248  ;;  %v2225_v39 = vld [vmem:[#allocation10 + $0x80] sm:$0xff]  ;;  %v2223_v32 = vld [vmem:[#allocation10 + $0x70] sm:$0xff] }
 0x6b0   :  { %v1750_v44 = vsub.f32 1.0, %v6249_v41  ;;  %v1752_v48 = vmul.f32 %v6249_v41, %v7079_v52 }
 0x6b1   :  { %v1748_v50 = vadd.f32 %v1747_v43, %v6829_v53  ;;  %v2210_v53 = vld [vmem:[#allocation10 + $0x8] sm:$0xff] }
 0x6b2   :  { %v2226_v43 = vld [vmem:[#allocation10 + $0x88] sm:$0xff] }
 0x6b3   :  { %6250 = vtanh.f32 %v1748_v50  ;;  %v5584_v50 = vpack.c.bf16 %v2218_v20, %v2215_v15  ;;  %v2252_v15 = vld [vmem:[#allocation10 + $0x158] sm:$0xff]  ;;  %v2255_v20 = vld [vmem:[#allocation10 + $0x170] sm:$0xff] }
 0x6bd   :  { %v6251_v8 = vpop.eup %6250 }
 0x6be   :  { %v1751_v12 = vmul.f32 %v6251_v8, %v1750_v44  ;;  %v5618_v44 = vpack.c.bf16 %v2226_v43, %v2223_v32  ;;  %v2221_v8 = vld [vmem:[#allocation10 + $0x60] sm:$0xff]  ;;  %v5606_v32 = vpack.c.bf16 %v2255_v20, %v2252_v15  ;;  %v2562_v20 = vld [vmem:[#allocation12 + $0x158] sm:$0xff] }
 0x6c0   :  { %v7123_v22 = vadd.f32 %v1752_v48, %v1751_v12  ;;  %v2224_v12 = vld [vmem:[#allocation10 + $0x78] sm:$0xff] }
 0x6c1   :  { %v2228_v48 = vld [vmem:[#allocation10 + $0x98] sm:$0xff] }
 0x6c2   :  { %1875 = vmatmul.mubr.f32.vlgmr.msra.gmra.mrb[12].mxu0 %v7123_v22  ;;  %4670 = vmatmul.mubr.f32.vlgmr.msra.gmra.mrb[20].mxu1 %v7123_v22 }
 0x6c3   :  { %5525 = vmatpush1.bf16.msra.mxu0 %v6957_v7  ;;  %5556 = vmatpush3.bf16.msra.mxu1 %v7052_v27  ;;  %v2213_v7 = vld [vmem:[#allocation10 + $0x20] sm:$0xff] }
 0x6c4   :  { %5527 = vmatprep.subr.bf16.mxu0 %v6961_v11  ;;  %5557 = vmatprep.subr.bf16.mxu1 %v6528_v40  ;;  %v2211_v11 = vld [vmem:[#allocation10 + $0x10] sm:$0xff] }
 0x6c5   :  { %2093 = vmatprep.mubr.f32.mxu0 %v6527_v0  ;;  %4704 = vmatprep.mubr.msk.f32.mxu1 %vm6529_vm0, %v6527_v0 }
 0x6c7   :  { %5529 = vmatpush1.bf16.msra.mxu0 %v6963_v14  ;;  %5559 = vmatpush3.bf16.msra.mxu1 %v7056_v47  ;;  %v5578_v14 = vpack.c.bf16 %v2213_v7, %v2210_v53  ;;  %v2231_v53 = vld [vmem:[#allocation10 + $0xb0] sm:$0xff]  ;;  %v2229_v7 = vld [vmem:[#allocation10 + $0xa0] sm:$0xff] }
 0x6c8   :  { %5531 = vmatprep.subr.bf16.mxu0 %v6967_v21  ;;  %5560 = vmatprep.subr.bf16.mxu1 %v6528_v40  ;;  %v2214_v21 = vld [vmem:[#allocation10 + $0x28] sm:$0xff] }
 0x6cb   :  { %5533 = vmatpush1.bf16.msra.mxu0 %v6969_v9  ;;  %5562 = vmatpush3.bf16.msra.mxu1 %v7060_v25  ;;  %v5610_v9 = vpack.c.bf16 %v2214_v21, %v2211_v11  ;;  %v2232_v11 = vld [vmem:[#allocation10 + $0xb8] sm:$0xff]  ;;  %v5590_v21 = vpack.c.bf16 %v2231_v53, %v2228_v48  ;;  %v2525_v53 = vld [vmem:[#allocation12 + $0x30] sm:$0xff] }
 0x6cc   :  { %5535 = vmatprep.subr.bf16.mxu0 %v6973_v33  ;;  %5563 = vmatprep.subr.bf16.mxu1 %v6528_v40 }
 0x6cf   :  { %5537 = vmatpush1.bf16.msra.mxu0 %v6975_v49  ;;  %5565 = vmatpush3.bf16.msra.mxu1 %v6978_v17 }
 0x6d0   :  { %5539 = vmatprep.subr.bf16.mxu0 %v6982_v26  ;;  %5566 = vmatprep.subr.bf16.mxu1 %v6528_v40 }
 0x6d3   :  { %5541 = vmatpush1.bf16.msra.mxu0 %v6985_v46  ;;  %5568 = vmatpush3.bf16.msra.mxu1 %v6988_v56 }
 0x6d4   :  { %5543 = vmatprep.subr.bf16.mxu0 %v6992_v13  ;;  %5569 = vmatprep.subr.bf16.mxu1 %v6528_v40 }
 0x6d7   :  { %5545 = vmatpush1.bf16.msra.mxu0 %v6995_v24  ;;  %5571 = vmatpush3.bf16.msra.mxu1 %v6997_v29 }
 0x6d8   :  { %5547 = vmatprep.subr.bf16.mxu0 %v7000_v60  ;;  %5572 = vmatprep.subr.bf16.mxu1 %v6528_v40 }
 0x6db   :  { %5549 = vmatpush1.bf16.msra.mxu0 %v7003_v51  ;;  %5574 = vmatpush3.bf16.msra.mxu1 %v7007_v16 }
 0x6dc   :  { %5551 = vmatprep.subr.bf16.mxu0 %v7009_v19  ;;  %5575 = vmatprep.subr.bf16.mxu1 %v6528_v40 }
 0x6df   :  { %5553 = vmatpush1.bf16.msra.mxu0 %v7013_v38  ;;  %5577 = vmatpush3.bf16.msra.mxu1 %v7017_v42 }
 0x6e0   :  { %5579 = vmatprep.subr.bf16.mxu0 %v5578_v14  ;;  %5611 = vmatprep.subr.bf16.mxu1 %v5610_v9  ;;  %v5588_v14 = vpack.c.bf16 %v2224_v12, %v2221_v8  ;;  %v2519_v8 = vld [vmem:[#allocation12] sm:$0xff] }
 0x795   :  { %v1876_v33 = vpop.f32.mrb[12].mxu0  ;;  %v1947_v49 = vpop.f32.mrb[20].mxu1 }
 0x796   :  { %v6126_v17 = vadd.f32 %v1876_v33, %v6841_v3  ;;  %v1878_v26 = vpop.f32.mrb[13].mxu0  ;;  %v4671_v46 = vpop.f32.mrb[21].mxu1  ;;  %v1965_v19 = vadd.f32 %v6852_v28, %v1947_v49  ;;  %v2227_v33 = vld [vmem:[#allocation10 + $0x90] sm:$0xff]  ;;  %v2230_v49 = vld [vmem:[#allocation10 + $0xa8] sm:$0xff] }
 0x797   :  { %v6127_v13 = vadd.f32 %v1878_v26, %v6845_v6  ;;  %v2237_v26 = vld [vmem:[#allocation10 + $0xe0] sm:$0xff]  ;;  %v2235_v46 = vld [vmem:[#allocation10 + $0xd0] sm:$0xff] }
 0x798   :  { %v4024_v56 = vmul.f32 -1.442695, %v6126_v17  ;;  %v2234_v17 = vld [vmem:[#allocation10 + $0xc8] sm:$0xff] }
 0x799   :  { %v4025_v24 = vmul.f32 -1.442695, %v6127_v13  ;;  %v5592_v13 = vpack.c.bf16 %v2230_v49, %v2227_v33  ;;  %v2531_v33 = vld [vmem:[#allocation12 + $0x60] sm:$0xff]  ;;  %v2534_v49 = vld [vmem:[#allocation12 + $0x78] sm:$0xff] }
 0x79a   :  { %6252 = vpow2.f32 %v4024_v56  ;;  %v2238_v56 = vld [vmem:[#allocation10 + $0xe8] sm:$0xff] }
 0x79b   :  { %6254 = vpow2.f32 %v4025_v24  ;;  %v5594_v24 = vpack.c.bf16 %v2237_v26, %v2234_v17  ;;  %v7206_v17 = vpack.c.bf16 %v2534_v49, %v2531_v33  ;;  %v2538_v26 = vld [vmem:[#allocation12 + $0x98] sm:$0xff] }
 0x79c   :  { %v2554_v33 = vld [vmem:[#allocation12 + $0x118] sm:$0xff] }
 0x7a4   :  { %v6253_v29 = vpop.eup %6252 }
 0x7a5   :  { %v1955_v60 = vadd.f32 1.0, %v6253_v29  ;;  %v6255_v51 = vpop.eup %6254  ;;  %v5626_v29 = vpack.c.bf16 %v2238_v56, %v2235_v46  ;;  %v2541_v46 = vld [vmem:[#allocation12 + $0xb0] sm:$0xff] }
 0x7a6   :  { %v1962_v16 = vadd.f32 1.0, %v6255_v51  ;;  %v2236_v51 = vld [vmem:[#allocation10 + $0xd8] sm:$0xff]  ;;  %v7210_v56 = vpack.c.bf16 %v2541_v46, %v2538_v26  ;;  %v2557_v26 = vld [vmem:[#allocation12 + $0x130] sm:$0xff]  ;;  %v2560_v46 = vld [vmem:[#allocation12 + $0x148] sm:$0xff] }
 0x7a7   :  { %6256 = vrcp.f32 %v1955_v60  ;;  %v2233_v60 = vld [vmem:[#allocation10 + $0xc0] sm:$0xff] }
 0x7a8   :  { %6258 = vrcp.f32 %v1962_v16  ;;  %v2240_v16 = vld [vmem:[#allocation10 + $0xf8] sm:$0xff] }
 0x7b1   :  { %v6257_v38 = vpop.eup %6256 }
 0x7b2   :  { %v1966_v42 = vmul.f32 %v6257_v38, %v1965_v19  ;;  %v6259_v47 = vpop.eup %6258  ;;  %v2243_v19 = vld [vmem:[#allocation10 + $0x110] sm:$0xff]  ;;  %v2241_v38 = vld [vmem:[#allocation10 + $0x100] sm:$0xff] }
 0x7b3   :  { %v1969_v25 = vsub.f32 1.0, %v6259_v47  ;;  %v1971_v45 = vmul.f32 %v6259_v47, %v7123_v22  ;;  %v5598_v47 = vpack.c.bf16 %v2243_v19, %v2240_v16  ;;  %v2543_v19 = vld [vmem:[#allocation12 + $0xc0] sm:$0xff] }
 0x7b4   :  { %v1967_v27 = vadd.f32 %v1966_v42, %v6835_v62  ;;  %v2222_v62 = vld [vmem:[#allocation10 + $0x68] sm:$0xff]  ;;  %v2244_v42 = vld [vmem:[#allocation10 + $0x118] sm:$0xff] }
 0x7b5   :  { %v5586_v41 = vpack.c.bf16 %v2225_v39, %v2222_v62  ;;  %v2253_v62 = vld [vmem:[#allocation10 + $0x160] sm:$0xff] }
 0x7b6   :  { %6260 = vtanh.f32 %v1967_v27  ;;  %v5596_v27 = vpack.c.bf16 %v2236_v51, %v2233_v60  ;;  %v2544_v60 = vld [vmem:[#allocation12 + $0xc8] sm:$0xff]  ;;  %v2547_v51 = vld [vmem:[#allocation12 + $0xe0] sm:$0xff] }
 0x7b7   :  { %v7216_v16 = vpack.c.bf16 %v2547_v51, %v2544_v60  ;;  %v2566_v60 = vld [vmem:[#allocation12 + $0x178] sm:$0xff] }
 0x7c0   :  { %v6261_v57 = vpop.eup %6260 }
 0x7c1   :  { %v1970_v35 = vmul.f32 %v6261_v57, %v1969_v25  ;;  %v5630_v25 = vpack.c.bf16 %v2244_v42, %v2241_v38  ;;  %v2246_v57 = vld [vmem:[#allocation10 + $0x128] sm:$0xff]  ;;  %v2546_v38 = vld [vmem:[#allocation12 + $0xd8] sm:$0xff] }
 0x7c2   :  { %v5602_v55 = vpack.c.bf16 %v2249_v18, %v2246_v57  ;;  %v7218_v42 = vpack.c.bf16 %v2546_v38, %v2543_v19  ;;  %v2556_v18 = vld [vmem:[#allocation12 + $0x128] sm:$0xff] }
 0x7c3   :  { %v7165_v28 = vadd.f32 %v1971_v45, %v1970_v35  ;;  %v2250_v35 = vld [vmem:[#allocation10 + $0x148] sm:$0xff]  ;;  %v5600_v45 = vpack.c.bf16 %v2242_v31, %v2239_v30  ;;  %v2549_v30 = vld [vmem:[#allocation12 + $0xf0] sm:$0xff] }
 0x7c4   :  { %v5634_v2 = vpack.c.bf16 %v2250_v35, %v2247_v34  ;;  %v2552_v31 = vld [vmem:[#allocation12 + $0x108] sm:$0xff]  ;;  %v2559_v34 = vld [vmem:[#allocation12 + $0x140] sm:$0xff] }
 0x7c5   :  { %2094 = vmatmul.mubr.f32.vlgmr.msra.gmra.mrb[14].mxu0 %v7165_v28  ;;  %4705 = vmatmul.mubr.f32.vlgmr.msra.gmra.mrb[22].mxu1 %v7165_v28  ;;  %v7224_v57 = vpack.c.bf16 %v2552_v31, %v2549_v30  ;;  %v2555_v35 = vld [vmem:[#allocation12 + $0x120] sm:$0xff] }
 0x7c6   :  { %5581 = vmatpush1.bf16.msra.mxu0 %v5580_v4  ;;  %5613 = vmatpush3.bf16.msra.mxu1 %v5610_v9  ;;  %v5622_v9 = vpack.c.bf16 %v2232_v11, %v2229_v7  ;;  %v2245_v4 = vld [vmem:[#allocation10 + $0x120] sm:$0xff]  ;;  %v2528_v7 = vld [vmem:[#allocation12 + $0x48] sm:$0xff] }
 0x7c7   :  { %4739 = vmatprep.mubr.f32.mxu1 %v6855_v5  ;;  %5583 = vmatprep.subr.bf16.mxu0 %v5582_v10  ;;  %v2248_v10 = vld [vmem:[#allocation10 + $0x138] sm:$0xff]  ;;  %v7200_v11 = vpack.c.bf16 %v2528_v7, %v2525_v53  ;;  %v2545_v53 = vld [vmem:[#allocation12 + $0xd0] sm:$0xff]  ;;  %v2548_v7 = vld [vmem:[#allocation12 + $0xe8] sm:$0xff] }
 0x7c8   :  { %5615 = vmatprep.subr.bf16.mxu1 %v5614_v23  ;;  %2338 = vmatprep.mubr.f32.mxu0 %v6527_v0  ;;  %v5604_v39 = vpack.c.bf16 %v2248_v10, %v2245_v4  ;;  %v2524_v4 = vld [vmem:[#allocation12 + $0x28] sm:$0xff] }
 0x7ca   :  { %5585 = vmatpush1.bf16.msra.mxu0 %v5584_v50  ;;  %5617 = vmatpush3.bf16.msra.mxu1 %v5614_v23  ;;  %v2256_v23 = vld [vmem:[#allocation10 + $0x178] sm:$0xff]  ;;  %v2251_v50 = vld [vmem:[#allocation10 + $0x150] sm:$0xff] }
 0x7cb   :  { %5587 = vmatprep.subr.bf16.mxu0 %v5586_v41  ;;  %5619 = vmatprep.subr.bf16.mxu1 %v5618_v44  ;;  %v5638_v43 = vpack.c.bf16 %v2256_v23, %v2253_v62  ;;  %v2254_v41 = vld [vmem:[#allocation10 + $0x168] sm:$0xff]  ;;  %v2565_v62 = vld [vmem:[#allocation12 + $0x170] sm:$0xff] }
 0x7cc   :  { %v7237_v23 = vpack.c.bf16 %v2565_v62, %v2562_v20  ;;  %v6352_v20 = vld [vmem:[%s7663_s4] ss:$0 sm:$0xff] }
 0x7ce   :  { %5589 = vmatpush1.bf16.msra.mxu0 %v5588_v14  ;;  %5621 = vmatpush3.bf16.msra.mxu1 %v5618_v44  ;;  %v5608_v44 = vpack.c.bf16 %v2254_v41, %v2251_v50  ;;  %v2532_v14 = vld [vmem:[#allocation12 + $0x68] sm:$0xff]  ;;  %v2527_v50 = vld [vmem:[#allocation12 + $0x40] sm:$0xff]  ;;  %v2530_v41 = vld [vmem:[#allocation12 + $0x58] sm:$0xff] }
 0x7cf   :  { %5591 = vmatprep.subr.bf16.mxu0 %v5590_v21  ;;  %5623 = vmatprep.subr.bf16.mxu1 %v5622_v9  ;;  %v2535_v21 = vld [vmem:[#allocation12 + $0x80] sm:$0xff] }
 0x7d2   :  { %5593 = vmatpush1.bf16.msra.mxu0 %v5592_v13  ;;  %5625 = vmatpush3.bf16.msra.mxu1 %v5622_v9  ;;  %v7204_v9 = vpack.c.bf16 %v2535_v21, %v2532_v14  ;;  %v2537_v13 = vld [vmem:[#allocation12 + $0x90] sm:$0xff]  ;;  %v7256_v14 = vpack.c.bf16 %v2548_v7, %v2545_v53  ;;  %v2551_v21 = vld [vmem:[#allocation12 + $0x100] sm:$0xff] }
 0x7d3   :  { %5595 = vmatprep.subr.bf16.mxu0 %v5594_v24  ;;  %5627 = vmatprep.subr.bf16.mxu1 %v5626_v29  ;;  %v2540_v24 = vld [vmem:[#allocation12 + $0xa8] sm:$0xff]  ;;  %v7260_v49 = vpack.c.bf16 %v2554_v33, %v2551_v21 }
 0x7d6   :  { %5597 = vmatpush1.bf16.msra.mxu0 %v5596_v27  ;;  %5629 = vmatpush3.bf16.msra.mxu1 %v5626_v29  ;;  %v7212_v29 = vpack.c.bf16 %v2540_v24, %v2537_v13  ;;  %v2550_v27 = vld [vmem:[#allocation12 + $0xf8] sm:$0xff]  ;;  %v7264_v13 = vpack.c.bf16 %v2560_v46, %v2557_v26  ;;  %v2563_v24 = vld [vmem:[#allocation12 + $0x160] sm:$0xff] }
 0x7d7   :  { %5599 = vmatprep.subr.bf16.mxu0 %v5598_v47  ;;  %5631 = vmatprep.subr.bf16.mxu1 %v5630_v25  ;;  %v2553_v47 = vld [vmem:[#allocation12 + $0x110] sm:$0xff]  ;;  %v7268_v51 = vpack.c.bf16 %v2566_v60, %v2563_v24 }
 0x7da   :  { %5601 = vmatpush1.bf16.msra.mxu0 %v5600_v45  ;;  %5633 = vmatpush3.bf16.msra.mxu1 %v5630_v25  ;;  %v7222_v25 = vpack.c.bf16 %v2553_v47, %v2550_v27  ;;  %v7228_v45 = vpack.c.bf16 %v2559_v34, %v2556_v18 }
 0x7db   :  { %5603 = vmatprep.subr.bf16.mxu0 %v5602_v55  ;;  %5635 = vmatprep.subr.bf16.mxu1 %v5634_v2  ;;  %v2558_v55 = vld [vmem:[#allocation12 + $0x138] sm:$0xff] }
 0x7dc   :  { %v7230_v10 = vpack.c.bf16 %v2558_v55, %v2555_v35 }
 0x7de   :  { %5605 = vmatpush1.bf16.msra.mxu0 %v5604_v39  ;;  %5637 = vmatpush3.bf16.msra.mxu1 %v5634_v2  ;;  %v2521_v2 = vld [vmem:[#allocation12 + $0x10] sm:$0xff] }
 0x7df   :  { %5607 = vmatprep.subr.bf16.mxu0 %v5606_v32  ;;  %5639 = vmatprep.subr.bf16.mxu1 %v5638_v43  ;;  %v7232_v15 = vpack.c.bf16 %v2524_v4, %v2521_v2  ;;  %v2561_v39 = vld [vmem:[#allocation12 + $0x150] sm:$0xff]  ;;  %v2564_v32 = vld [vmem:[#allocation12 + $0x168] sm:$0xff] }
 0x7e2   :  { %5609 = vmatpush1.bf16.msra.mxu0 %v5608_v44  ;;  %5641 = vmatpush3.bf16.msra.mxu1 %v5638_v43  ;;  %v7240_v43 = vpack.c.bf16 %v2564_v32, %v2561_v39  ;;  %v7243_v44 = vpack.c.bf16 %v2530_v41, %v2527_v50 }
 0x7e3   :  { %5674 = vmatprep.subr.bf16.mxu1 %v6528_v40 }
 0x7e5   :  { %2339 = vmatmul.mubr.f32.vlgmr.msra.gmra.mrb[16].mxu0 %v6855_v5  ;;  %4740 = vmatmul.mubr.f32.vlgmr.msra.gmra.mrb[24].mxu1 %v6899_v54  ;;  %v2520_v5 = vld [vmem:[#allocation12 + $0x8] sm:$0xff] }
 0x7e6   :  { %4742 = vmatprep.mubr.f32.mxu1 %v6942_v58  ;;  %2344 = vmatprep.mubr.f32.mxu0 %v6527_v0 }
 0x7e7   :  { %5676 = vmatpush3.bf16.msra.mxu1 %v7232_v15 }
 0x7e8   :  { %5677 = vmatprep.subr.bf16.mxu1 %v6528_v40 }
 0x7e9   :  { %2345 = vmatmul.mubr.f32.gmra.mrb[18].mxu0 %v6899_v54  ;;  %4743 = vmatmul.mubr.f32.gmra.mrb[26].mxu1 %v7029_v61  ;;  %v2523_v54 = vld [vmem:[#allocation12 + $0x20] sm:$0xff] }
 0x7ea   :  { %4745 = vmatprep.mubr.f32.mxu1 %v7079_v52  ;;  %2350 = vmatprep.mubr.f32.mxu0 %v6527_v0 }
 0x7eb   :  { %5679 = vmatpush3.bf16.msra.mxu1 %v7243_v44 }
 0x7ec   :  { %5680 = vmatprep.subr.bf16.mxu1 %v6528_v40 }
 0x7ed   :  { %2351 = vmatmul.mubr.f32.gmra.mrb[20].mxu0 %v6942_v58  ;;  %4746 = vmatmul.mubr.f32.gmra.mrb[28].mxu1 %v7123_v22  ;;  %v7192_v58 = vpack.c.bf16 %v2523_v54, %v2520_v5  ;;  %v2533_v5 = vld [vmem:[#allocation12 + $0x70] sm:$0xff]  ;;  %v2536_v54 = vld [vmem:[#allocation12 + $0x88] sm:$0xff] }
 0x7ee   :  { %4748 = vmatprep.mubr.f32.mxu1 %v7165_v28  ;;  %2356 = vmatprep.mubr.f32.mxu0 %v6527_v0 }
 0x7ef   :  { %5643 = vmatprep.subr.bf16.mxu0 %v7192_v58 }
 0x7f1   :  { %2357 = vmatmul.mubr.f32.gmra.mrb[22].mxu0 %v7029_v61  ;;  %v2522_v61 = vld [vmem:[#allocation12 + $0x18] sm:$0xff] }
 0x7f2   :  { %2362 = vmatprep.mubr.f32.mxu0 %v6527_v0  ;;  %v7194_v12 = vpack.c.bf16 %v2522_v61, %v2519_v8  ;;  %v2539_v8 = vld [vmem:[#allocation12 + $0xa0] sm:$0xff]  ;;  %v7249_v61 = vpack.c.bf16 %v2536_v54, %v2533_v5 }
 0x7f4   :  { %5645 = vmatpush1.bf16.msra.mxu0 %v7194_v12  ;;  %5682 = vmatpush3.bf16.msra.mxu1 %v7249_v61 }
 0x7f5   :  { %2363 = vmatmul.mubr.f32.gmra.mrb[24].mxu0 %v7079_v52  ;;  %v2526_v52 = vld [vmem:[#allocation12 + $0x38] sm:$0xff]  ;;  %5683 = vmatprep.subr.bf16.mxu1 %v6528_v40 }
 0x7f6   :  { %2368 = vmatprep.mubr.f32.mxu0 %v6527_v0 }
 0x7f9   :  { %2369 = vmatmul.mubr.f32.gmra.mrb[26].mxu0 %v7123_v22  ;;  %v2529_v22 = vld [vmem:[#allocation12 + $0x50] sm:$0xff] }
 0x7fa   :  { %2374 = vmatprep.mubr.f32.mxu0 %v6527_v0  ;;  %v7198_v48 = vpack.c.bf16 %v2529_v22, %v2526_v52  ;;  %v2542_v52 = vld [vmem:[#allocation12 + $0xb8] sm:$0xff] }
 0x7fb   :  { %v7252_v22 = vpack.c.bf16 %v2542_v52, %v2539_v8 }
 0x7fc   :  { %5647 = vmatprep.subr.bf16.mxu0 %v7198_v48 }
 0x7fd   :  { %2375 = vmatmul.mubr.f32.gmra.mrb[28].mxu0 %v7165_v28  ;;  %5685 = vmatpush3.bf16.msra.mxu1 %v7252_v22 }
 0x7fe   :  { %2380 = vmatprep.mubr.f32.mxu0 %v6527_v0  ;;  %5649 = vmatpush1.bf16.msra.mxu0 %v7200_v11 }
 0x7ff   :  { %5651 = vmatprep.subr.bf16.mxu0 %v7204_v9  ;;  %5686 = vmatprep.subr.bf16.mxu1 %v6528_v40 }
 0x801   :  { %5688 = vmatpush3.bf16.msra.mxu1 %v7256_v14 }
 0x802   :  { %5653 = vmatpush1.bf16.msra.mxu0 %v7206_v17  ;;  %5689 = vmatprep.subr.bf16.mxu1 %v6528_v40 }
 0x803   :  { %5655 = vmatprep.subr.bf16.mxu0 %v7210_v56 }
 0x805   :  { %5691 = vmatpush3.bf16.msra.mxu1 %v7260_v49 }
 0x806   :  { %5657 = vmatpush1.bf16.msra.mxu0 %v7212_v29  ;;  %5692 = vmatprep.subr.bf16.mxu1 %v6528_v40 }
 0x807   :  { %5659 = vmatprep.subr.bf16.mxu0 %v7216_v16 }
 0x809   :  { %5694 = vmatpush3.bf16.msra.mxu1 %v7264_v13 }
 0x80a   :  { %5661 = vmatpush1.bf16.msra.mxu0 %v7218_v42  ;;  %5695 = vmatprep.subr.bf16.mxu1 %v6528_v40 }
 0x80b   :  { %5663 = vmatprep.subr.bf16.mxu0 %v7222_v25 }
 0x80d   :  { %5697 = vmatpush3.bf16.msra.mxu1 %v7268_v51 }
 0x80e   :  { %5665 = vmatpush1.bf16.msra.mxu0 %v7224_v57  ;;  %5730 = vmatprep.subr.bf16.mxu1 %v6528_v40 }
 0x80f   :  { %5667 = vmatprep.subr.bf16.mxu0 %v7228_v45 }
 0x812   :  { %5669 = vmatpush1.bf16.msra.mxu0 %v7230_v10 }
 0x813   :  { %5671 = vmatprep.subr.bf16.mxu0 %v7237_v23 }
 0x816   :  { %5673 = vmatpush1.bf16.msra.mxu0 %v7240_v43 }
 0x817   :  { %5699 = vmatprep.subr.bf16.mxu0 %v7192_v58 }
 0x898   :  { %v2095_v19 = vpop.f32.mrb[14].mxu0  ;;  %v2166_v38 = vpop.f32.mrb[22].mxu1 }
 0x899   :  { %v6128_v27 = vadd.f32 %v2095_v19, %v6841_v3  ;;  %v2097_v47 = vpop.f32.mrb[15].mxu0  ;;  %v4706_v30 = vpop.f32.mrb[23].mxu1  ;;  %v2184_v62 = vadd.f32 %v6352_v20, %v2166_v38 }
 0x89a   :  { %v6129_v18 = vadd.f32 %v2097_v47, %v6845_v6 }
 0x89b   :  { %v4026_v31 = vmul.f32 -1.442695, %v6128_v27 }
 0x89c   :  { %v4027_v34 = vmul.f32 -1.442695, %v6129_v18 }
 0x89d   :  { %6262 = vpow2.f32 %v4026_v31 }
 0x89e   :  { %6264 = vpow2.f32 %v4027_v34 }
 0x8a7   :  { %v6263_v35 = vpop.eup %6262 }
 0x8a8   :  { %v2174_v55 = vadd.f32 1.0, %v6263_v35  ;;  %v6265_v2 = vpop.eup %6264 }
 0x8a9   :  { %v2181_v4 = vadd.f32 1.0, %v6265_v2 }
 0x8aa   :  { %6266 = vrcp.f32 %v2174_v55 }
 0x8ab   :  { %6268 = vrcp.f32 %v2181_v4 }
 0x8b4   :  { %v6267_v39 = vpop.eup %6266 }
 0x8b5   :  { %v2185_v3 = vmul.f32 %v6267_v39, %v2184_v62  ;;  %v6269_v54 = vpop.eup %6268 }
 0x8b6   :  { %v2188_v53 = vsub.f32 1.0, %v6269_v54  ;;  %v2190_v33 = vmul.f32 %v6269_v54, %v7165_v28  ;;  %v2257_v28 = vld [vmem:[%s7666_s7] sm:$0x7] }
 0x8b7   :  { %v2186_v32 = vadd.f32 %v2185_v3, %v6833_v59  ;;  %v7341_v24 = vrot.slane %v2257_v28, %v188_v63  ;;  %v7345_v19 = vrot.slane %v2257_v28, %v192_v1  ;;  %v7352_v1 = vld [vmem:[%s7667_s8] ss:$0 sm:$0xff]  ;;  %v7356_v2 = vrot.slane %v2257_v28, %v196_v37 }
 0x8b8   :  { %v7279_v50 = vpop.f32.mrb[24].mxu1 }
 0x8b9   :  { %6270 = vtanh.f32 %v2186_v32  ;;  %v7281_v6 = vpop.f32.mrb[25].mxu1 }
 0x8ba   :  { %v2454_v39 = vadd.f32 %v7281_v6, %v7356_v2 }
 0x8bc   :  { %v7283_v41 = vpop.f32.mrb[26].mxu1 }
 0x8bd   :  { %v7285_v5 = vpop.f32.mrb[27].mxu1 }
 0x8c0   :  { %v7287_v8 = vpop.f32.mrb[28].mxu1 }
 0x8c1   :  { %v7289_v52 = vpop.f32.mrb[29].mxu1 }
 0x8c3   :  { %v6271_v7 = vpop.eup %6270 }
 0x8c4   :  { %v2189_v21 = vmul.f32 %v6271_v7, %v2188_v53 }
 0x8c6   :  { %v2191_v59 = vadd.f32 %v2190_v33, %v2189_v21 }
 0x8c8   :  { %2381 = vmatmul.mubr.f32.gmra.mrb[30].mxu0 %v2191_v59  ;;  %4749 = vmatmul.mubr.f32.gmra.mrb[30].mxu1 %v2191_v59 }
 0x8c9   :  { %2631 = vmatprep.mubr.f32.mxu0 %v6527_v0  ;;  %4783 = vmatprep.mubr.msk.f32.mxu1 %vm6529_vm0, %v6527_v0 }
 0x8cc   :  { %2632 = vmatmul.mubr.f32.vlgmr.msra.gmra.mrb[16].mxu0 %v6527_v0  ;;  %4784 = vmatmul.mubr.f32.vlgmr.msra.gmra.mrb[32].mxu1 %v6527_v0 }
 0x8cd   :  { %5701 = vmatpush1.bf16.msra.mxu0 %v7194_v12  ;;  %5732 = vmatpush3.bf16.msra.mxu1 %v7232_v15 }
 0x8ce   :  { %5703 = vmatprep.subr.bf16.mxu0 %v7198_v48  ;;  %5733 = vmatprep.subr.bf16.mxu1 %v6528_v40 }
 0x8cf   :  { %2797 = vmatprep.mubr.f32.mxu0 %v6527_v0  ;;  %4818 = vmatprep.mubr.msk.f32.mxu1 %vm6529_vm0, %v6527_v0 }
 0x8d1   :  { %5705 = vmatpush1.bf16.msra.mxu0 %v7200_v11  ;;  %5735 = vmatpush3.bf16.msra.mxu1 %v7243_v44 }
 0x8d2   :  { %5707 = vmatprep.subr.bf16.mxu0 %v7204_v9  ;;  %5736 = vmatprep.subr.bf16.mxu1 %v6528_v40 }
 0x8d5   :  { %5709 = vmatpush1.bf16.msra.mxu0 %v7206_v17  ;;  %5738 = vmatpush3.bf16.msra.mxu1 %v7249_v61 }
 0x8d6   :  { %5711 = vmatprep.subr.bf16.mxu0 %v7210_v56  ;;  %5739 = vmatprep.subr.bf16.mxu1 %v6528_v40 }
 0x8d9   :  { %5713 = vmatpush1.bf16.msra.mxu0 %v7212_v29  ;;  %5741 = vmatpush3.bf16.msra.mxu1 %v7252_v22 }
 0x8da   :  { %5715 = vmatprep.subr.bf16.mxu0 %v7216_v16  ;;  %5742 = vmatprep.subr.bf16.mxu1 %v6528_v40 }
 0x8dd   :  { %5717 = vmatpush1.bf16.msra.mxu0 %v7218_v42  ;;  %5744 = vmatpush3.bf16.msra.mxu1 %v7256_v14 }
 0x8de   :  { %5719 = vmatprep.subr.bf16.mxu0 %v7222_v25  ;;  %5745 = vmatprep.subr.bf16.mxu1 %v6528_v40 }
 0x8e1   :  { %5721 = vmatpush1.bf16.msra.mxu0 %v7224_v57  ;;  %5747 = vmatpush3.bf16.msra.mxu1 %v7260_v49 }
 0x8e2   :  { %5723 = vmatprep.subr.bf16.mxu0 %v7228_v45  ;;  %5748 = vmatprep.subr.bf16.mxu1 %v6528_v40 }
 0x8e5   :  { %5725 = vmatpush1.bf16.msra.mxu0 %v7230_v10  ;;  %5750 = vmatpush3.bf16.msra.mxu1 %v7264_v13 }
 0x8e6   :  { %5727 = vmatprep.subr.bf16.mxu0 %v7237_v23  ;;  %5751 = vmatprep.subr.bf16.mxu1 %v6528_v40 }
 0x8e9   :  { %5729 = vmatpush1.bf16.msra.mxu0 %v7240_v43  ;;  %5753 = vmatpush3.bf16.msra.mxu1 %v7268_v51 }
 0x8ea   :  { %5755 = vmatprep.subr.bf16.mxu0 %v7192_v58  ;;  %5786 = vmatprep.subr.bf16.mxu1 %v6528_v40 }
 0x99b   :  { %v7335_v26 = vpop.f32.mrb[30].mxu1 }
 0x99c   :  { %v7337_v46 = vpop.f32.mrb[31].mxu1 }
 0x99f   :  { %v2633_v60 = vpop.f32.mrb[16].mxu0  ;;  %v2704_v38 = vpop.f32.mrb[32].mxu1 }
 0x9a0   :  { %v6130_v27 = vadd.f32 %v2633_v60, %v7341_v24  ;;  %v2635_v47 = vpop.f32.mrb[17].mxu0  ;;  %v4785_v30 = vpop.f32.mrb[33].mxu1  ;;  %v2722_v20 = vadd.f32 %v7352_v1, %v2704_v38 }
 0x9a1   :  { %v6131_v18 = vadd.f32 %v2635_v47, %v7345_v19 }
 0x9a2   :  { %v4029_v31 = vmul.f32 -1.442695, %v6130_v27 }
 0x9a3   :  { %v4030_v34 = vmul.f32 -1.442695, %v6131_v18 }
 0x9a4   :  { %6272 = vpow2.f32 %v4029_v31 }
 0x9a5   :  { %6274 = vpow2.f32 %v4030_v34 }
 0x9ae   :  { %v6273_v35 = vpop.eup %6272 }
 0x9af   :  { %v2712_v55 = vadd.f32 1.0, %v6273_v35  ;;  %v6275_v63 = vpop.eup %6274 }
 0x9b0   :  { %v2719_v4 = vadd.f32 1.0, %v6275_v63  ;;  %v2459_v63 = vadd.f32 %v7279_v50, %v7356_v2 }
 0x9b1   :  { %6276 = vrcp.f32 %v2712_v55 }
 0x9b2   :  { %6278 = vrcp.f32 %v2719_v4 }
 0x9bb   :  { %v6277_v62 = vpop.eup %6276 }
 0x9bc   :  { %v2723_v3 = vmul.f32 %v6277_v62, %v2722_v20  ;;  %v6279_v54 = vpop.eup %6278 }
 0x9bd   :  { %v2726_v53 = vsub.f32 1.0, %v6279_v54  ;;  %v2728_v33 = vmul.f32 0.0, %v6279_v54 }
 0x9be   :  { %v2724_v32 = vadd.f32 %v2723_v3, %v2454_v39 }
 0x9c0   :  { %6280 = vtanh.f32 %v2724_v32 }
 0x9ca   :  { %v6281_v7 = vpop.eup %6280 }
 0x9cb   :  { %v2727_v21 = vmul.f32 %v6281_v7, %v2726_v53 }
 0x9cd   :  { %v7361_v59 = vadd.f32 %v2728_v33, %v2727_v21 }
 0x9cf   :  { %2798 = vmatmul.mubr.f32.vlgmr.msra.gmra.mrb[18].mxu0 %v7361_v59  ;;  %4819 = vmatmul.mubr.f32.vlgmr.msra.gmra.mrb[34].mxu1 %v7361_v59 }
 0x9d0   :  { %5757 = vmatpush1.bf16.msra.mxu0 %v7194_v12  ;;  %5788 = vmatpush3.bf16.msra.mxu1 %v7232_v15 }
 0x9d1   :  { %5759 = vmatprep.subr.bf16.mxu0 %v7198_v48  ;;  %5789 = vmatprep.subr.bf16.mxu1 %v6528_v40 }
 0x9d2   :  { %2963 = vmatprep.mubr.f32.mxu0 %v6527_v0  ;;  %4853 = vmatprep.mubr.msk.f32.mxu1 %vm6529_vm0, %v6527_v0 }
 0x9d4   :  { %5761 = vmatpush1.bf16.msra.mxu0 %v7200_v11  ;;  %5791 = vmatpush3.bf16.msra.mxu1 %v7243_v44 }
 0x9d5   :  { %5763 = vmatprep.subr.bf16.mxu0 %v7204_v9  ;;  %5792 = vmatprep.subr.bf16.mxu1 %v6528_v40 }
 0x9d8   :  { %5765 = vmatpush1.bf16.msra.mxu0 %v7206_v17  ;;  %5794 = vmatpush3.bf16.msra.mxu1 %v7249_v61 }
 0x9d9   :  { %5767 = vmatprep.subr.bf16.mxu0 %v7210_v56  ;;  %5795 = vmatprep.subr.bf16.mxu1 %v6528_v40 }
 0x9dc   :  { %5769 = vmatpush1.bf16.msra.mxu0 %v7212_v29  ;;  %5797 = vmatpush3.bf16.msra.mxu1 %v7252_v22 }
 0x9dd   :  { %5771 = vmatprep.subr.bf16.mxu0 %v7216_v16  ;;  %5798 = vmatprep.subr.bf16.mxu1 %v6528_v40 }
 0x9e0   :  { %5773 = vmatpush1.bf16.msra.mxu0 %v7218_v42  ;;  %5800 = vmatpush3.bf16.msra.mxu1 %v7256_v14 }
 0x9e1   :  { %5775 = vmatprep.subr.bf16.mxu0 %v7222_v25  ;;  %5801 = vmatprep.subr.bf16.mxu1 %v6528_v40 }
 0x9e4   :  { %5777 = vmatpush1.bf16.msra.mxu0 %v7224_v57  ;;  %5803 = vmatpush3.bf16.msra.mxu1 %v7260_v49 }
 0x9e5   :  { %5779 = vmatprep.subr.bf16.mxu0 %v7228_v45  ;;  %5804 = vmatprep.subr.bf16.mxu1 %v6528_v40 }
 0x9e8   :  { %5781 = vmatpush1.bf16.msra.mxu0 %v7230_v10  ;;  %5806 = vmatpush3.bf16.msra.mxu1 %v7264_v13 }
 0x9e9   :  { %5783 = vmatprep.subr.bf16.mxu0 %v7237_v23  ;;  %5807 = vmatprep.subr.bf16.mxu1 %v6528_v40 }
 0x9ec   :  { %5785 = vmatpush1.bf16.msra.mxu0 %v7240_v43  ;;  %5809 = vmatpush3.bf16.msra.mxu1 %v7268_v51 }
 0x9ed   :  { %5811 = vmatprep.subr.bf16.mxu0 %v7192_v58  ;;  %5842 = vmatprep.subr.bf16.mxu1 %v6528_v40 }
 0xaa2   :  { %v2799_v36 = vpop.f32.mrb[18].mxu0  ;;  %v2870_v37 = vpop.f32.mrb[34].mxu1 }
 0xaa3   :  { %v6132_v6 = vadd.f32 %v2799_v36, %v7341_v24  ;;  %v2801_v28 = vpop.f32.mrb[19].mxu0  ;;  %v4820_v60 = vpop.f32.mrb[35].mxu1  ;;  %v2888_v35 = vadd.f32 %v7352_v1, %v2870_v37 }
 0xaa4   :  { %v6133_v27 = vadd.f32 %v2801_v28, %v7345_v19 }
 0xaa5   :  { %v4031_v38 = vmul.f32 -1.442695, %v6132_v6 }
 0xaa6   :  { %v4032_v47 = vmul.f32 -1.442695, %v6133_v27 }
 0xaa7   :  { %6282 = vpow2.f32 %v4031_v38 }
 0xaa8   :  { %6284 = vpow2.f32 %v4032_v47 }
 0xab1   :  { %v6283_v30 = vpop.eup %6282 }
 0xab2   :  { %v2878_v31 = vadd.f32 1.0, %v6283_v30  ;;  %v6285_v18 = vpop.eup %6284 }
 0xab3   :  { %v2885_v34 = vadd.f32 1.0, %v6285_v18 }
 0xab4   :  { %6286 = vrcp.f32 %v2878_v31  ;;  %v2464_v31 = vadd.f32 %v7285_v5, %v7356_v2 }
 0xab5   :  { %6288 = vrcp.f32 %v2885_v34 }
 0xabe   :  { %v6287_v55 = vpop.eup %6286 }
 0xabf   :  { %v2889_v4 = vmul.f32 %v6287_v55, %v2888_v35  ;;  %v6289_v62 = vpop.eup %6288 }
 0xac0   :  { %v2892_v39 = vsub.f32 1.0, %v6289_v62  ;;  %v2894_v54 = vmul.f32 %v6289_v62, %v7361_v59 }
 0xac1   :  { %v2890_v20 = vadd.f32 %v2889_v4, %v2459_v63 }
 0xac3   :  { %6290 = vtanh.f32 %v2890_v20 }
 0xacd   :  { %v6291_v3 = vpop.eup %6290 }
 0xace   :  { %v2893_v32 = vmul.f32 %v6291_v3, %v2892_v39 }
 0xad0   :  { %v7406_v53 = vadd.f32 %v2894_v54, %v2893_v32 }
 0xad2   :  { %2964 = vmatmul.mubr.f32.vlgmr.msra.gmra.mrb[20].mxu0 %v7406_v53  ;;  %4854 = vmatmul.mubr.f32.vlgmr.msra.gmra.mrb[36].mxu1 %v7406_v53 }
 0xad3   :  { %5813 = vmatpush1.bf16.msra.mxu0 %v7194_v12  ;;  %5844 = vmatpush3.bf16.msra.mxu1 %v7232_v15 }
 0xad4   :  { %5815 = vmatprep.subr.bf16.mxu0 %v7198_v48  ;;  %5845 = vmatprep.subr.bf16.mxu1 %v6528_v40 }
 0xad5   :  { %3129 = vmatprep.mubr.f32.mxu0 %v6527_v0  ;;  %4888 = vmatprep.mubr.msk.f32.mxu1 %vm6529_vm0, %v6527_v0 }
 0xad7   :  { %5817 = vmatpush1.bf16.msra.mxu0 %v7200_v11  ;;  %5847 = vmatpush3.bf16.msra.mxu1 %v7243_v44 }
 0xad8   :  { %5819 = vmatprep.subr.bf16.mxu0 %v7204_v9  ;;  %5848 = vmatprep.subr.bf16.mxu1 %v6528_v40 }
 0xadb   :  { %5821 = vmatpush1.bf16.msra.mxu0 %v7206_v17  ;;  %5850 = vmatpush3.bf16.msra.mxu1 %v7249_v61 }
 0xadc   :  { %5823 = vmatprep.subr.bf16.mxu0 %v7210_v56  ;;  %5851 = vmatprep.subr.bf16.mxu1 %v6528_v40 }
 0xadf   :  { %5825 = vmatpush1.bf16.msra.mxu0 %v7212_v29  ;;  %5853 = vmatpush3.bf16.msra.mxu1 %v7252_v22 }
 0xae0   :  { %5827 = vmatprep.subr.bf16.mxu0 %v7216_v16  ;;  %5854 = vmatprep.subr.bf16.mxu1 %v6528_v40 }
 0xae3   :  { %5829 = vmatpush1.bf16.msra.mxu0 %v7218_v42  ;;  %5856 = vmatpush3.bf16.msra.mxu1 %v7256_v14 }
 0xae4   :  { %5831 = vmatprep.subr.bf16.mxu0 %v7222_v25  ;;  %5857 = vmatprep.subr.bf16.mxu1 %v6528_v40 }
 0xae7   :  { %5833 = vmatpush1.bf16.msra.mxu0 %v7224_v57  ;;  %5859 = vmatpush3.bf16.msra.mxu1 %v7260_v49 }
 0xae8   :  { %5835 = vmatprep.subr.bf16.mxu0 %v7228_v45  ;;  %5860 = vmatprep.subr.bf16.mxu1 %v6528_v40 }
 0xaeb   :  { %5837 = vmatpush1.bf16.msra.mxu0 %v7230_v10  ;;  %5862 = vmatpush3.bf16.msra.mxu1 %v7264_v13 }
 0xaec   :  { %5839 = vmatprep.subr.bf16.mxu0 %v7237_v23  ;;  %5863 = vmatprep.subr.bf16.mxu1 %v6528_v40 }
 0xaef   :  { %5841 = vmatpush1.bf16.msra.mxu0 %v7240_v43  ;;  %5865 = vmatpush3.bf16.msra.mxu1 %v7268_v51 }
 0xaf0   :  { %5867 = vmatprep.subr.bf16.mxu0 %v7192_v58  ;;  %5898 = vmatprep.subr.bf16.mxu1 %v6528_v40 }
 0xba5   :  { %v2965_v50 = vpop.f32.mrb[20].mxu0  ;;  %v3036_v7 = vpop.f32.mrb[36].mxu1 }
 0xba6   :  { %v6134_v21 = vadd.f32 %v2965_v50, %v7341_v24  ;;  %v2967_v33 = vpop.f32.mrb[21].mxu0  ;;  %v4855_v59 = vpop.f32.mrb[37].mxu1  ;;  %v3054_v47 = vadd.f32 %v7352_v1, %v3036_v7 }
 0xba7   :  { %v6135_v37 = vadd.f32 %v2967_v33, %v7345_v19 }
 0xba8   :  { %v4033_v36 = vmul.f32 -1.442695, %v6134_v21 }
 0xba9   :  { %v4034_v6 = vmul.f32 -1.442695, %v6135_v37 }
 0xbaa   :  { %6292 = vpow2.f32 %v4033_v36 }
 0xbab   :  { %6294 = vpow2.f32 %v4034_v6 }
 0xbb4   :  { %v6293_v28 = vpop.eup %6292 }
 0xbb5   :  { %v3044_v60 = vadd.f32 1.0, %v6293_v28  ;;  %v6295_v38 = vpop.eup %6294  ;;  %v2469_v28 = vadd.f32 %v7283_v41, %v7356_v2 }
 0xbb6   :  { %v3051_v27 = vadd.f32 1.0, %v6295_v38 }
 0xbb7   :  { %6296 = vrcp.f32 %v3044_v60 }
 0xbb8   :  { %6298 = vrcp.f32 %v3051_v27 }
 0xbc1   :  { %v6297_v30 = vpop.eup %6296 }
 0xbc2   :  { %v3055_v18 = vmul.f32 %v6297_v30, %v3054_v47  ;;  %v6299_v35 = vpop.eup %6298 }
 0xbc3   :  { %v3058_v55 = vsub.f32 1.0, %v6299_v35  ;;  %v3060_v20 = vmul.f32 %v6299_v35, %v7406_v53 }
 0xbc4   :  { %v3056_v34 = vadd.f32 %v3055_v18, %v2464_v31 }
 0xbc6   :  { %6300 = vtanh.f32 %v3056_v34 }
 0xbd0   :  { %v6301_v63 = vpop.eup %6300 }
 0xbd1   :  { %v3059_v4 = vmul.f32 %v6301_v63, %v3058_v55 }
 0xbd3   :  { %v7451_v62 = vadd.f32 %v3060_v20, %v3059_v4 }
 0xbd5   :  { %3130 = vmatmul.mubr.f32.vlgmr.msra.gmra.mrb[22].mxu0 %v7451_v62  ;;  %4889 = vmatmul.mubr.f32.vlgmr.msra.gmra.mrb[38].mxu1 %v7451_v62 }
 0xbd6   :  { %5869 = vmatpush1.bf16.msra.mxu0 %v7194_v12  ;;  %5900 = vmatpush3.bf16.msra.mxu1 %v7232_v15 }
 0xbd7   :  { %5871 = vmatprep.subr.bf16.mxu0 %v7198_v48  ;;  %5901 = vmatprep.subr.bf16.mxu1 %v6528_v40 }
 0xbd8   :  { %3295 = vmatprep.mubr.f32.mxu0 %v6527_v0  ;;  %4923 = vmatprep.mubr.msk.f32.mxu1 %vm6529_vm0, %v6527_v0 }
 0xbda   :  { %5873 = vmatpush1.bf16.msra.mxu0 %v7200_v11  ;;  %5903 = vmatpush3.bf16.msra.mxu1 %v7243_v44 }
 0xbdb   :  { %5875 = vmatprep.subr.bf16.mxu0 %v7204_v9  ;;  %5904 = vmatprep.subr.bf16.mxu1 %v6528_v40 }
 0xbde   :  { %5877 = vmatpush1.bf16.msra.mxu0 %v7206_v17  ;;  %5906 = vmatpush3.bf16.msra.mxu1 %v7249_v61 }
 0xbdf   :  { %5879 = vmatprep.subr.bf16.mxu0 %v7210_v56  ;;  %5907 = vmatprep.subr.bf16.mxu1 %v6528_v40 }
 0xbe2   :  { %5881 = vmatpush1.bf16.msra.mxu0 %v7212_v29  ;;  %5909 = vmatpush3.bf16.msra.mxu1 %v7252_v22 }
 0xbe3   :  { %5883 = vmatprep.subr.bf16.mxu0 %v7216_v16  ;;  %5910 = vmatprep.subr.bf16.mxu1 %v6528_v40 }
 0xbe6   :  { %5885 = vmatpush1.bf16.msra.mxu0 %v7218_v42  ;;  %5912 = vmatpush3.bf16.msra.mxu1 %v7256_v14 }
 0xbe7   :  { %5887 = vmatprep.subr.bf16.mxu0 %v7222_v25  ;;  %5913 = vmatprep.subr.bf16.mxu1 %v6528_v40 }
 0xbea   :  { %5889 = vmatpush1.bf16.msra.mxu0 %v7224_v57  ;;  %5915 = vmatpush3.bf16.msra.mxu1 %v7260_v49 }
 0xbeb   :  { %5891 = vmatprep.subr.bf16.mxu0 %v7228_v45  ;;  %5916 = vmatprep.subr.bf16.mxu1 %v6528_v40 }
 0xbee   :  { %5893 = vmatpush1.bf16.msra.mxu0 %v7230_v10  ;;  %5918 = vmatpush3.bf16.msra.mxu1 %v7264_v13 }
 0xbef   :  { %5895 = vmatprep.subr.bf16.mxu0 %v7237_v23  ;;  %5919 = vmatprep.subr.bf16.mxu1 %v6528_v40 }
 0xbf2   :  { %5897 = vmatpush1.bf16.msra.mxu0 %v7240_v43  ;;  %5921 = vmatpush3.bf16.msra.mxu1 %v7268_v51 }
 0xbf3   :  { %5923 = vmatprep.subr.bf16.mxu0 %v7192_v58  ;;  %5954 = vmatprep.subr.bf16.mxu1 %v6528_v40 }
 0xca8   :  { %v3131_v5 = vpop.f32.mrb[22].mxu0  ;;  %v3202_v39 = vpop.f32.mrb[38].mxu1 }
 0xca9   :  { %v6136_v3 = vadd.f32 %v3131_v5, %v7341_v24  ;;  %v3133_v32 = vpop.f32.mrb[23].mxu0  ;;  %v4890_v54 = vpop.f32.mrb[39].mxu1  ;;  %v3220_v37 = vadd.f32 %v7352_v1, %v3202_v39 }
 0xcaa   :  { %v6137_v50 = vadd.f32 %v3133_v32, %v7345_v19 }
 0xcab   :  { %v4035_v53 = vmul.f32 -1.442695, %v6136_v3 }
 0xcac   :  { %v4036_v7 = vmul.f32 -1.442695, %v6137_v50 }
 0xcad   :  { %6302 = vpow2.f32 %v4035_v53 }
 0xcae   :  { %6304 = vpow2.f32 %v4036_v7  ;;  %v2474_v7 = vadd.f32 %v7289_v52, %v7356_v2 }
 0xcb7   :  { %v6303_v21 = vpop.eup %6302 }
 0xcb8   :  { %v3210_v33 = vadd.f32 1.0, %v6303_v21  ;;  %v6305_v59 = vpop.eup %6304 }
 0xcb9   :  { %v3217_v36 = vadd.f32 1.0, %v6305_v59 }
 0xcba   :  { %6306 = vrcp.f32 %v3210_v33 }
 0xcbb   :  { %6308 = vrcp.f32 %v3217_v36 }
 0xcc4   :  { %v6307_v6 = vpop.eup %6306 }
 0xcc5   :  { %v3221_v60 = vmul.f32 %v6307_v6, %v3220_v37  ;;  %v6309_v27 = vpop.eup %6308 }
 0xcc6   :  { %v3224_v47 = vsub.f32 1.0, %v6309_v27  ;;  %v3226_v18 = vmul.f32 %v6309_v27, %v7451_v62 }
 0xcc7   :  { %v3222_v38 = vadd.f32 %v3221_v60, %v2469_v28 }
 0xcc9   :  { %6310 = vtanh.f32 %v3222_v38 }
 0xcd3   :  { %v6311_v30 = vpop.eup %6310 }
 0xcd4   :  { %v3225_v31 = vmul.f32 %v6311_v30, %v3224_v47 }
 0xcd6   :  { %v7496_v34 = vadd.f32 %v3226_v18, %v3225_v31 }
 0xcd8   :  { %3296 = vmatmul.mubr.f32.vlgmr.msra.gmra.mrb[24].mxu0 %v7496_v34  ;;  %4924 = vmatmul.mubr.f32.vlgmr.msra.gmra.mrb[40].mxu1 %v7496_v34 }
 0xcd9   :  { %5925 = vmatpush1.bf16.msra.mxu0 %v7194_v12  ;;  %5956 = vmatpush3.bf16.msra.mxu1 %v7232_v15 }
 0xcda   :  { %5927 = vmatprep.subr.bf16.mxu0 %v7198_v48  ;;  %5957 = vmatprep.subr.bf16.mxu1 %v6528_v40 }
 0xcdb   :  { %3461 = vmatprep.mubr.f32.mxu0 %v6527_v0  ;;  %4958 = vmatprep.mubr.msk.f32.mxu1 %vm6529_vm0, %v6527_v0 }
 0xcdd   :  { %5929 = vmatpush1.bf16.msra.mxu0 %v7200_v11  ;;  %5959 = vmatpush3.bf16.msra.mxu1 %v7243_v44 }
 0xcde   :  { %5931 = vmatprep.subr.bf16.mxu0 %v7204_v9  ;;  %5960 = vmatprep.subr.bf16.mxu1 %v6528_v40 }
 0xce1   :  { %5933 = vmatpush1.bf16.msra.mxu0 %v7206_v17  ;;  %5962 = vmatpush3.bf16.msra.mxu1 %v7249_v61 }
 0xce2   :  { %5935 = vmatprep.subr.bf16.mxu0 %v7210_v56  ;;  %5963 = vmatprep.subr.bf16.mxu1 %v6528_v40 }
 0xce5   :  { %5937 = vmatpush1.bf16.msra.mxu0 %v7212_v29  ;;  %5965 = vmatpush3.bf16.msra.mxu1 %v7252_v22 }
 0xce6   :  { %5939 = vmatprep.subr.bf16.mxu0 %v7216_v16  ;;  %5966 = vmatprep.subr.bf16.mxu1 %v6528_v40 }
 0xce9   :  { %5941 = vmatpush1.bf16.msra.mxu0 %v7218_v42  ;;  %5968 = vmatpush3.bf16.msra.mxu1 %v7256_v14 }
 0xcea   :  { %5943 = vmatprep.subr.bf16.mxu0 %v7222_v25  ;;  %5969 = vmatprep.subr.bf16.mxu1 %v6528_v40 }
 0xced   :  { %5945 = vmatpush1.bf16.msra.mxu0 %v7224_v57  ;;  %5971 = vmatpush3.bf16.msra.mxu1 %v7260_v49 }
 0xcee   :  { %5947 = vmatprep.subr.bf16.mxu0 %v7228_v45  ;;  %5972 = vmatprep.subr.bf16.mxu1 %v6528_v40 }
 0xcf1   :  { %5949 = vmatpush1.bf16.msra.mxu0 %v7230_v10  ;;  %5974 = vmatpush3.bf16.msra.mxu1 %v7264_v13 }
 0xcf2   :  { %5951 = vmatprep.subr.bf16.mxu0 %v7237_v23  ;;  %5975 = vmatprep.subr.bf16.mxu1 %v6528_v40 }
 0xcf5   :  { %5953 = vmatpush1.bf16.msra.mxu0 %v7240_v43  ;;  %5977 = vmatpush3.bf16.msra.mxu1 %v7268_v51 }
 0xcf6   :  { %5979 = vmatprep.subr.bf16.mxu0 %v7192_v58  ;;  %6010 = vmatprep.subr.bf16.mxu1 %v6528_v40 }
 0xdab   :  { %v3297_v41 = vpop.f32.mrb[24].mxu0  ;;  %v3368_v35 = vpop.f32.mrb[40].mxu1 }
 0xdac   :  { %v6138_v55 = vadd.f32 %v3297_v41, %v7341_v24  ;;  %v3299_v63 = vpop.f32.mrb[25].mxu0  ;;  %v4925_v4 = vpop.f32.mrb[41].mxu1  ;;  %v3386_v53 = vadd.f32 %v7352_v1, %v3368_v35 }
 0xdad   :  { %v6139_v62 = vadd.f32 %v3299_v63, %v7345_v19 }
 0xdae   :  { %v4037_v20 = vmul.f32 -1.442695, %v6138_v55 }
 0xdaf   :  { %v4038_v5 = vmul.f32 -1.442695, %v6139_v62 }
 0xdb0   :  { %6312 = vpow2.f32 %v4037_v20  ;;  %v2479_v20 = vadd.f32 %v7287_v8, %v7356_v2  ;;  %v3892_v8 = vld [vmem:[#allocation13] sm:$0xff] }
 0xdb1   :  { %6314 = vpow2.f32 %v4038_v5 }
 0xdba   :  { %v6313_v39 = vpop.eup %6312 }
 0xdbb   :  { %v3376_v3 = vadd.f32 1.0, %v6313_v39  ;;  %v6315_v32 = vpop.eup %6314 }
 0xdbc   :  { %v3383_v54 = vadd.f32 1.0, %v6315_v32 }
 0xdbd   :  { %6316 = vrcp.f32 %v3376_v3 }
 0xdbe   :  { %6318 = vrcp.f32 %v3383_v54 }
 0xdc7   :  { %v6317_v50 = vpop.eup %6316 }
 0xdc8   :  { %v3387_v21 = vmul.f32 %v6317_v50, %v3386_v53  ;;  %v6319_v59 = vpop.eup %6318 }
 0xdc9   :  { %v3390_v36 = vsub.f32 1.0, %v6319_v59  ;;  %v3392_v28 = vmul.f32 %v6319_v59, %v7496_v34 }
 0xdca   :  { %v3388_v33 = vadd.f32 %v3387_v21, %v2474_v7  ;;  %v3894_v21 = vld [vmem:[#allocation13 + $0x10] sm:$0xff] }
 0xdcc   :  { %6320 = vtanh.f32 %v3388_v33  ;;  %v3895_v33 = vld [vmem:[#allocation13 + $0x18] sm:$0xff] }
 0xdcd   :  { %v6094_v59 = vpack.c.bf16 %v3895_v33, %v3894_v21 }
 0xdd6   :  { %v6321_v37 = vpop.eup %6320 }
 0xdd7   :  { %v3391_v6 = vmul.f32 %v6321_v37, %v3390_v36  ;;  %v3896_v36 = vld [vmem:[#allocation13 + $0x20] sm:$0xff]  ;;  %v3897_v37 = vld [vmem:[#allocation13 + $0x28] sm:$0xff] }
 0xdd9   :  { %v7541_v60 = vadd.f32 %v3392_v28, %v3391_v6  ;;  %v6097_v6 = vpack.c.bf16 %v3897_v37, %v3896_v36  ;;  %v3898_v28 = vld [vmem:[#allocation13 + $0x30] sm:$0xff] }
 0xddb   :  { %3462 = vmatmul.mubr.f32.vlgmr.msra.gmra.mrb[26].mxu0 %v7541_v60  ;;  %4959 = vmatmul.mubr.f32.vlgmr.msra.gmra.mrb[42].mxu1 %v7541_v60 }
 0xddc   :  { %5981 = vmatpush1.bf16.msra.mxu0 %v7194_v12  ;;  %6012 = vmatpush3.bf16.msra.mxu1 %v7232_v15 }
 0xddd   :  { %5983 = vmatprep.subr.bf16.mxu0 %v7198_v48  ;;  %6013 = vmatprep.subr.bf16.mxu1 %v6528_v40 }
 0xdde   :  { %3627 = vmatprep.mubr.f32.mxu0 %v6527_v0  ;;  %4993 = vmatprep.mubr.msk.f32.mxu1 %vm6529_vm0, %v6527_v0 }
 0xde0   :  { %5985 = vmatpush1.bf16.msra.mxu0 %v7200_v11  ;;  %6015 = vmatpush3.bf16.msra.mxu1 %v7243_v44 }
 0xde1   :  { %5987 = vmatprep.subr.bf16.mxu0 %v7204_v9  ;;  %6016 = vmatprep.subr.bf16.mxu1 %v6528_v40 }
 0xde4   :  { %5989 = vmatpush1.bf16.msra.mxu0 %v7206_v17  ;;  %6018 = vmatpush3.bf16.msra.mxu1 %v7249_v61 }
 0xde5   :  { %5991 = vmatprep.subr.bf16.mxu0 %v7210_v56  ;;  %6019 = vmatprep.subr.bf16.mxu1 %v6528_v40 }
 0xde8   :  { %5993 = vmatpush1.bf16.msra.mxu0 %v7212_v29  ;;  %6021 = vmatpush3.bf16.msra.mxu1 %v7252_v22 }
 0xde9   :  { %5995 = vmatprep.subr.bf16.mxu0 %v7216_v16  ;;  %6022 = vmatprep.subr.bf16.mxu1 %v6528_v40 }
 0xdec   :  { %5997 = vmatpush1.bf16.msra.mxu0 %v7218_v42  ;;  %6024 = vmatpush3.bf16.msra.mxu1 %v7256_v14 }
 0xded   :  { %5999 = vmatprep.subr.bf16.mxu0 %v7222_v25  ;;  %6025 = vmatprep.subr.bf16.mxu1 %v6528_v40 }
 0xdf0   :  { %6001 = vmatpush1.bf16.msra.mxu0 %v7224_v57  ;;  %6027 = vmatpush3.bf16.msra.mxu1 %v7260_v49 }
 0xdf1   :  { %6003 = vmatprep.subr.bf16.mxu0 %v7228_v45  ;;  %6028 = vmatprep.subr.bf16.mxu1 %v6528_v40 }
 0xdf4   :  { %6005 = vmatpush1.bf16.msra.mxu0 %v7230_v10  ;;  %6030 = vmatpush3.bf16.msra.mxu1 %v7264_v13 }
 0xdf5   :  { %6007 = vmatprep.subr.bf16.mxu0 %v7237_v23  ;;  %6031 = vmatprep.subr.bf16.mxu1 %v6528_v40 }
 0xdf8   :  { %6009 = vmatpush1.bf16.msra.mxu0 %v7240_v43  ;;  %6033 = vmatpush3.bf16.msra.mxu1 %v7268_v51 }
 0xdf9   :  { %6035 = vmatprep.subr.bf16.mxu0 %v7192_v58  ;;  %6066 = vmatprep.subr.bf16.mxu1 %v6528_v40 }
 0xeae   :  { %v3463_v52 = vpop.f32.mrb[26].mxu0  ;;  %v3534_v38 = vpop.f32.mrb[42].mxu1 }
 0xeaf   :  { %v6140_v27 = vadd.f32 %v3463_v52, %v7341_v24  ;;  %v3465_v47 = vpop.f32.mrb[27].mxu0  ;;  %v4960_v30 = vpop.f32.mrb[43].mxu1  ;;  %v3552_v58 = vadd.f32 %v7352_v1, %v3534_v38  ;;  %v3900_v52 = vld [vmem:[#allocation13 + $0x40] sm:$0xff]  ;;  %v3901_v38 = vld [vmem:[#allocation13 + $0x48] sm:$0xff] }
 0xeb0   :  { %v6141_v18 = vadd.f32 %v3465_v47, %v7345_v19  ;;  %v3902_v47 = vld [vmem:[#allocation13 + $0x50] sm:$0xff]  ;;  %v3903_v30 = vld [vmem:[#allocation13 + $0x58] sm:$0xff] }
 0xeb1   :  { %v4039_v31 = vmul.f32 -1.442695, %v6140_v27  ;;  %v6103_v27 = vpack.c.bf16 %v3901_v38, %v3900_v52 }
 0xeb2   :  { %v4040_v34 = vmul.f32 -1.442695, %v6141_v18  ;;  %v3904_v18 = vld [vmem:[#allocation13 + $0x60] sm:$0xff] }
 0xeb3   :  { %6322 = vpow2.f32 %v4039_v31  ;;  %v6106_v31 = vpack.c.bf16 %v3903_v30, %v3902_v47 }
 0xeb4   :  { %6324 = vpow2.f32 %v4040_v34  ;;  %v3905_v34 = vld [vmem:[#allocation13 + $0x68] sm:$0xff] }
 0xebd   :  { %v6323_v41 = vpop.eup %6322 }
 0xebe   :  { %v3542_v35 = vadd.f32 1.0, %v6323_v41  ;;  %v6325_v55 = vpop.eup %6324  ;;  %v6109_v41 = vpack.c.bf16 %v3905_v34, %v3904_v18 }
 0xebf   :  { %v3549_v63 = vadd.f32 1.0, %v6325_v55  ;;  %v3907_v55 = vld [vmem:[#allocation13 + $0x78] sm:$0xff] }
 0xec0   :  { %6326 = vrcp.f32 %v3542_v35  ;;  %v3906_v35 = vld [vmem:[#allocation13 + $0x70] sm:$0xff] }
 0xec1   :  { %6328 = vrcp.f32 %v3549_v63  ;;  %v6112_v63 = vpack.c.bf16 %v3907_v55, %v3906_v35 }
 0xeca   :  { %v6327_v4 = vpop.eup %6326 }
 0xecb   :  { %v3553_v62 = vmul.f32 %v6327_v4, %v3552_v58  ;;  %v6329_v39 = vpop.eup %6328 }
 0xecc   :  { %v3556_v3 = vsub.f32 1.0, %v6329_v39  ;;  %v3558_v53 = vmul.f32 %v6329_v39, %v7541_v60 }
 0xecd   :  { %v3554_v5 = vadd.f32 %v3553_v62, %v2479_v20 }
 0xecf   :  { %6330 = vtanh.f32 %v3554_v5 }
 0xed9   :  { %v6331_v32 = vpop.eup %6330 }
 0xeda   :  { %v3557_v54 = vmul.f32 %v6331_v32, %v3556_v3 }
 0xedc   :  { %v3559_v50 = vadd.f32 %v3558_v53, %v3557_v54 }
 0xede   :  { %3628 = vmatmul.mubr.f32.vlgmr.msra.gmra.mrb[28].mxu0 %v3559_v50  ;;  %4994 = vmatmul.mubr.f32.vlgmr.msra.gmra.mrb[44].mxu1 %v3559_v50 }
 0xedf   :  { %6037 = vmatpush1.bf16.msra.mxu0 %v7194_v12  ;;  %6068 = vmatpush3.bf16.msra.mxu1 %v7232_v15 }
 0xee0   :  { %6039 = vmatprep.subr.bf16.mxu0 %v7198_v48  ;;  %6069 = vmatprep.subr.bf16.mxu1 %v6528_v40 }
 0xee1   :  { %3793 = vmatprep.mubr.f32.mxu0 %v6527_v0  ;;  %5028 = vmatprep.mubr.msk.f32.mxu1 %vm6529_vm0, %v6527_v0 }
 0xee3   :  { %6041 = vmatpush1.bf16.msra.mxu0 %v7200_v11  ;;  %6071 = vmatpush3.bf16.msra.mxu1 %v7243_v44 }
 0xee4   :  { %6043 = vmatprep.subr.bf16.mxu0 %v7204_v9  ;;  %6072 = vmatprep.subr.bf16.mxu1 %v6528_v40 }
 0xee7   :  { %6045 = vmatpush1.bf16.msra.mxu0 %v7206_v17  ;;  %6074 = vmatpush3.bf16.msra.mxu1 %v7249_v61 }
 0xee8   :  { %6047 = vmatprep.subr.bf16.mxu0 %v7210_v56  ;;  %6075 = vmatprep.subr.bf16.mxu1 %v6528_v40 }
 0xeeb   :  { %6049 = vmatpush1.bf16.msra.mxu0 %v7212_v29  ;;  %6077 = vmatpush3.bf16.msra.mxu1 %v7252_v22 }
 0xeec   :  { %6051 = vmatprep.subr.bf16.mxu0 %v7216_v16  ;;  %6078 = vmatprep.subr.bf16.mxu1 %v6528_v40 }
 0xeef   :  { %6053 = vmatpush1.bf16.msra.mxu0 %v7218_v42  ;;  %6080 = vmatpush3.bf16.msra.mxu1 %v7256_v14 }
 0xef0   :  { %6055 = vmatprep.subr.bf16.mxu0 %v7222_v25  ;;  %6081 = vmatprep.subr.bf16.mxu1 %v6528_v40 }
 0xef3   :  { %6057 = vmatpush1.bf16.msra.mxu0 %v7224_v57  ;;  %6083 = vmatpush3.bf16.msra.mxu1 %v7260_v49 }
 0xef4   :  { %6059 = vmatprep.subr.bf16.mxu0 %v7228_v45  ;;  %6084 = vmatprep.subr.bf16.mxu1 %v6528_v40 }
 0xef7   :  { %6061 = vmatpush1.bf16.msra.mxu0 %v7230_v10  ;;  %6086 = vmatpush3.bf16.msra.mxu1 %v7264_v13 }
 0xef8   :  { %6063 = vmatprep.subr.bf16.mxu0 %v7237_v23  ;;  %6087 = vmatprep.subr.bf16.mxu1 %v6528_v40  ;;  %v2484_v23 = vadd.f32 %v7337_v46, %v7356_v2  ;;  %v3893_v46 = vld [vmem:[#allocation13 + $0x8] sm:$0xff] }
 0xef9   :  { %v6091_v7 = vpack.c.bf16 %v3893_v46, %v3892_v8 }
 0xefb   :  { %6065 = vmatpush1.bf16.msra.mxu0 %v7240_v43  ;;  %6089 = vmatpush3.bf16.msra.mxu1 %v7268_v51 }
 0xefc   :  { %6090 = vmatprep.subr.bf16.mxu0 %v6528_v40 }
 0xfb1   :  { %v3629_v12 = vpop.f32.mrb[28].mxu0  ;;  %v3700_v48 = vpop.f32.mrb[44].mxu1 }
 0xfb2   :  { %v6142_v11 = vadd.f32 %v3629_v12, %v7341_v24  ;;  %v3631_v9 = vpop.f32.mrb[29].mxu0  ;;  %v4995_v17 = vpop.f32.mrb[45].mxu1  ;;  %v3718_v10 = vadd.f32 %v7352_v1, %v3700_v48 }
 0xfb3   :  { %v6143_v29 = vadd.f32 %v3631_v9, %v7345_v19 }
 0xfb4   :  { %v4041_v56 = vmul.f32 -1.442695, %v6142_v11  ;;  %v2489_v11 = vadd.f32 %v7335_v26, %v7356_v2 }
 0xfb5   :  { %v4042_v16 = vmul.f32 -1.442695, %v6143_v29 }
 0xfb6   :  { %6332 = vpow2.f32 %v4041_v56 }
 0xfb7   :  { %6334 = vpow2.f32 %v4042_v16 }
 0xfc0   :  { %v6333_v42 = vpop.eup %6332 }
 0xfc1   :  { %v3708_v25 = vadd.f32 1.0, %v6333_v42  ;;  %v6335_v57 = vpop.eup %6334 }
 0xfc2   :  { %v3715_v45 = vadd.f32 1.0, %v6335_v57 }
 0xfc3   :  { %6336 = vrcp.f32 %v3708_v25 }
 0xfc4   :  { %6338 = vrcp.f32 %v3715_v45 }
 0xfcd   :  { %v6337_v15 = vpop.eup %6336 }
 0xfce   :  { %v3719_v43 = vmul.f32 %v6337_v15, %v3718_v10  ;;  %v6339_v61 = vpop.eup %6338 }
 0xfcf   :  { %v3722_v22 = vsub.f32 1.0, %v6339_v61  ;;  %v3724_v13 = vmul.f32 %v6339_v61, %v3559_v50 }
 0xfd0   :  { %v3720_v44 = vadd.f32 %v3719_v43, %v2484_v23 }
 0xfd2   :  { %6340 = vtanh.f32 %v3720_v44 }
 0xfdc   :  { %v6341_v14 = vpop.eup %6340 }
 0xfdd   :  { %v3723_v49 = vmul.f32 %v6341_v14, %v3722_v22 }
 0xfdf   :  { %v7625_v51 = vadd.f32 %v3724_v13, %v3723_v49 }
 0xfe1   :  { %3794 = vmatmul.mubr.f32.vlgmr.msra.gmra.mrb[30].mxu0 %v7625_v51  ;;  %5029 = vmatmul.mubr.f32.vlgmr.msra.gmra.mrb[46].mxu1 %v7625_v51 }
 0xfe2   :  { %5063 = vmatprep.mubr.msk.f32.mxu0 %vm6529_vm0, %v6527_v0  ;;  %6092 = vmatpush3.bf16.msra.mxu0 %v6091_v7  ;;  %v3899_v0 = vld [vmem:[#allocation13 + $0x38] sm:$0xff] }
 0xfe3   :  { %6093 = vmatprep.subr.bf16.mxu0 %v6528_v40  ;;  %v6100_v60 = vpack.c.bf16 %v3899_v0, %v3898_v28 }
 0xfe6   :  { %6095 = vmatpush3.bf16.msra.mxu0 %v6094_v59 }
 0xfe7   :  { %6096 = vmatprep.subr.bf16.mxu0 %v6528_v40 }
 0xfea   :  { %6098 = vmatpush3.bf16.msra.mxu0 %v6097_v6 }
 0xfeb   :  { %6099 = vmatprep.subr.bf16.mxu0 %v6528_v40 }
 0xfee   :  { %6101 = vmatpush3.bf16.msra.mxu0 %v6100_v60 }
 0xfef   :  { %6102 = vmatprep.subr.bf16.mxu0 %v6528_v40 }
 0xff2   :  { %6104 = vmatpush3.bf16.msra.mxu0 %v6103_v27 }
 0xff3   :  { %6105 = vmatprep.subr.bf16.mxu0 %v6528_v40 }
 0xff6   :  { %6107 = vmatpush3.bf16.msra.mxu0 %v6106_v31 }
 0xff7   :  { %6108 = vmatprep.subr.bf16.mxu0 %v6528_v40 }
 0xffa   :  { %6110 = vmatpush3.bf16.msra.mxu0 %v6109_v41 }
 0xffb   :  { %6111 = vmatprep.subr.bf16.mxu0 %v6528_v40 }
 0xffe   :  { %6113 = vmatpush3.bf16.msra.mxu0 %v6112_v63 }
0x10b4   :  { %v3795_v58 = vpop.f32.mrb[30].mxu0  ;;  %v3866_v4 = vpop.f32.mrb[46].mxu1 }
0x10b5   :  { %v6144_v20 = vadd.f32 %v3795_v58, %v7341_v24  ;;  %v3797_v62 = vpop.f32.mrb[31].mxu0  ;;  %v5030_v5 = vpop.f32.mrb[47].mxu1  ;;  %v3884_v40 = vadd.f32 %v7352_v1, %v3866_v4  ;;  %v4045_v1 = vld [vmem:[%s7669_s10] ss:$0 sm:$0xff] }
0x10b6   :  { %v6145_v3 = vadd.f32 %v3797_v62, %v7345_v19 }
0x10b7   :  { %v4043_v39 = vmul.f32 -1.442695, %v6144_v20 }
0x10b8   :  { %v4044_v32 = vmul.f32 -1.442695, %v6145_v3 }
0x10b9   :  { %6342 = vpow2.f32 %v4043_v39 }
0x10ba   :  { %6344 = vpow2.f32 %v4044_v32 }
0x10c3   :  { %v6343_v54 = vpop.eup %6342 }
0x10c4   :  { %v3874_v53 = vadd.f32 1.0, %v6343_v54  ;;  %v6345_v50 = vpop.eup %6344 }
0x10c5   :  { %v3881_v12 = vadd.f32 1.0, %v6345_v50 }
0x10c6   :  { %6346 = vrcp.f32 %v3874_v53 }
0x10c7   :  { %6348 = vrcp.f32 %v3881_v12 }
0x10d0   :  { %v6347_v48 = vpop.eup %6346 }
0x10d1   :  { %v3885_v24 = vmul.f32 %v6347_v48, %v3884_v40  ;;  %v6349_v17 = vpop.eup %6348 }
0x10d2   :  { %v3888_v19 = vsub.f32 1.0, %v6349_v17  ;;  %v3890_v16 = vmul.f32 %v6349_v17, %v7625_v51 }
0x10d3   :  { %v3886_v9 = vadd.f32 %v3885_v24, %v2489_v11 }
0x10d5   :  { %6350 = vtanh.f32 %v3886_v9 }
0x10df   :  { %v6351_v56 = vpop.eup %6350 }
0x10e0   :  { %v3889_v29 = vmul.f32 %v6351_v56, %v3888_v19 }
0x10e2   :  { %v3891_v42 = vadd.f32 %v3890_v16, %v3889_v29 }
0x10e4   :  { %5064 = vmatmul.mubr.f32.vlgmr.msra.gmra.mrb[32].mxu0 %v3891_v42 }
0x11b7   :  { %v3981_v25 = vpop.f32.mrb[32].mxu0 }
0x11b8   :  { %v3982_v26 = vadd.f32 %v4045_v1, %v3981_v25  ;;  %v5065_v2 = vpop.f32.mrb[33].mxu0 }
0x11ba   :  { %3985 = vst [vmem:[#allocation15] sm:$0xff] %v3982_v26 }
0x11bb   :  { %6496 = shalt.err (!%p6493_p10)
}
0x11bc   :  { %s6497_s25 = scalar_lea.hbm %s7670_s11, 128 }
0x11bd   :  { %p6498_p11 = scmp.ne.s32.totalorder %s7670_s11, %s6497_s25  ;;  %p6501_p12 = scmp.lt.u32.totalorder %s6497_s25, %s7670_s11 }
0x11bf   :  { %p6503_p13 = pnand %p6501_p12, %p6498_p11 }
0x11c1   :  { %6506 = shalt.err (!%p6503_p13)
}
0x11c2   :  { %3995 = dma.vmem_to_hbm [thread:$0]  %s3993_s18, 128, %s7670_s11, [#allocation6]  }
0x11c3   :  { %6515 = dma.done.wait [#allocation6], 128  }
0x11c4   :  { %6516 = vsyncadd [#allocation6], 4294967168 }
0x11c5   :  { %3999 = vsyncpa [#allocation5], 1 }
0x11c6   :  { %4000 = vsyncpa [#allocation8], 1 }
0x11c7   :  { %4001 = vsyncpa [#allocation11], 1 }
0x11c8   :  { %4002 = vsyncpa [#allocation14], 1 }
0x11c9   :  { %4003 = vsyncpa [#allocation6], 1 }

</bundles_post_ra>
